<compile_context>
chip_gen: v6e
topology: v6e:2x2x1
jax: 0.10.0
libtpu: 0.0.40
codegen_flags: <defaults>
</compile_context>

<pallas_src>
import numpy as np
import jax
import jax.numpy as jnp
from jax.experimental import pallas as pl
from jax.experimental.pallas import tpu as pltpu

# ----------------------------- small config ---------------------------------
B = 2
H = W = 8
DIM = 32                   # C
WINDOW = 4
SHIFT = 2                  # shifted-window branch (mask + roll) exercised
NUM_HEADS = 2              # window-attention heads over C//2 channels
CHAN_HEADS = 1
MLP_RATIO = 4.0

HALF = DIM // 2            # 16
HEAD_DIM = HALF // NUM_HEADS
N_WIN = WINDOW * WINDOW    # tokens per window
NW = (H // WINDOW) * (W // WINDOW)
L = H * W                  # 64 tokens
L2 = 2 * L                 # head-stacked rows
HIDDEN = int(DIM * MLP_RATIO)
LN_EPS = 1e-5
NEG_INF = -1e9
BF = jnp.bfloat16


# ============================ fused Pallas kernel ============================
def _block_kernel(x_ref, g1_ref, b1_ref, wcomb_ref, bcomb_ref, hmask_ref,
                  bias2_ref, smat_ref, dw9_ref, temp_ref, wpo_ref, wproj_ref,
                  bproj_ref, g2_ref, b2_ref, w1_ref, bm1_ref, w2_ref, bm2_ref,
                  o_ref):
    # One batch element per grid step; tokens are in ORIGINAL raster order
    # (the cyclic shift lives inside bias2 / smat).
    x = x_ref[0]                                                    # (L, C) f32

    # ---------------- norm1 (f32) ----------------
    mu = jnp.mean(x, axis=-1, keepdims=True)
    var = jnp.mean((x - mu) ** 2, axis=-1, keepdims=True)
    xn = (x - mu) * jax.lax.rsqrt(var + LN_EPS) * g1_ref[...] + b1_ref[...]

    # ---------- fused QKV for both branches (head-stacked rows) ----------
    # rows 0:L and L:2L are the same tokens (head-0 / head-1 copies).
    xn2 = jnp.concatenate([xn, xn], axis=0)                         # (2L, C)
    qkv = jnp.dot(xn2.astype(BF), wcomb_ref[...],
                  preferred_element_type=jnp.float32) + bcomb_ref[...]   # (2L, 6*HALF)

    wproj = wproj_ref[...]                                          # (C, C) bf16
    y = bproj_ref[...]                                              # (1, C) f32

    # -------- window-attention branch (block-diagonal head stacking) --------
    hm = hmask_ref[...]                                             # (2L, HALF) 0/1
    q_bd = (qkv[:, :HALF] * hm).astype(BF)                          # q pre-scaled in wcomb
    k_st = qkv[:, HALF:2 * HALF].astype(BF)
    v_bd = (qkv[:, 2 * HALF:3 * HALF] * hm).astype(BF)
    s = jax.lax.dot_general(q_bd, k_st, (((1,), (1,)), ((), ())),
                            preferred_element_type=jnp.float32)     # (2L, 2L)
    # rel-pos bias + shift mask inside a window, -1e9 across windows / heads
    s = s + bias2_ref[...]                                          # f32
    e = jnp.exp(s - jnp.max(s, axis=-1, keepdims=True))
    p = e * pl.reciprocal(jnp.sum(e, axis=-1, keepdims=True), approx=True)
    o = jnp.dot(p.astype(BF), v_bd, preferred_element_type=jnp.float32)  # (2L, HALF)
    o_win = o[:L] + o[L:]                                           # (L, HALF) = [h0 | h1]
    y = y + jnp.dot(o_win.astype(BF), wproj[:HALF, :],
                    preferred_element_type=jnp.float32)

    # -------- channel-attention branch (last HALF channels) --------
    qkv_ch = qkv[:L, 3 * HALF:]                                     # (L, 3*HALF)
    dw9 = dw9_ref[...]                                              # (9, 3*HALF) f32
    # 3x3 depthwise conv, padding 1: 9 accumulating matmuls against 0/1 tap
    # matrices (shift permutation baked in).  No (9*L, 3*HALF) intermediate.
    conv = jnp.zeros((L, 3 * HALF), jnp.float32)
    for t in range(9):
        tap = (qkv_ch * dw9[t:t + 1, :]).astype(BF)
        conv = conv + jnp.dot(smat_ref[t], tap,
                              preferred_element_type=jnp.float32)

    qc = conv[:, :HALF]
    kc = conv[:, HALF:2 * HALF]
    vc = conv[:, 2 * HALF:]
    # F.normalize over the spatial axis (rows here), f32.
    qn = qc * jax.lax.rsqrt(jnp.maximum(jnp.sum(qc * qc, axis=0, keepdims=True), 1e-24))
    kn = kc * jax.lax.rsqrt(jnp.maximum(jnp.sum(kc * kc, axis=0, keepdims=True), 1e-24))
    a = jax.lax.dot_general(qn.astype(BF), kn.astype(BF), (((0,), (0,)), ((), ())),
                            preferred_element_type=jnp.float32)     # (HALF, HALF)
    a = a * temp_ref[0, 0]
    e2 = jnp.exp(a - jnp.max(a, axis=-1, keepdims=True))
    aw = e2 * pl.reciprocal(jnp.sum(e2, axis=-1, keepdims=True), approx=True)
    # output kept in (HW, HALF) orientation: (A @ V)^T = V^T @ A^T
    t1 = jax.lax.dot_general(vc.astype(BF), aw.astype(BF), (((1,), (1,)), ((), ())),
                             preferred_element_type=jnp.float32)    # (L, HALF)
    o2 = jnp.dot(t1.astype(BF), wpo_ref[...],
                 preferred_element_type=jnp.float32)                # 1x1 project_out
    y = y + jnp.dot(o2.astype(BF), wproj[HALF:, :],
                    preferred_element_type=jnp.float32)

    # ---------------- residual 1, norm2 + MLP, residual 2 (f32) ----------------
    w = x + y                                                        # drop_path = id
    mu2 = jnp.mean(w, axis=-1, keepdims=True)
    var2 = jnp.mean((w - mu2) ** 2, axis=-1, keepdims=True)
    wn = (w - mu2) * jax.lax.rsqrt(var2 + LN_EPS) * g2_ref[...] + b2_ref[...]
    h1 = jnp.dot(wn.astype(BF), w1_ref[...],
                 preferred_element_type=jnp.float32) + bm1_ref[...]
    # TODO(synk): tanh-approx GELU; PyTorch nn.GELU default is erf-based exact GELU (~1e-3 diff).
    h1 = jax.nn.gelu(h1, approximate=True)
    z = w + jnp.dot(h1.astype(BF), w2_ref[...],
                    preferred_element_type=jnp.float32) + bm2_ref[...]
    o_ref[0] = z.astype(o_ref.dtype)


def swin_block_forward(x, p):
    Bx = x.shape[0]
    rep = lambda r, c: pl.BlockSpec((r, c), lambda b: (0, 0))
    return pl.pallas_call(
        _block_kernel,
        out_shape=jax.ShapeDtypeStruct((Bx, L, DIM), x.dtype),
        grid=(Bx,),
        in_specs=[
            pl.BlockSpec((1, L, DIM), lambda b: (b, 0, 0)),            # tokens (original order)
            rep(1, DIM), rep(1, DIM),                                  # norm1 gamma/beta
            rep(DIM, 6 * HALF), rep(1, 6 * HALF),                      # fused qkv weight/bias
            rep(L2, HALF),                                             # head block-diag mask
            rep(L2, L2),                                               # stacked attn bias (shift baked in)
            pl.BlockSpec((9, L, L), lambda b: (0, 0, 0)),              # dwconv tap matrices (shift baked in)
            rep(9, 3 * HALF),                                          # dwconv tap channel weights
            rep(1, 1),                                                 # temperature
            rep(HALF, HALF),                                           # project_out^T
            rep(DIM, DIM), rep(1, DIM),                                # proj weight/bias
            rep(1, DIM), rep(1, DIM),                                  # norm2 gamma/beta
            rep(DIM, HIDDEN), rep(1, HIDDEN),                          # fc1
            rep(HIDDEN, DIM), rep(1, DIM),                             # fc2
        ],
        out_specs=pl.BlockSpec((1, L, DIM), lambda b: (b, 0, 0)),
        compiler_params=pltpu.CompilerParams(dimension_semantics=("parallel",)),
    )(x,
      p["g1_2d"], p["b1_2d"],
      p["wcomb"], p["bcomb"],
      p["hmask"], p["bias2"],
      p["smat"], p["dw9"],
      p["temperature"], p["proj_out_w_bf"],
      p["proj_w_bf"], p["proj_b_2d"],
      p["g2_2d"], p["b2_2d"],
      p["fc1_w_bf"], p["fc1_b_2d"],
      p["fc2_w_bf"], p["fc2_b_2d"])


# ============================== table builders ===============================
def make_rel_index(ws):
    coords = np.stack(np.meshgrid(np.arange(ws), np.arange(ws), indexing="ij"))
    cf = coords.reshape(2, -1)
    rel = (cf[:, :, None] - cf[:, None, :]).transpose(1, 2, 0).astype(np.int64)
    rel[:, :, 0] += ws - 1
    rel[:, :, 1] += ws - 1
    rel[:, :, 0] *= 2 * ws - 1
    return rel.sum(-1).astype(np.int32)                             # (N, N)


def make_attn_mask(h, w, ws, shift):
    if shift == 0:
        return np.zeros((NW, ws * ws, ws * ws), np.float32)
    img_mask = np.zeros((1, h, w, 1), np.float32)
    slices = (slice(0, -ws), slice(-ws, -shift), slice(-shift, None))
    cnt = 0
    for hs in slices:
        for wsl in slices:
            img_mask[:, hs, wsl, :] = cnt
            cnt += 1
    mw = (img_mask.reshape(1, h // ws, ws, w // ws, ws, 1)
                  .transpose(0, 1, 3, 2, 4, 5).reshape(-1, ws * ws))
    am = mw[:, None, :] - mw[:, :, None]
    return np.where(am != 0, -100.0, 0.0).astype(np.float32)


def make_shift_perm():
    # inv[i] = shifted-frame raster index of original token i
    pp = np.arange(L) // W
    qq = np.arange(L) % W
    return (((pp - SHIFT) % H) * W + ((qq - SHIFT) % W)).astype(np.int64)


def make_shift_mats():
    # 0/1 matrices implementing the 9 taps of a 3x3, padding-1 depthwise conv
    # on raster-ordered tokens (shifted-frame geometry; caller permutes).
    mats = np.zeros((9, L, L), np.float32)
    for dy in range(3):
        for dx in range(3):
            t = dy * 3 + dx
            for i in range(H):
                for j in range(W):
                    si, sj = i + dy - 1, j + dx - 1
                    if 0 <= si < H and 0 <= sj < W:
                        mats[t, i * W + j, si * W + sj] = 1.0
    return mats


def make_bias2(rel_table_np, rel_index_np, attn_mask_np, inv):
    # (2L, 2L) head-stacked bias in ORIGINAL token order: rel-pos bias + shift
    # mask inside a window, -1e9 across windows / heads; exactly reproduces the
    # per-window softmax of the shifted feature map.
    ii = np.arange(L) // W
    jj = np.arange(L) % W
    win = (ii // WINDOW) * (W // WINDOW) + (jj // WINDOW)
    loc = (ii % WINDOW) * WINDOW + (jj % WINDOW)
    rb_idx = rel_index_np[loc[:, None], loc[None, :]]                # (L, L)
    rb = (rel_table_np[rb_idx.reshape(-1)]
          .reshape(L, L, NUM_HEADS).transpose(2, 0, 1))              # (heads, L, L)
    mask_full = attn_mask_np[win[:, None], loc[:, None], loc[None, :]]
    same = (win[:, None] == win[None, :])
    fb = np.where(same[None], rb + mask_full[None], NEG_INF).astype(np.float32)
    fb = fb[:, inv][:, :, inv]                                       # bake the cyclic shift
    b2 = np.full((L2, L2), NEG_INF, np.float32)
    for h_ in range(NUM_HEADS):
        b2[h_ * L:(h_ + 1) * L, h_ * L:(h_ + 1) * L] = fb[h_]
    return b2


def init_params(key):
    ks = jax.random.split(key, 11)
    n = lambda k, s, std: std * jax.random.normal(k, s, jnp.float32)
    p = {}
    # ------- logical parameters (used by the pure-JAX reference) -------
    p["g1"] = jnp.ones((DIM,), jnp.float32)
    p["b1"] = jnp.zeros((DIM,), jnp.float32)
    p["g2"] = jnp.ones((DIM,), jnp.float32)
    p["b2"] = jnp.zeros((DIM,), jnp.float32)
    p["rel_bias_table"] = n(ks[0], ((2 * WINDOW - 1) ** 2, NUM_HEADS), 0.02)
    p["qkv_w_t"] = n(ks[1], (3 * HALF, HALF), 0.05).T                # Linear(HALF, 3*HALF)
    p["qkv_b"] = n(ks[2], (3 * HALF,), 0.02)
    dw = n(ks[3], (3 * HALF, 1, 3, 3), 0.1)                          # depthwise conv weight
    p["dw_w_t"] = jnp.transpose(dw[:, 0], (1, 2, 0))                 # (3, 3, 3*HALF) for reference
    p["temperature"] = jnp.ones((1, 1), jnp.float32)
    p["proj_out_w"] = n(ks[4], (HALF, HALF), 0.05)                   # 1x1 conv (O, I)
    p["proj_w_t"] = n(ks[5], (DIM, DIM), 0.05).T                     # Linear(dim, dim)
    p["proj_b"] = n(ks[6], (DIM,), 0.02)
    p["fc1_w_t"] = n(ks[7], (HIDDEN, DIM), 0.05).T
    p["fc1_b"] = n(ks[8], (HIDDEN,), 0.02)
    p["fc2_w_t"] = n(ks[9], (DIM, HIDDEN), 0.05).T
    p["fc2_b"] = n(ks[10], (DIM,), 0.02)

    rel_index_np = make_rel_index(WINDOW)
    attn_mask_np = make_attn_mask(H, W, WINDOW, SHIFT)
    p["rel_index"] = jnp.asarray(rel_index_np)
    p["attn_mask"] = jnp.asarray(attn_mask_np)

    # ------- kernel-packed tables (shift + head stacking baked in) -------
    inv = make_shift_perm()
    scale = HEAD_DIM ** -0.5
    wqkv_np = np.asarray(p["qkv_w_t"])                               # (HALF, 3*HALF)
    bqkv_np = np.asarray(p["qkv_b"])                                 # (3*HALF,)
    wq_s = wqkv_np.copy(); wq_s[:, :HALF] *= scale                   # fold q scale into weight
    bq_s = bqkv_np.copy(); bq_s[:HALF] *= scale
    wcomb = np.zeros((DIM, 6 * HALF), np.float32)
    wcomb[:HALF, :3 * HALF] = wq_s                                   # window branch (first C/2)
    wcomb[HALF:, 3 * HALF:] = wqkv_np                                # channel branch (last C/2)
    bcomb = np.concatenate([bq_s, bqkv_np])[None, :]                 # (1, 6*HALF)
    p["wcomb"] = jnp.asarray(wcomb, dtype=BF)
    p["bcomb"] = jnp.asarray(bcomb, dtype=jnp.float32)

    hmask = np.zeros((L2, HALF), np.float32)                         # block-diag head mask
    hmask[:L, :HEAD_DIM] = 1.0
    hmask[L:, HEAD_DIM:] = 1.0
    p["hmask"] = jnp.asarray(hmask)

    p["bias2"] = jnp.asarray(make_bias2(np.asarray(p["rel_bias_table"]),
                                        rel_index_np, attn_mask_np, inv))

    smat = make_shift_mats()
    smat = smat[:, inv][:, :, inv]                                   # bake the cyclic shift
    p["smat"] = jnp.asarray(smat, dtype=BF)                          # 0/1 -> exact in bf16
    p["dw9"] = dw[:, 0].reshape(3 * HALF, 9).T                       # (9, 3*HALF) f32

    p["proj_out_w_bf"] = jnp.asarray(p["proj_out_w"].T, dtype=BF)    # (I, O)
    p["proj_w_bf"] = jnp.asarray(p["proj_w_t"], dtype=BF)
    p["fc1_w_bf"] = jnp.asarray(p["fc1_w_t"], dtype=BF)
    p["fc2_w_bf"] = jnp.asarray(p["fc2_w_t"], dtype=BF)

    # pre-reshaped (1, n) biases / LN params for the kernel
    p["g1_2d"] = p["g1"].reshape(1, DIM); p["b1_2d"] = p["b1"].reshape(1, DIM)
    p["g2_2d"] = p["g2"].reshape(1, DIM); p["b2_2d"] = p["b2"].reshape(1, DIM)
    p["proj_b_2d"] = p["proj_b"].reshape(1, DIM)
    p["fc1_b_2d"] = p["fc1_b"].reshape(1, HIDDEN)
    p["fc2_b_2d"] = p["fc2_b"].reshape(1, DIM)
    return p


# ----------------------- pure-JAX reference (validation) --------------------
def reference_forward(x, p):
    Bx, Lx, C = x.shape
    shortcut = x

    def ln(v, g, b):
        mu = jnp.mean(v, -1, keepdims=True)
        var = jnp.mean((v - mu) ** 2, -1, keepdims=True)
        return (v - mu) * jax.lax.rsqrt(var + LN_EPS) * g + b

    xn = ln(x, p["g1"], p["b1"]).reshape(Bx, H, W, C)
    shifted = jnp.roll(xn, (-SHIFT, -SHIFT), axis=(1, 2)) if SHIFT > 0 else xn
    x1, x2 = shifted[..., :HALF], shifted[..., HALF:]

    xw = (x1.reshape(Bx, H // WINDOW, WINDOW, W // WINDOW, WINDOW, HALF)
            .transpose(0, 1, 3, 2, 4, 5).reshape(-1, N_WIN, HALF))
    qkv = xw @ p["qkv_w_t"] + p["qkv_b"]
    q, k, v = qkv[..., :HALF], qkv[..., HALF:2 * HALF], qkv[..., 2 * HALF:]
    BW = xw.shape[0]
    sh = lambda t: t.reshape(BW, N_WIN, NUM_HEADS, HEAD_DIM).transpose(0, 2, 1, 3)
    qh, kh, vh = sh(q), sh(k), sh(v)
    attn = (qh * HEAD_DIM ** -0.5) @ kh.transpose(0, 1, 3, 2)
    rel_bias = (p["rel_bias_table"][p["rel_index"].reshape(-1)]
                .reshape(N_WIN, N_WIN, NUM_HEADS).transpose(2, 0, 1))
    attn = attn + rel_bias[None]
    attn = (attn.reshape(Bx, NW, NUM_HEADS, N_WIN, N_WIN)
            + p["attn_mask"][None, :, None]).reshape(BW, NUM_HEADS, N_WIN, N_WIN)
    attn = jax.nn.softmax(attn, axis=-1)
    aw = (attn @ vh).transpose(0, 2, 1, 3).reshape(BW, N_WIN, HALF)
    x1_out = (aw.reshape(Bx, H // WINDOW, W // WINDOW, WINDOW, WINDOW, HALF)
                .transpose(0, 1, 3, 2, 4, 5).reshape(Bx, H, W, HALF))

    qkv2 = x2 @ p["qkv_w_t"] + p["qkv_b"]
    pad = jnp.pad(qkv2, ((0, 0), (1, 1), (1, 1), (0, 0)))
    acc = jnp.zeros_like(qkv2)
    for dy in range(3):
        for dx in range(3):
            acc = acc + pad[:, dy:dy + H, dx:dx + W, :] * p["dw_w_t"][dy, dx][None, None, None, :]
    qc = acc[..., :HALF].reshape(Bx, H * W, HALF).transpose(0, 2, 1)
    kc = acc[..., HALF:2 * HALF].reshape(Bx, H * W, HALF).transpose(0, 2, 1)
    vc = acc[..., 2 * HALF:].reshape(Bx, H * W, HALF).transpose(0, 2, 1)
    nrm = lambda t: t / jnp.maximum(jnp.linalg.norm(t, axis=-1, keepdims=True), 1e-12)
    attn_c = jax.nn.softmax((nrm(qc) @ nrm(kc).transpose(0, 2, 1)) * p["temperature"][0, 0], -1)
    oc = jnp.einsum("oi,bih->boh", p["proj_out_w"], attn_c @ vc)
    x2_out = oc.transpose(0, 2, 1).reshape(Bx, H, W, HALF)

    out = jnp.concatenate([x1_out, x2_out], axis=-1)
    if SHIFT > 0:
        out = jnp.roll(out, (SHIFT, SHIFT), axis=(1, 2))
    out = out.reshape(Bx, Lx, C) @ p["proj_w_t"] + p["proj_b"]
    xr = shortcut + out
    h1 = jax.nn.gelu(ln(xr, p["g2"], p["b2"]) @ p["fc1_w_t"] + p["fc1_b"], approximate=True)
    return xr + h1 @ p["fc2_w_t"] + p["fc2_b"]


# ================================== main =====================================
if __name__ == "__main__":
    key = jax.random.PRNGKey(0)
    pkey, xkey = jax.random.split(key)
    params = init_params(pkey)
    x = jax.random.normal(xkey, (B, H * W, DIM), jnp.float32)

    fwd = jax.jit(swin_block_forward)
    out = jax.block_until_ready(fwd(x, params))

    ref = reference_forward(x, params)
    assert out.shape == (B, H * W, DIM)
    assert bool(jnp.all(jnp.isfinite(out)))
    max_err = float(jnp.max(jnp.abs(out - ref)))
    # bf16 MXU operands + approx reciprocal vs the all-f32 reference -> widened tolerance.
    assert max_err < 3e-2, f"mismatch vs pure-JAX reference: {max_err}"
    print("KERNEL_OK")
</pallas_src>

<mosaic_0001>
module attributes {stable_mosaic.version = 11 : i64} {
  func.func @_block_kernel(%arg0: i32, %arg1: memref<1x64x32xf32, #tpu.memory_space<vmem>>, %arg2: memref<1x32xf32, #tpu.memory_space<vmem>>, %arg3: memref<1x32xf32, #tpu.memory_space<vmem>>, %arg4: memref<32x96xbf16, #tpu.memory_space<vmem>>, %arg5: memref<1x96xf32, #tpu.memory_space<vmem>>, %arg6: memref<128x16xf32, #tpu.memory_space<vmem>>, %arg7: memref<128x128xf32, #tpu.memory_space<vmem>>, %arg8: memref<9x64x64xbf16, #tpu.memory_space<vmem>>, %arg9: memref<9x48xf32, #tpu.memory_space<vmem>>, %arg10: memref<1x1xf32, #tpu.memory_space<vmem>>, %arg11: memref<16x16xbf16, #tpu.memory_space<vmem>>, %arg12: memref<32x32xbf16, #tpu.memory_space<vmem>>, %arg13: memref<1x32xf32, #tpu.memory_space<vmem>>, %arg14: memref<1x32xf32, #tpu.memory_space<vmem>>, %arg15: memref<1x32xf32, #tpu.memory_space<vmem>>, %arg16: memref<32x128xbf16, #tpu.memory_space<vmem>>, %arg17: memref<1x128xf32, #tpu.memory_space<vmem>>, %arg18: memref<128x32xbf16, #tpu.memory_space<vmem>>, %arg19: memref<1x32xf32, #tpu.memory_space<vmem>>, %arg20: memref<1x64x32xf32, #tpu.memory_space<vmem>>) attributes {dimension_semantics = [#tpu.dimension_semantics<parallel>], iteration_bounds = array<i64: 2>, scalar_prefetch = 0 : i64, scratch_operands = 0 : i64, tpu.core_type = #tpu.core_type<tc>, window_params = [{transform_indices = @transform_0, window_bounds = array<i64: 1, 64, 32>}, {pipeline_mode = #tpu.pipeline_mode<synchronous>, transform_indices = @transform_1, window_bounds = array<i64: 1, 32>}, {pipeline_mode = #tpu.pipeline_mode<synchronous>, transform_indices = @transform_2, window_bounds = array<i64: 1, 32>}, {pipeline_mode = #tpu.pipeline_mode<synchronous>, transform_indices = @transform_3, window_bounds = array<i64: 32, 96>}, {pipeline_mode = #tpu.pipeline_mode<synchronous>, transform_indices = @transform_4, window_bounds = array<i64: 1, 96>}, {pipeline_mode = #tpu.pipeline_mode<synchronous>, transform_indices = @transform_5, window_bounds = array<i64: 128, 16>}, {pipeline_mode = #tpu.pipeline_mode<synchronous>, transform_indices = @transform_6, window_bounds = array<i64: 128, 128>}, {pipeline_mode = #tpu.pipeline_mode<synchronous>, transform_indices = @transform_7, window_bounds = array<i64: 9, 64, 64>}, {pipeline_mode = #tpu.pipeline_mode<synchronous>, transform_indices = @transform_8, window_bounds = array<i64: 9, 48>}, {pipeline_mode = #tpu.pipeline_mode<synchronous>, transform_indices = @transform_9, window_bounds = array<i64: 1, 1>}, {pipeline_mode = #tpu.pipeline_mode<synchronous>, transform_indices = @transform_10, window_bounds = array<i64: 16, 16>}, {pipeline_mode = #tpu.pipeline_mode<synchronous>, transform_indices = @transform_11, window_bounds = array<i64: 32, 32>}, {pipeline_mode = #tpu.pipeline_mode<synchronous>, transform_indices = @transform_12, window_bounds = array<i64: 1, 32>}, {pipeline_mode = #tpu.pipeline_mode<synchronous>, transform_indices = @transform_13, window_bounds = array<i64: 1, 32>}, {pipeline_mode = #tpu.pipeline_mode<synchronous>, transform_indices = @transform_14, window_bounds = array<i64: 1, 32>}, {pipeline_mode = #tpu.pipeline_mode<synchronous>, transform_indices = @transform_15, window_bounds = array<i64: 32, 128>}, {pipeline_mode = #tpu.pipeline_mode<synchronous>, transform_indices = @transform_16, window_bounds = array<i64: 1, 128>}, {pipeline_mode = #tpu.pipeline_mode<synchronous>, transform_indices = @transform_17, window_bounds = array<i64: 128, 32>}, {pipeline_mode = #tpu.pipeline_mode<synchronous>, transform_indices = @transform_18, window_bounds = array<i64: 1, 32>}, {transform_indices = @transform_19, window_bounds = array<i64: 1, 64, 32>}]} {
    %c0 = arith.constant 0 : index
    %c0_0 = arith.constant 0 : index
    %c0_1 = arith.constant 0 : index
    %0 = vector.load %arg1[%c0, %c0_0, %c0_1] : memref<1x64x32xf32, #tpu.memory_space<vmem>>, vector<1x64x32xf32>
    %1 = vector.shape_cast %0 : vector<1x64x32xf32> to vector<64x32xf32>
    %cst = arith.constant dense<0.000000e+00> : vector<64xf32>
    %2 = vector.multi_reduction <add>, %1, %cst [1] : vector<64x32xf32> to vector<64xf32>
    %3 = vector.shape_cast %2 : vector<64xf32> to vector<64x1xf32>
    %cst_2 = arith.constant 3.200000e+01 : f32
    %4 = vector.broadcast %cst_2 : f32 to vector<64x1xf32>
    %5 = arith.divf %3, %4 : vector<64x1xf32>
    %6 = vector.broadcast %5 : vector<64x1xf32> to vector<64x32xf32>
    %7 = arith.subf %1, %6 : vector<64x32xf32>
    %8 = arith.mulf %7, %7 : vector<64x32xf32>
    %cst_3 = arith.constant dense<0.000000e+00> : vector<64xf32>
    %9 = vector.multi_reduction <add>, %8, %cst_3 [1] : vector<64x32xf32> to vector<64xf32>
    %10 = vector.shape_cast %9 : vector<64xf32> to vector<64x1xf32>
    %cst_4 = arith.constant 3.200000e+01 : f32
    %11 = vector.broadcast %cst_4 : f32 to vector<64x1xf32>
    %12 = arith.divf %10, %11 : vector<64x1xf32>
    %13 = vector.broadcast %5 : vector<64x1xf32> to vector<64x32xf32>
    %14 = arith.subf %1, %13 : vector<64x32xf32>
    %cst_5 = arith.constant 9.99999974E-6 : f32
    %15 = vector.broadcast %cst_5 : f32 to vector<64x1xf32>
    %16 = arith.addf %12, %15 : vector<64x1xf32>
    %17 = math.rsqrt %16 : vector<64x1xf32>
    %18 = vector.broadcast %17 : vector<64x1xf32> to vector<64x32xf32>
    %19 = arith.mulf %14, %18 : vector<64x32xf32>
    %c0_6 = arith.constant 0 : index
    %c0_7 = arith.constant 0 : index
    %20 = vector.load %arg2[%c0_6, %c0_7] : memref<1x32xf32, #tpu.memory_space<vmem>>, vector<1x32xf32>
    %21 = vector.broadcast %20 : vector<1x32xf32> to vector<64x32xf32>
    %22 = arith.mulf %19, %21 : vector<64x32xf32>
    %c0_8 = arith.constant 0 : index
    %c0_9 = arith.constant 0 : index
    %23 = vector.load %arg3[%c0_8, %c0_9] : memref<1x32xf32, #tpu.memory_space<vmem>>, vector<1x32xf32>
    %24 = vector.broadcast %23 : vector<1x32xf32> to vector<64x32xf32>
    %25 = arith.addf %22, %24 : vector<64x32xf32>
    %26 = tpu.concatenate %25, %25 in 0 : vector<64x32xf32>, vector<64x32xf32> -> vector<128x32xf32>
    %27 = arith.truncf %26 : vector<128x32xf32> to vector<128x32xbf16>
    %c0_10 = arith.constant 0 : index
    %c0_11 = arith.constant 0 : index
    %28 = vector.load %arg4[%c0_10, %c0_11] : memref<32x96xbf16, #tpu.memory_space<vmem>>, vector<32x96xbf16>
    %cst_12 = arith.constant dense<0.000000e+00> : vector<128x96xf32>
    %29 = tpu.matmul %27, %28, %cst_12 {dimension_numbers = #tpu.dot_dimension_numbers<[1], [0], [0], [1], [0, 0, 1, 1], [], []>} : vector<128x32xbf16>, vector<32x96xbf16>, vector<128x96xf32> -> vector<128x96xf32>
    %c0_13 = arith.constant 0 : index
    %c0_14 = arith.constant 0 : index
    %30 = vector.load %arg5[%c0_13, %c0_14] : memref<1x96xf32, #tpu.memory_space<vmem>>, vector<1x96xf32>
    %31 = vector.broadcast %30 : vector<1x96xf32> to vector<128x96xf32>
    %32 = arith.addf %29, %31 : vector<128x96xf32>
    %c0_15 = arith.constant 0 : index
    %c0_16 = arith.constant 0 : index
    %33 = vector.load %arg12[%c0_15, %c0_16] : memref<32x32xbf16, #tpu.memory_space<vmem>>, vector<32x32xbf16>
    %c0_17 = arith.constant 0 : index
    %c0_18 = arith.constant 0 : index
    %34 = vector.load %arg13[%c0_17, %c0_18] : memref<1x32xf32, #tpu.memory_space<vmem>>, vector<1x32xf32>
    %c0_19 = arith.constant 0 : index
    %c0_20 = arith.constant 0 : index
    %35 = vector.load %arg6[%c0_19, %c0_20] : memref<128x16xf32, #tpu.memory_space<vmem>>, vector<128x16xf32>
    %36 = vector.extract_strided_slice %32 {offsets = [0, 0], sizes = [128, 16], strides = [1, 1]} : vector<128x96xf32> to vector<128x16xf32>
    %37 = arith.mulf %36, %35 : vector<128x16xf32>
    %38 = arith.truncf %37 : vector<128x16xf32> to vector<128x16xbf16>
    %39 = vector.extract_strided_slice %32 {offsets = [0, 16], sizes = [128, 16], strides = [1, 1]} : vector<128x96xf32> to vector<128x16xf32>
    %40 = arith.truncf %39 : vector<128x16xf32> to vector<128x16xbf16>
    %41 = vector.extract_strided_slice %32 {offsets = [0, 32], sizes = [128, 16], strides = [1, 1]} : vector<128x96xf32> to vector<128x16xf32>
    %42 = arith.mulf %41, %35 : vector<128x16xf32>
    %43 = arith.truncf %42 : vector<128x16xf32> to vector<128x16xbf16>
    %cst_21 = arith.constant dense<0.000000e+00> : vector<128x128xf32>
    %44 = tpu.matmul %38, %40, %cst_21 {dimension_numbers = #tpu.dot_dimension_numbers<[1], [1], [0], [0], [0, 0, 1, 0], [], []>} : vector<128x16xbf16>, vector<128x16xbf16>, vector<128x128xf32> -> vector<128x128xf32>
    %c0_22 = arith.constant 0 : index
    %c0_23 = arith.constant 0 : index
    %45 = vector.load %arg7[%c0_22, %c0_23] : memref<128x128xf32, #tpu.memory_space<vmem>>, vector<128x128xf32>
    %46 = arith.addf %44, %45 : vector<128x128xf32>
    %cst_24 = arith.constant dense<0xFF800000> : vector<128xf32>
    %47 = vector.multi_reduction <maximumf>, %46, %cst_24 [1] : vector<128x128xf32> to vector<128xf32>
    %48 = vector.shape_cast %47 : vector<128xf32> to vector<128x1xf32>
    %49 = vector.broadcast %48 : vector<128x1xf32> to vector<128x128xf32>
    %50 = arith.subf %46, %49 : vector<128x128xf32>
    %51 = math.exp %50 : vector<128x128xf32>
    %cst_25 = arith.constant dense<0.000000e+00> : vector<128xf32>
    %52 = vector.multi_reduction <add>, %51, %cst_25 [1] : vector<128x128xf32> to vector<128xf32>
    %53 = vector.shape_cast %52 : vector<128xf32> to vector<128x1xf32>
    %54 = tpu.reciprocal %53 {approx = true} : vector<128x1xf32> -> vector<128x1xf32>
    %55 = vector.broadcast %54 : vector<128x1xf32> to vector<128x128xf32>
    %56 = arith.mulf %51, %55 : vector<128x128xf32>
    %57 = arith.truncf %56 : vector<128x128xf32> to vector<128x128xbf16>
    %cst_26 = arith.constant dense<0.000000e+00> : vector<128x16xf32>
    %58 = tpu.matmul %57, %43, %cst_26 {dimension_numbers = #tpu.dot_dimension_numbers<[1], [0], [0], [1], [0, 0, 1, 1], [], []>} : vector<128x128xbf16>, vector<128x16xbf16>, vector<128x16xf32> -> vector<128x16xf32>
    %59 = vector.extract_strided_slice %58 {offsets = [0, 0], sizes = [64, 16], strides = [1, 1]} : vector<128x16xf32> to vector<64x16xf32>
    %60 = vector.extract_strided_slice %58 {offsets = [64, 0], sizes = [64, 16], strides = [1, 1]} : vector<128x16xf32> to vector<64x16xf32>
    %61 = arith.addf %59, %60 : vector<64x16xf32>
    %62 = arith.truncf %61 : vector<64x16xf32> to vector<64x16xbf16>
    %63 = vector.extract_strided_slice %33 {offsets = [0, 0], sizes = [16, 32], strides = [1, 1]} : vector<32x32xbf16> to vector<16x32xbf16>
    %cst_27 = arith.constant dense<0.000000e+00> : vector<64x32xf32>
    %64 = tpu.matmul %62, %63, %cst_27 {dimension_numbers = #tpu.dot_dimension_numbers<[1], [0], [0], [1], [0, 0, 1, 1], [], []>} : vector<64x16xbf16>, vector<16x32xbf16>, vector<64x32xf32> -> vector<64x32xf32>
    %65 = vector.broadcast %34 : vector<1x32xf32> to vector<64x32xf32>
    %66 = arith.addf %65, %64 : vector<64x32xf32>
    %67 = vector.extract_strided_slice %32 {offsets = [0, 48], sizes = [64, 48], strides = [1, 1]} : vector<128x96xf32> to vector<64x48xf32>
    %c0_28 = arith.constant 0 : index
    %c0_29 = arith.constant 0 : index
    %68 = vector.load %arg9[%c0_28, %c0_29] : memref<9x48xf32, #tpu.memory_space<vmem>>, vector<9x48xf32>
    %cst_30 = arith.constant 0.000000e+00 : f32
    %69 = vector.broadcast %cst_30 : f32 to vector<64x48xf32>
    %70 = vector.extract_strided_slice %68 {offsets = [0, 0], sizes = [1, 48], strides = [1, 1]} : vector<9x48xf32> to vector<1x48xf32>
    %71 = vector.broadcast %70 : vector<1x48xf32> to vector<64x48xf32>
    %72 = arith.mulf %67, %71 : vector<64x48xf32>
    %73 = arith.truncf %72 : vector<64x48xf32> to vector<64x48xbf16>
    %c0_31 = arith.constant 0 : index
    %c0_32 = arith.constant 0 : index
    %c0_33 = arith.constant 0 : index
    %74 = vector.load %arg8[%c0_31, %c0_32, %c0_33] : memref<9x64x64xbf16, #tpu.memory_space<vmem>>, vector<1x64x64xbf16>
    %75 = vector.shape_cast %74 : vector<1x64x64xbf16> to vector<64x64xbf16>
    %cst_34 = arith.constant dense<0.000000e+00> : vector<64x48xf32>
    %76 = tpu.matmul %75, %73, %cst_34 {dimension_numbers = #tpu.dot_dimension_numbers<[1], [0], [0], [1], [0, 0, 1, 1], [], []>} : vector<64x64xbf16>, vector<64x48xbf16>, vector<64x48xf32> -> vector<64x48xf32>
    %77 = arith.addf %69, %76 : vector<64x48xf32>
    %78 = vector.extract_strided_slice %68 {offsets = [1, 0], sizes = [1, 48], strides = [1, 1]} : vector<9x48xf32> to vector<1x48xf32>
    %79 = vector.broadcast %78 : vector<1x48xf32> to vector<64x48xf32>
    %80 = arith.mulf %67, %79 : vector<64x48xf32>
    %81 = arith.truncf %80 : vector<64x48xf32> to vector<64x48xbf16>
    %c1 = arith.constant 1 : index
    %c0_35 = arith.constant 0 : index
    %c0_36 = arith.constant 0 : index
    %82 = vector.load %arg8[%c1, %c0_35, %c0_36] : memref<9x64x64xbf16, #tpu.memory_space<vmem>>, vector<1x64x64xbf16>
    %83 = vector.shape_cast %82 : vector<1x64x64xbf16> to vector<64x64xbf16>
    %cst_37 = arith.constant dense<0.000000e+00> : vector<64x48xf32>
    %84 = tpu.matmul %83, %81, %cst_37 {dimension_numbers = #tpu.dot_dimension_numbers<[1], [0], [0], [1], [0, 0, 1, 1], [], []>} : vector<64x64xbf16>, vector<64x48xbf16>, vector<64x48xf32> -> vector<64x48xf32>
    %85 = arith.addf %77, %84 : vector<64x48xf32>
    %86 = vector.extract_strided_slice %68 {offsets = [2, 0], sizes = [1, 48], strides = [1, 1]} : vector<9x48xf32> to vector<1x48xf32>
    %87 = vector.broadcast %86 : vector<1x48xf32> to vector<64x48xf32>
    %88 = arith.mulf %67, %87 : vector<64x48xf32>
    %89 = arith.truncf %88 : vector<64x48xf32> to vector<64x48xbf16>
    %c2 = arith.constant 2 : index
    %c0_38 = arith.constant 0 : index
    %c0_39 = arith.constant 0 : index
    %90 = vector.load %arg8[%c2, %c0_38, %c0_39] : memref<9x64x64xbf16, #tpu.memory_space<vmem>>, vector<1x64x64xbf16>
    %91 = vector.shape_cast %90 : vector<1x64x64xbf16> to vector<64x64xbf16>
    %cst_40 = arith.constant dense<0.000000e+00> : vector<64x48xf32>
    %92 = tpu.matmul %91, %89, %cst_40 {dimension_numbers = #tpu.dot_dimension_numbers<[1], [0], [0], [1], [0, 0, 1, 1], [], []>} : vector<64x64xbf16>, vector<64x48xbf16>, vector<64x48xf32> -> vector<64x48xf32>
    %93 = arith.addf %85, %92 : vector<64x48xf32>
    %94 = vector.extract_strided_slice %68 {offsets = [3, 0], sizes = [1, 48], strides = [1, 1]} : vector<9x48xf32> to vector<1x48xf32>
    %95 = vector.broadcast %94 : vector<1x48xf32> to vector<64x48xf32>
    %96 = arith.mulf %67, %95 : vector<64x48xf32>
    %97 = arith.truncf %96 : vector<64x48xf32> to vector<64x48xbf16>
    %c3 = arith.constant 3 : index
    %c0_41 = arith.constant 0 : index
    %c0_42 = arith.constant 0 : index
    %98 = vector.load %arg8[%c3, %c0_41, %c0_42] : memref<9x64x64xbf16, #tpu.memory_space<vmem>>, vector<1x64x64xbf16>
    %99 = vector.shape_cast %98 : vector<1x64x64xbf16> to vector<64x64xbf16>
    %cst_43 = arith.constant dense<0.000000e+00> : vector<64x48xf32>
    %100 = tpu.matmul %99, %97, %cst_43 {dimension_numbers = #tpu.dot_dimension_numbers<[1], [0], [0], [1], [0, 0, 1, 1], [], []>} : vector<64x64xbf16>, vector<64x48xbf16>, vector<64x48xf32> -> vector<64x48xf32>
    %101 = arith.addf %93, %100 : vector<64x48xf32>
    %102 = vector.extract_strided_slice %68 {offsets = [4, 0], sizes = [1, 48], strides = [1, 1]} : vector<9x48xf32> to vector<1x48xf32>
    %103 = vector.broadcast %102 : vector<1x48xf32> to vector<64x48xf32>
    %104 = arith.mulf %67, %103 : vector<64x48xf32>
    %105 = arith.truncf %104 : vector<64x48xf32> to vector<64x48xbf16>
    %c4 = arith.constant 4 : index
    %c0_44 = arith.constant 0 : index
    %c0_45 = arith.constant 0 : index
    %106 = vector.load %arg8[%c4, %c0_44, %c0_45] : memref<9x64x64xbf16, #tpu.memory_space<vmem>>, vector<1x64x64xbf16>
    %107 = vector.shape_cast %106 : vector<1x64x64xbf16> to vector<64x64xbf16>
    %cst_46 = arith.constant dense<0.000000e+00> : vector<64x48xf32>
    %108 = tpu.matmul %107, %105, %cst_46 {dimension_numbers = #tpu.dot_dimension_numbers<[1], [0], [0], [1], [0, 0, 1, 1], [], []>} : vector<64x64xbf16>, vector<64x48xbf16>, vector<64x48xf32> -> vector<64x48xf32>
    %109 = arith.addf %101, %108 : vector<64x48xf32>
    %110 = vector.extract_strided_slice %68 {offsets = [5, 0], sizes = [1, 48], strides = [1, 1]} : vector<9x48xf32> to vector<1x48xf32>
    %111 = vector.broadcast %110 : vector<1x48xf32> to vector<64x48xf32>
    %112 = arith.mulf %67, %111 : vector<64x48xf32>
    %113 = arith.truncf %112 : vector<64x48xf32> to vector<64x48xbf16>
    %c5 = arith.constant 5 : index
    %c0_47 = arith.constant 0 : index
    %c0_48 = arith.constant 0 : index
    %114 = vector.load %arg8[%c5, %c0_47, %c0_48] : memref<9x64x64xbf16, #tpu.memory_space<vmem>>, vector<1x64x64xbf16>
    %115 = vector.shape_cast %114 : vector<1x64x64xbf16> to vector<64x64xbf16>
    %cst_49 = arith.constant dense<0.000000e+00> : vector<64x48xf32>
    %116 = tpu.matmul %115, %113, %cst_49 {dimension_numbers = #tpu.dot_dimension_numbers<[1], [0], [0], [1], [0, 0, 1, 1], [], []>} : vector<64x64xbf16>, vector<64x48xbf16>, vector<64x48xf32> -> vector<64x48xf32>
    %117 = arith.addf %109, %116 : vector<64x48xf32>
    %118 = vector.extract_strided_slice %68 {offsets = [6, 0], sizes = [1, 48], strides = [1, 1]} : vector<9x48xf32> to vector<1x48xf32>
    %119 = vector.broadcast %118 : vector<1x48xf32> to vector<64x48xf32>
    %120 = arith.mulf %67, %119 : vector<64x48xf32>
    %121 = arith.truncf %120 : vector<64x48xf32> to vector<64x48xbf16>
    %c6 = arith.constant 6 : index
    %c0_50 = arith.constant 0 : index
    %c0_51 = arith.constant 0 : index
    %122 = vector.load %arg8[%c6, %c0_50, %c0_51] : memref<9x64x64xbf16, #tpu.memory_space<vmem>>, vector<1x64x64xbf16>
    %123 = vector.shape_cast %122 : vector<1x64x64xbf16> to vector<64x64xbf16>
    %cst_52 = arith.constant dense<0.000000e+00> : vector<64x48xf32>
    %124 = tpu.matmul %123, %121, %cst_52 {dimension_numbers = #tpu.dot_dimension_numbers<[1], [0], [0], [1], [0, 0, 1, 1], [], []>} : vector<64x64xbf16>, vector<64x48xbf16>, vector<64x48xf32> -> vector<64x48xf32>
    %125 = arith.addf %117, %124 : vector<64x48xf32>
    %126 = vector.extract_strided_slice %68 {offsets = [7, 0], sizes = [1, 48], strides = [1, 1]} : vector<9x48xf32> to vector<1x48xf32>
    %127 = vector.broadcast %126 : vector<1x48xf32> to vector<64x48xf32>
    %128 = arith.mulf %67, %127 : vector<64x48xf32>
    %129 = arith.truncf %128 : vector<64x48xf32> to vector<64x48xbf16>
    %c7 = arith.constant 7 : index
    %c0_53 = arith.constant 0 : index
    %c0_54 = arith.constant 0 : index
    %130 = vector.load %arg8[%c7, %c0_53, %c0_54] : memref<9x64x64xbf16, #tpu.memory_space<vmem>>, vector<1x64x64xbf16>
    %131 = vector.shape_cast %130 : vector<1x64x64xbf16> to vector<64x64xbf16>
    %cst_55 = arith.constant dense<0.000000e+00> : vector<64x48xf32>
    %132 = tpu.matmul %131, %129, %cst_55 {dimension_numbers = #tpu.dot_dimension_numbers<[1], [0], [0], [1], [0, 0, 1, 1], [], []>} : vector<64x64xbf16>, vector<64x48xbf16>, vector<64x48xf32> -> vector<64x48xf32>
    %133 = arith.addf %125, %132 : vector<64x48xf32>
    %134 = vector.extract_strided_slice %68 {offsets = [8, 0], sizes = [1, 48], strides = [1, 1]} : vector<9x48xf32> to vector<1x48xf32>
    %135 = vector.broadcast %134 : vector<1x48xf32> to vector<64x48xf32>
    %136 = arith.mulf %67, %135 : vector<64x48xf32>
    %137 = arith.truncf %136 : vector<64x48xf32> to vector<64x48xbf16>
    %c8 = arith.constant 8 : index
    %c0_56 = arith.constant 0 : index
    %c0_57 = arith.constant 0 : index
    %138 = vector.load %arg8[%c8, %c0_56, %c0_57] : memref<9x64x64xbf16, #tpu.memory_space<vmem>>, vector<1x64x64xbf16>
    %139 = vector.shape_cast %138 : vector<1x64x64xbf16> to vector<64x64xbf16>
    %cst_58 = arith.constant dense<0.000000e+00> : vector<64x48xf32>
    %140 = tpu.matmul %139, %137, %cst_58 {dimension_numbers = #tpu.dot_dimension_numbers<[1], [0], [0], [1], [0, 0, 1, 1], [], []>} : vector<64x64xbf16>, vector<64x48xbf16>, vector<64x48xf32> -> vector<64x48xf32>
    %141 = arith.addf %133, %140 : vector<64x48xf32>
    %142 = vector.extract_strided_slice %141 {offsets = [0, 0], sizes = [64, 16], strides = [1, 1]} : vector<64x48xf32> to vector<64x16xf32>
    %143 = vector.extract_strided_slice %141 {offsets = [0, 16], sizes = [64, 16], strides = [1, 1]} : vector<64x48xf32> to vector<64x16xf32>
    %144 = vector.extract_strided_slice %141 {offsets = [0, 32], sizes = [64, 16], strides = [1, 1]} : vector<64x48xf32> to vector<64x16xf32>
    %145 = arith.mulf %142, %142 : vector<64x16xf32>
    %cst_59 = arith.constant dense<0.000000e+00> : vector<16xf32>
    %146 = vector.multi_reduction <add>, %145, %cst_59 [0] : vector<64x16xf32> to vector<16xf32>
    %147 = vector.shape_cast %146 : vector<16xf32> to vector<1x16xf32>
    %cst_60 = arith.constant 1.000000e-24 : f32
    %148 = vector.broadcast %cst_60 : f32 to vector<1x16xf32>
    %149 = arith.maximumf %147, %148 : vector<1x16xf32>
    %150 = math.rsqrt %149 : vector<1x16xf32>
    %151 = vector.broadcast %150 : vector<1x16xf32> to vector<64x16xf32>
    %152 = arith.mulf %142, %151 : vector<64x16xf32>
    %153 = arith.mulf %143, %143 : vector<64x16xf32>
    %cst_61 = arith.constant dense<0.000000e+00> : vector<16xf32>
    %154 = vector.multi_reduction <add>, %153, %cst_61 [0] : vector<64x16xf32> to vector<16xf32>
    %155 = vector.shape_cast %154 : vector<16xf32> to vector<1x16xf32>
    %cst_62 = arith.constant 1.000000e-24 : f32
    %156 = vector.broadcast %cst_62 : f32 to vector<1x16xf32>
    %157 = arith.maximumf %155, %156 : vector<1x16xf32>
    %158 = math.rsqrt %157 : vector<1x16xf32>
    %159 = vector.broadcast %158 : vector<1x16xf32> to vector<64x16xf32>
    %160 = arith.mulf %143, %159 : vector<64x16xf32>
    %161 = arith.truncf %152 : vector<64x16xf32> to vector<64x16xbf16>
    %162 = arith.truncf %160 : vector<64x16xf32> to vector<64x16xbf16>
    %cst_63 = arith.constant dense<0.000000e+00> : vector<16x16xf32>
    %163 = tpu.matmul %161, %162, %cst_63 {dimension_numbers = #tpu.dot_dimension_numbers<[0], [0], [1], [1], [0, 1, 1, 1], [], []>} : vector<64x16xbf16>, vector<64x16xbf16>, vector<16x16xf32> -> vector<16x16xf32>
    %c0_64 = arith.constant 0 : index
    %c0_65 = arith.constant 0 : index
    %164 = vector.load %arg10[%c0_64, %c0_65] : memref<1x1xf32, #tpu.memory_space<vmem>>, vector<1x1xf32>
    %165 = vector.extract %164[0, 0] : f32 from vector<1x1xf32>
    %166 = vector.broadcast %165 : f32 to vector<16x16xf32>
    %167 = arith.mulf %163, %166 : vector<16x16xf32>
    %cst_66 = arith.constant dense<0xFF800000> : vector<16xf32>
    %168 = vector.multi_reduction <maximumf>, %167, %cst_66 [1] : vector<16x16xf32> to vector<16xf32>
    %169 = vector.shape_cast %168 : vector<16xf32> to vector<16x1xf32>
    %170 = vector.broadcast %169 : vector<16x1xf32> to vector<16x16xf32>
    %171 = arith.subf %167, %170 : vector<16x16xf32>
    %172 = math.exp %171 : vector<16x16xf32>
    %cst_67 = arith.constant dense<0.000000e+00> : vector<16xf32>
    %173 = vector.multi_reduction <add>, %172, %cst_67 [1] : vector<16x16xf32> to vector<16xf32>
    %174 = vector.shape_cast %173 : vector<16xf32> to vector<16x1xf32>
    %175 = tpu.reciprocal %174 {approx = true} : vector<16x1xf32> -> vector<16x1xf32>
    %176 = vector.broadcast %175 : vector<16x1xf32> to vector<16x16xf32>
    %177 = arith.mulf %172, %176 : vector<16x16xf32>
    %178 = arith.truncf %144 : vector<64x16xf32> to vector<64x16xbf16>
    %179 = arith.truncf %177 : vector<16x16xf32> to vector<16x16xbf16>
    %cst_68 = arith.constant dense<0.000000e+00> : vector<64x16xf32>
    %180 = tpu.matmul %178, %179, %cst_68 {dimension_numbers = #tpu.dot_dimension_numbers<[1], [1], [0], [0], [0, 0, 1, 0], [], []>} : vector<64x16xbf16>, vector<16x16xbf16>, vector<64x16xf32> -> vector<64x16xf32>
    %181 = arith.truncf %180 : vector<64x16xf32> to vector<64x16xbf16>
    %c0_69 = arith.constant 0 : index
    %c0_70 = arith.constant 0 : index
    %182 = vector.load %arg11[%c0_69, %c0_70] : memref<16x16xbf16, #tpu.memory_space<vmem>>, vector<16x16xbf16>
    %cst_71 = arith.constant dense<0.000000e+00> : vector<64x16xf32>
    %183 = tpu.matmul %181, %182, %cst_71 {dimension_numbers = #tpu.dot_dimension_numbers<[1], [0], [0], [1], [0, 0, 1, 1], [], []>} : vector<64x16xbf16>, vector<16x16xbf16>, vector<64x16xf32> -> vector<64x16xf32>
    %184 = arith.truncf %183 : vector<64x16xf32> to vector<64x16xbf16>
    %185 = vector.extract_strided_slice %33 {offsets = [16, 0], sizes = [16, 32], strides = [1, 1]} : vector<32x32xbf16> to vector<16x32xbf16>
    %cst_72 = arith.constant dense<0.000000e+00> : vector<64x32xf32>
    %186 = tpu.matmul %184, %185, %cst_72 {dimension_numbers = #tpu.dot_dimension_numbers<[1], [0], [0], [1], [0, 0, 1, 1], [], []>} : vector<64x16xbf16>, vector<16x32xbf16>, vector<64x32xf32> -> vector<64x32xf32>
    %187 = arith.addf %66, %186 : vector<64x32xf32>
    %188 = arith.addf %1, %187 : vector<64x32xf32>
    %cst_73 = arith.constant dense<0.000000e+00> : vector<64xf32>
    %189 = vector.multi_reduction <add>, %188, %cst_73 [1] : vector<64x32xf32> to vector<64xf32>
    %190 = vector.shape_cast %189 : vector<64xf32> to vector<64x1xf32>
    %cst_74 = arith.constant 3.200000e+01 : f32
    %191 = vector.broadcast %cst_74 : f32 to vector<64x1xf32>
    %192 = arith.divf %190, %191 : vector<64x1xf32>
    %193 = vector.broadcast %192 : vector<64x1xf32> to vector<64x32xf32>
    %194 = arith.subf %188, %193 : vector<64x32xf32>
    %195 = arith.mulf %194, %194 : vector<64x32xf32>
    %cst_75 = arith.constant dense<0.000000e+00> : vector<64xf32>
    %196 = vector.multi_reduction <add>, %195, %cst_75 [1] : vector<64x32xf32> to vector<64xf32>
    %197 = vector.shape_cast %196 : vector<64xf32> to vector<64x1xf32>
    %cst_76 = arith.constant 3.200000e+01 : f32
    %198 = vector.broadcast %cst_76 : f32 to vector<64x1xf32>
    %199 = arith.divf %197, %198 : vector<64x1xf32>
    %200 = vector.broadcast %192 : vector<64x1xf32> to vector<64x32xf32>
    %201 = arith.subf %188, %200 : vector<64x32xf32>
    %cst_77 = arith.constant 9.99999974E-6 : f32
    %202 = vector.broadcast %cst_77 : f32 to vector<64x1xf32>
    %203 = arith.addf %199, %202 : vector<64x1xf32>
    %204 = math.rsqrt %203 : vector<64x1xf32>
    %205 = vector.broadcast %204 : vector<64x1xf32> to vector<64x32xf32>
    %206 = arith.mulf %201, %205 : vector<64x32xf32>
    %c0_78 = arith.constant 0 : index
    %c0_79 = arith.constant 0 : index
    %207 = vector.load %arg14[%c0_78, %c0_79] : memref<1x32xf32, #tpu.memory_space<vmem>>, vector<1x32xf32>
    %208 = vector.broadcast %207 : vector<1x32xf32> to vector<64x32xf32>
    %209 = arith.mulf %206, %208 : vector<64x32xf32>
    %c0_80 = arith.constant 0 : index
    %c0_81 = arith.constant 0 : index
    %210 = vector.load %arg15[%c0_80, %c0_81] : memref<1x32xf32, #tpu.memory_space<vmem>>, vector<1x32xf32>
    %211 = vector.broadcast %210 : vector<1x32xf32> to vector<64x32xf32>
    %212 = arith.addf %209, %211 : vector<64x32xf32>
    %213 = arith.truncf %212 : vector<64x32xf32> to vector<64x32xbf16>
    %c0_82 = arith.constant 0 : index
    %c0_83 = arith.constant 0 : index
    %214 = vector.load %arg16[%c0_82, %c0_83] : memref<32x128xbf16, #tpu.memory_space<vmem>>, vector<32x128xbf16>
    %cst_84 = arith.constant dense<0.000000e+00> : vector<64x128xf32>
    %215 = tpu.matmul %213, %214, %cst_84 {dimension_numbers = #tpu.dot_dimension_numbers<[1], [0], [0], [1], [0, 0, 1, 1], [], []>} : vector<64x32xbf16>, vector<32x128xbf16>, vector<64x128xf32> -> vector<64x128xf32>
    %c0_85 = arith.constant 0 : index
    %c0_86 = arith.constant 0 : index
    %216 = vector.load %arg17[%c0_85, %c0_86] : memref<1x128xf32, #tpu.memory_space<vmem>>, vector<1x128xf32>
    %217 = vector.broadcast %216 : vector<1x128xf32> to vector<64x128xf32>
    %218 = arith.addf %215, %217 : vector<64x128xf32>
    %219 = arith.mulf %218, %218 : vector<64x128xf32>
    %220 = arith.mulf %218, %219 : vector<64x128xf32>
    %cst_87 = arith.constant 4.471500e-02 : f32
    %221 = vector.broadcast %cst_87 : f32 to vector<64x128xf32>
    %222 = arith.mulf %221, %220 : vector<64x128xf32>
    %223 = arith.addf %218, %222 : vector<64x128xf32>
    %cst_88 = arith.constant 0.797884583 : f32
    %224 = vector.broadcast %cst_88 : f32 to vector<64x128xf32>
    %225 = arith.mulf %224, %223 : vector<64x128xf32>
    %226 = math.tanh %225 : vector<64x128xf32>
    %cst_89 = arith.constant 1.000000e+00 : f32
    %227 = vector.broadcast %cst_89 : f32 to vector<64x128xf32>
    %228 = arith.addf %227, %226 : vector<64x128xf32>
    %cst_90 = arith.constant 5.000000e-01 : f32
    %229 = vector.broadcast %cst_90 : f32 to vector<64x128xf32>
    %230 = arith.mulf %229, %228 : vector<64x128xf32>
    %231 = arith.mulf %218, %230 : vector<64x128xf32>
    %232 = arith.truncf %231 : vector<64x128xf32> to vector<64x128xbf16>
    %c0_91 = arith.constant 0 : index
    %c0_92 = arith.constant 0 : index
    %233 = vector.load %arg18[%c0_91, %c0_92] : memref<128x32xbf16, #tpu.memory_space<vmem>>, vector<128x32xbf16>
    %cst_93 = arith.constant dense<0.000000e+00> : vector<64x32xf32>
    %234 = tpu.matmul %232, %233, %cst_93 {dimension_numbers = #tpu.dot_dimension_numbers<[1], [0], [0], [1], [0, 0, 1, 1], [], []>} : vector<64x128xbf16>, vector<128x32xbf16>, vector<64x32xf32> -> vector<64x32xf32>
    %235 = arith.addf %188, %234 : vector<64x32xf32>
    %c0_94 = arith.constant 0 : index
    %c0_95 = arith.constant 0 : index
    %236 = vector.load %arg19[%c0_94, %c0_95] : memref<1x32xf32, #tpu.memory_space<vmem>>, vector<1x32xf32>
    %237 = vector.broadcast %236 : vector<1x32xf32> to vector<64x32xf32>
    %238 = arith.addf %235, %237 : vector<64x32xf32>
    %c0_96 = arith.constant 0 : index
    %c0_97 = arith.constant 0 : index
    %c0_98 = arith.constant 0 : index
    %239 = vector.load %arg20[%c0_96, %c0_97, %c0_98] : memref<1x64x32xf32, #tpu.memory_space<vmem>>, vector<1x64x32xf32>
    %240 = vector.shape_cast %239 : vector<1x64x32xf32> to vector<64x32xf32>
    %241 = vector.shape_cast %238 : vector<64x32xf32> to vector<1x64x32xf32>
    tpu.vector_store %arg20[%c0_96, %c0_97, %c0_98], %241 {strides = array<i32>} : memref<1x64x32xf32, #tpu.memory_space<vmem>>, vector<1x64x32xf32>,
    return
  }
  func.func @transform_0(%arg0: i32) -> (i32, i32, i32) {
    %c0_i32 = arith.constant 0 : i32
    %c0_i32_0 = arith.constant 0 : i32
    %c0_i32_1 = arith.constant 0 : i32
    return %arg0, %c0_i32, %c0_i32_0 : i32, i32, i32
  }
  func.func @transform_1(%arg0: i32) -> (i32, i32) {
    %c0_i32 = arith.constant 0 : i32
    %c0_i32_0 = arith.constant 0 : i32
    %c0_i32_1 = arith.constant 0 : i32
    return %c0_i32, %c0_i32_0 : i32, i32
  }
  func.func @transform_2(%arg0: i32) -> (i32, i32) {
    %c0_i32 = arith.constant 0 : i32
    %c0_i32_0 = arith.constant 0 : i32
    %c0_i32_1 = arith.constant 0 : i32
    return %c0_i32, %c0_i32_0 : i32, i32
  }
  func.func @transform_3(%arg0: i32) -> (i32, i32) {
    %c0_i32 = arith.constant 0 : i32
    %c0_i32_0 = arith.constant 0 : i32
    %c0_i32_1 = arith.constant 0 : i32
    return %c0_i32, %c0_i32_0 : i32, i32
  }
  func.func @transform_4(%arg0: i32) -> (i32, i32) {
    %c0_i32 = arith.constant 0 : i32
    %c0_i32_0 = arith.constant 0 : i32
    %c0_i32_1 = arith.constant 0 : i32
    return %c0_i32, %c0_i32_0 : i32, i32
  }
  func.func @transform_5(%arg0: i32) -> (i32, i32) {
    %c0_i32 = arith.constant 0 : i32
    %c0_i32_0 = arith.constant 0 : i32
    %c0_i32_1 = arith.constant 0 : i32
    return %c0_i32, %c0_i32_0 : i32, i32
  }
  func.func @transform_6(%arg0: i32) -> (i32, i32) {
    %c0_i32 = arith.constant 0 : i32
    %c0_i32_0 = arith.constant 0 : i32
    %c0_i32_1 = arith.constant 0 : i32
    return %c0_i32, %c0_i32_0 : i32, i32
  }
  func.func @transform_7(%arg0: i32) -> (i32, i32, i32) {
    %c0_i32 = arith.constant 0 : i32
    %c0_i32_0 = arith.constant 0 : i32
    %c0_i32_1 = arith.constant 0 : i32
    %c0_i32_2 = arith.constant 0 : i32
    return %c0_i32, %c0_i32_0, %c0_i32_1 : i32, i32, i32
  }
  func.func @transform_8(%arg0: i32) -> (i32, i32) {
    %c0_i32 = arith.constant 0 : i32
    %c0_i32_0 = arith.constant 0 : i32
    %c0_i32_1 = arith.constant 0 : i32
    return %c0_i32, %c0_i32_0 : i32, i32
  }
  func.func @transform_9(%arg0: i32) -> (i32, i32) {
    %c0_i32 = arith.constant 0 : i32
    %c0_i32_0 = arith.constant 0 : i32
    %c0_i32_1 = arith.constant 0 : i32
    return %c0_i32, %c0_i32_0 : i32, i32
  }
  func.func @transform_10(%arg0: i32) -> (i32, i32) {
    %c0_i32 = arith.constant 0 : i32
    %c0_i32_0 = arith.constant 0 : i32
    %c0_i32_1 = arith.constant 0 : i32
    return %c0_i32, %c0_i32_0 : i32, i32
  }
  func.func @transform_11(%arg0: i32) -> (i32, i32) {
    %c0_i32 = arith.constant 0 : i32
    %c0_i32_0 = arith.constant 0 : i32
    %c0_i32_1 = arith.constant 0 : i32
    return %c0_i32, %c0_i32_0 : i32, i32
  }
  func.func @transform_12(%arg0: i32) -> (i32, i32) {
    %c0_i32 = arith.constant 0 : i32
    %c0_i32_0 = arith.constant 0 : i32
    %c0_i32_1 = arith.constant 0 : i32
    return %c0_i32, %c0_i32_0 : i32, i32
  }
  func.func @transform_13(%arg0: i32) -> (i32, i32) {
    %c0_i32 = arith.constant 0 : i32
    %c0_i32_0 = arith.constant 0 : i32
    %c0_i32_1 = arith.constant 0 : i32
    return %c0_i32, %c0_i32_0 : i32, i32
  }
  func.func @transform_14(%arg0: i32) -> (i32, i32) {
    %c0_i32 = arith.constant 0 : i32
    %c0_i32_0 = arith.constant 0 : i32
    %c0_i32_1 = arith.constant 0 : i32
    return %c0_i32, %c0_i32_0 : i32, i32
  }
  func.func @transform_15(%arg0: i32) -> (i32, i32) {
    %c0_i32 = arith.constant 0 : i32
    %c0_i32_0 = arith.constant 0 : i32
    %c0_i32_1 = arith.constant 0 : i32
    return %c0_i32, %c0_i32_0 : i32, i32
  }
  func.func @transform_16(%arg0: i32) -> (i32, i32) {
    %c0_i32 = arith.constant 0 : i32
    %c0_i32_0 = arith.constant 0 : i32
    %c0_i32_1 = arith.constant 0 : i32
    return %c0_i32, %c0_i32_0 : i32, i32
  }
  func.func @transform_17(%arg0: i32) -> (i32, i32) {
    %c0_i32 = arith.constant 0 : i32
    %c0_i32_0 = arith.constant 0 : i32
    %c0_i32_1 = arith.constant 0 : i32
    return %c0_i32, %c0_i32_0 : i32, i32
  }
  func.func @transform_18(%arg0: i32) -> (i32, i32) {
    %c0_i32 = arith.constant 0 : i32
    %c0_i32_0 = arith.constant 0 : i32
    %c0_i32_1 = arith.constant 0 : i32
    return %c0_i32, %c0_i32_0 : i32, i32
  }
  func.func @transform_19(%arg0: i32) -> (i32, i32, i32) {
    %c0_i32 = arith.constant 0 : i32
    %c0_i32_0 = arith.constant 0 : i32
    %c0_i32_1 = arith.constant 0 : i32
    return %arg0, %c0_i32, %c0_i32_0 : i32, i32, i32
  }
}

</mosaic_0001>

<bundles_post_ra>
// kernel: swin_block_forward.1
= control target key start
LH: loop header
LB: loop body
LE: loop exit
PB: predicated region body
PF: predicated region fallthrough
CT: control target
= control target key end

     0   :  { %s6595_s0 = inlined_call_operand.vmem [shape: f32[2,64,32], index: 0, kind: input, shape index: {}]   ;;  %s6596_s1 = inlined_call_operand.vmem [shape: f32[1,32], index: 1, kind: input, shape index: {}]   ;;  %s6597_s2 = inlined_call_operand.vmem [shape: f32[1,32], index: 2, kind: input, shape index: {}]   ;;  %s6598_s3 = inlined_call_operand.vmem [shape: bf16[32,96], index: 3, kind: input, shape index: {}]   ;;  %s6599_s4 = inlined_call_operand.vmem [shape: f32[1,96], index: 4, kind: input, shape index: {}]   ;;  %s6600_s5 = inlined_call_operand.vmem [shape: f32[128,16], index: 5, kind: input, shape index: {}]   ;;  %s6601_s6 = inlined_call_operand.vmem [shape: f32[128,128], index: 6, kind: input, shape index: {}]   ;;  %s6602_s7 = inlined_call_operand.vmem [shape: bf16[9,64,64], index: 7, kind: input, shape index: {}]   ;;  %s6603_s8 = inlined_call_operand.hbm [shape: f32[9,48], index: 8, kind: input, shape index: {}]   ;;  %s6604_s9 = inlined_call_operand.<no memory space> [shape: f32[1,1], index: 9, kind: input, shape index: {}]   ;;  %s6605_s10 = inlined_call_operand.vmem [shape: bf16[16,16], index: 10, kind: input, shape index: {}]   ;;  %s6606_s11 = inlined_call_operand.hbm [shape: bf16[32,32], index: 11, kind: input, shape index: {}]   ;;  %s6607_s12 = inlined_call_operand.vmem [shape: f32[1,32], index: 12, kind: input, shape index: {}]   ;;  %s6608_s13 = inlined_call_operand.vmem [shape: f32[1,32], index: 13, kind: input, shape index: {}]   ;;  %s6609_s14 = inlined_call_operand.vmem [shape: f32[1,32], index: 14, kind: input, shape index: {}]   ;;  %s6610_s15 = inlined_call_operand.hbm [shape: bf16[32,128], index: 15, kind: input, shape index: {}]   ;;  %s6611_s16 = inlined_call_operand.vmem [shape: f32[1,128], index: 16, kind: input, shape index: {}]   ;;  %s6612_s17 = inlined_call_operand.vmem [shape: bf16[128,32], index: 17, kind: input, shape index: {}]   ;;  %s6613_s18 = inlined_call_operand.hbm [shape: f32[1,32], index: 18, kind: input, shape index: {}]   ;;  %s6614_s19 = inlined_call_operand.vmem [shape: f32[2,64,32], index: 19, kind: output, shape index: {}]  }
   0x1   :  { %6616 = sst [smem:[#allocation23_spill]] %s6595_s0  ;;  %v24_v0 = vstv %s6604_s9 }
   0x2   :  { %6617 = sst [smem:[#allocation24_spill]] %s6596_s1  ;;  %25 = vst [vmem:[#allocation2] sm:$0x1] %v24_v0 }
   0x3   :  { %6618 = sst [smem:[#allocation25_spill]] %s6597_s2 }
   0x4   :  { %6619 = sst [smem:[#allocation26_spill]] %s6598_s3 }
   0x5   :  { %26 = vsyncpa [#allocation4], 0 }
   0x6   :  { %27 = vsyncpa [#allocation6], 0 }
   0x7   :  { %28 = vsyncpa [#allocation9], 0  ;;  %s5241_s20 = smov 0  }
   0x8 LB: > { %s5123_s21 = smov [#allocation5]   ;;  %s5247_s22 = sadd.s32 4294967295, %s5121_s20   ;;  %s5121_s20 = sphi %s5241_s20, %s34_s20  }
   0x9   : > { %s521_s1 = sshll.u32 %s5123_s21, 4  ;;  %p4039_p0 = scmp.ge.s32.totalorder %s5121_s20, 1  ;;  %s522_s1 = int_to_ptr.vmem [resolvable:$true] %s521_s1 }
   0xa   : > { %p469_p1 = scmp.lt.s32.totalorder %s5121_s20, 3  ;;  %p4784_p2 = scmp.eq.s32.totalorder %s5247_s22, 0 }
   0xb   : > { %s5124_s2 = smov [#allocation3]   ;;  %s5125_s25 = smov [#allocation7]  }
   0xc   : > { %p5252_p3 = pnand %p4039_p0, %p469_p1  ;;  %s502_s23 = sshll.u32 %s5124_s2, 4  ;;  %s5258_s23 = int_to_ptr.vmem [resolvable:$true] %s502_s23 }
   0xd   : > { %s5266_s3 = sshll.u32 %s5125_s25, 4  ;;  %s5010_s26 = scalar_lea.vmem %s522_s1, 256  ;;  %s544_s3 = int_to_ptr.vmem [resolvable:$true] %s5266_s3 }
   0xe   : > { %p4771_p4 = pneg %p5252_p3  ;;  %p5011_p7 = scmp.ne.s32.totalorder %s522_s1, %s5010_s26 }
   0xf   : > { %p5018_p10 = scmp.lt.s32.totalorder %s522_s1, %s522_s1  ;;  %p5019_p11 = scmp.lt.s32.totalorder %s5010_s26, %s5010_s26 }
  0x10   : > { %p5262_p5 = pnand %p4784_p2, %p4771_p4 }
  0x11   : > { %p5020_p12 = por %p5019_p11, %p5018_p10 }
  0x12   : > { %p5001_p6 = pneg %p5262_p5 }
  0x14   : > { %p5013_p8 = pnand %p5011_p7, %p5001_p6 }
  0x16   : > { %p5014_p9 = pneg %p5013_p8 }
  0x18   : > { %p5021_p13 = pnand %p5020_p12, %p5014_p9 }
  0x1a   : > { %5024 = shalt.err (!%p5021_p13)
}
  0x1b   : > { %s5126_s27 = smov 64   ;;  %s5127_s28 = smov 4  }
  0x1c   : > { %4777 = dma.hbm_to_vmem [thread:$0]  (!%p5262_p5), %s6606_s11, 256, %s522_s1, [#allocation6], %s5126_s27, %s5126_s27, %s5127_s28  }
  0x1d   : > { %s5036_s30 = scalar_lea.vmem %s5258_s23, 256  ;;  %p5044_p7 = scmp.lt.s32.totalorder %s5258_s23, %s5258_s23 }
  0x1e   : > { %p5037_p0 = scmp.ne.s32.totalorder %s5258_s23, %s5036_s30  ;;  %p5045_p8 = scmp.lt.s32.totalorder %s5036_s30, %s5036_s30 }
  0x20   : > { %p5039_p1 = pnand %p5037_p0, %p5001_p6  ;;  %p5046_p9 = por %p5045_p8, %p5044_p7 }
  0x22   : > { %p5040_p4 = pneg %p5039_p1 }
  0x24   : > { %p5047_p10 = pnand %p5046_p9, %p5040_p4 }
  0x26   : > { %5050 = shalt.err (!%p5047_p10)
}
  0x27   : > { %s5128_s21 = smov 128   ;;  %s5129_s2 = smov 8  }
  0x28   : > { %4774 = dma.hbm_to_vmem [thread:$0]  (!%p5262_p5), %s6603_s8, 256, %s5258_s23, [#allocation4], %s5128_s21, %s5128_s21, %s5129_s2  }
  0x29   : > { %s5130_s26 = smov [#allocation8]   ;;  %s5062_s0 = scalar_lea.vmem %s544_s3, 256 }
  0x2a   : > { %s563_s29 = sshll.u32 %s5130_s26, 4  ;;  %p5063_p11 = scmp.ne.s32.totalorder %s544_s3, %s5062_s0  ;;  %s564_s29 = int_to_ptr.vmem [resolvable:$true] %s563_s29 }
  0x2b   : > { %p5070_p0 = scmp.lt.s32.totalorder %s544_s3, %s544_s3  ;;  %p5071_p1 = scmp.lt.s32.totalorder %s5062_s0, %s5062_s0 }
  0x2c   : > { %p5065_p12 = pnand %p5063_p11, %p5001_p6 }
  0x2d   : > { %p5072_p4 = por %p5071_p1, %p5070_p0 }
  0x2e   : > { %p5066_p13 = pneg %p5065_p12 }
  0x30   : > { %p5073_p7 = pnand %p5072_p4, %p5066_p13 }
  0x32   : > { %5076 = shalt.err (!%p5073_p7)
}
  0x33   : > { %4780 = dma.hbm_to_vmem [thread:$0]  (!%p5262_p5), %s6610_s15, 256, %s544_s3, [#allocation6], %s5126_s27, %s5126_s27, %s5127_s28  }
  0x34   : > { %s5088_s21 = scalar_lea.vmem %s564_s29, 16  ;;  %s5095_s2 = scalar_lea.vmem %s564_s29, 32 }
  0x35   : > { %p5089_p8 = scmp.ne.s32.totalorder %s564_s29, %s5088_s21  ;;  %p5096_p11 = scmp.lt.s32.totalorder %s564_s29, %s564_s29 }
  0x36   : > { %p5097_p12 = scmp.lt.s32.totalorder %s5095_s2, %s5088_s21 }
  0x37   : > { %p5091_p9 = pnand %p5089_p8, %p5001_p6 }
  0x38   : > { %p5098_p13 = por %p5097_p12, %p5096_p11 }
  0x39   : > { %p5092_p10 = pneg %p5091_p9 }
  0x3b   : > { %p5099_p0 = pnand %p5098_p13, %p5092_p10 }
  0x3d   : > { %5102 = shalt.err (!%p5099_p0)
}
  0x3e   : > { %4783 = dma.hbm_to_vmem [thread:$0]  (!%p5262_p5), %s6613_s18, 16, %s564_s29, [#allocation9]  }
  0x3f   : > { %584 = sbr.rel (%p5252_p3) target bundleno = 3911 (0xf47), region = 96 }
  0x44   : > { %5108 = dma.done.wait (%p4784_p2), [#allocation4], 256  }
  0x45   : > { %5110 = vsyncadd (%p4784_p2), [#allocation4], 4294967040 }
  0x46   : > { %5112 = dma.done.wait (%p4784_p2), [#allocation6], 512  }
  0x47   : > { %5114 = vsyncadd (%p4784_p2), [#allocation6], 4294966784 }
  0x48   : > { %5116 = dma.done.wait (%p4784_p2), [#allocation9], 16  }
  0x49   : > { %5118 = vsyncadd (%p4784_p2), [#allocation9], 4294967280  ;;  %p652_p3 = scmp.lt.s32.totalorder %s5247_s22, 1  ;;  %s6622_s27 = sld [smem:[#allocation23_spill]]  ;;  %vm671_vm0 = vcmask 261120   ;;  %vm1124_vm1 = vcmask 130048  }
  0x4a   : > { %s6623_s0 = sld [smem:[#allocation26_spill]]  ;;  %s5131_s25 = smov 112   ;;  %vm1755_vm2 = vcmask 523264   ;;  %vm3035_vm3 = vcmask 261248   ;;  %vm5137_vm4 = vmmov 0  }
  0x4b   : > { %s6647_s22 = smov (!%p652_p3, %s5247_s22), 1  ;;  %s6624_s1 = sld [smem:[#allocation24_spill]] }
  0x4c   : > { %s4253_s9 = sshll.u32 %s6647_s22, 6  ;;  %s6625_s3 = sld [smem:[#allocation25_spill]] }
  0x4d   : > { %s5132_s24 = smov 32   ;;  %s5133_s23 = smov 96  }
  0x4f   : > { %s5338_s28 = scalar_lea.vmem %s6622_s27, %s4253_s9  ;;  %s5135_s27 = smov 80  }
  0x50   : > { %v663_v1 = vld [vmem:[%s5338_s28] sm:$0xff]  ;;  %v665_v2 = vld [vmem:[%s5338_s28 + $0x10] sm:$0xff]  ;;  %v664_v3 = vld [vmem:[%s5338_s28 + $0x8] sm:$0xff] }
  0x51   : > { %v672_v4 = vsel %vm671_vm0, %v663_v1, 0.0  ;;  %v678_v5 = vsel %vm671_vm0, %v665_v2, 0.0  ;;  %v666_v6 = vld [vmem:[%s5338_s28 + $0x18] sm:$0xff]  ;;  %v667_v7 = vld [vmem:[%s5338_s28 + $0x20] sm:$0xff]  ;;  %v668_v8 = vld [vmem:[%s5338_s28 + $0x28] sm:$0xff]  ;;  %v675_v9 = vsel %vm671_vm0, %v664_v3, 0.0 }
  0x52   : > { %673 = vadd.xlane.f32.xlu0 %v672_v4  ;;  %679 = vadd.xlane.f32.xlu1 %v678_v5  ;;  %v681_v10 = vsel %vm671_vm0, %v666_v6, 0.0  ;;  %v684_v11 = vsel %vm671_vm0, %v667_v7, 0.0  ;;  %v687_v12 = vsel %vm671_vm0, %v668_v8, 0.0  ;;  %v669_v13 = vld [vmem:[%s5338_s28 + $0x30] sm:$0xff]  ;;  %v670_v14 = vld [vmem:[%s5338_s28 + $0x38] sm:$0xff]  ;;  %v4816_v57 = vld [vmem:[%s6623_s0 + $0x8] sm:$0xff]  }
  0x53   : > { %v690_v15 = vsel %vm671_vm0, %v669_v13, 0.0  ;;  %v693_v16 = vsel %vm671_vm0, %v670_v14, 0.0  ;;  %v4817_v58 = vld [vmem:[%s6623_s0] sm:$0xff]   ;;  %4412 = vmatprep.subr.bf16.mxu0 %v4816_v57 }
  0x54   : > { %4413 = vmatpush3.bf16.msra.mxu0 %v4816_v57 }
  0x55   : > { %4414 = vmatprep.subr.bf16.mxu0 %v4817_v58 }
  0x56   : > { %676 = vadd.xlane.f32.xlu0 %v675_v9  ;;  %682 = vadd.xlane.f32.xlu1 %v681_v10 }
  0x58   : > { %4415 = vmatpush3.bf16.msra.mxu0 %v4817_v58 }
  0x5a   : > { %685 = vadd.xlane.f32.xlu0 %v684_v11  ;;  %688 = vadd.xlane.f32.xlu1 %v687_v12 }
  0x5e   : > { %691 = vadd.xlane.f32.xlu0 %v690_v15  ;;  %694 = vadd.xlane.f32.xlu1 %v693_v16 }
  0xdb   : > { %v674_v17 = vpop.xlane.xlu0 %673  ;;  %v680_v18 = vpop.xlane.xlu1 %679 }
  0xdc   : > { %v697_v19 = vmul.f32 0.03125, %v674_v17  ;;  %v699_v20 = vmul.f32 0.03125, %v680_v18 }
  0xde   : > { %v5356_v21 = vsub.f32 %v663_v1, %v697_v19  ;;  %v5358_v22 = vsub.f32 %v665_v2, %v699_v20 }
  0xdf   : > { %v677_v23 = vpop.xlane.xlu0 %676  ;;  %v683_v24 = vpop.xlane.xlu1 %682 }
  0xe0   : > { %v698_v25 = vmul.f32 0.03125, %v677_v23  ;;  %v700_v26 = vmul.f32 0.03125, %v683_v24  ;;  %v713_v27 = vmul.f32 %v5356_v21, %v5356_v21  ;;  %v715_v28 = vmul.f32 %v5358_v22, %v5358_v22  ;;  %v4054_v23 = vld [vmem:[%s6624_s1] ss:$0 sm:$0xff] }
  0xe2   : > { %v5364_v29 = vsub.f32 %v664_v3, %v698_v25  ;;  %v5366_v30 = vsub.f32 %v666_v6, %v700_v26  ;;  %v721_v31 = vsel %vm671_vm0, %v713_v27, 0.0  ;;  %v727_v34 = vsel %vm671_vm0, %v715_v28, 0.0  ;;  %v4055_v28 = vld [vmem:[%s6625_s3] ss:$0 sm:$0xff]  ;;  %s5134_s3 = smov 48  }
  0xe3   : > { %722 = vadd.xlane.f32.xlu0 %v721_v31  ;;  %v686_v32 = vpop.xlane.xlu0 %685  ;;  %v689_v33 = vpop.xlane.xlu1 %688 }
  0xe4   : > { %v701_v35 = vmul.f32 0.03125, %v686_v32  ;;  %v702_v36 = vmul.f32 0.03125, %v689_v33  ;;  %v714_v37 = vmul.f32 %v5364_v29, %v5364_v29  ;;  %v716_v38 = vmul.f32 %v5366_v30, %v5366_v30 }
  0xe6   : > { %v5374_v39 = vsub.f32 %v667_v7, %v701_v35  ;;  %v5376_v40 = vsub.f32 %v668_v8, %v702_v36  ;;  %v724_v41 = vsel %vm671_vm0, %v714_v37, 0.0  ;;  %v730_v44 = vsel %vm671_vm0, %v716_v38, 0.0 }
  0xe7   : > { %728 = vadd.xlane.f32.xlu0 %v727_v34  ;;  %725 = vadd.xlane.f32.xlu1 %v724_v41  ;;  %v692_v42 = vpop.xlane.xlu0 %691  ;;  %v695_v43 = vpop.xlane.xlu1 %694 }
  0xe8   : > { %v703_v45 = vmul.f32 0.03125, %v692_v42  ;;  %v704_v46 = vmul.f32 0.03125, %v695_v43  ;;  %v717_v47 = vmul.f32 %v5374_v39, %v5374_v39  ;;  %v718_v48 = vmul.f32 %v5376_v40, %v5376_v40 }
  0xea   : > { %v5384_v49 = vsub.f32 %v669_v13, %v703_v45  ;;  %v5386_v50 = vsub.f32 %v670_v14, %v704_v46  ;;  %v733_v51 = vsel %vm671_vm0, %v717_v47, 0.0  ;;  %v736_v52 = vsel %vm671_vm0, %v718_v48, 0.0 }
  0xeb   : > { %731 = vadd.xlane.f32.xlu1 %v730_v44  ;;  %734 = vadd.xlane.f32.xlu0 %v733_v51 }
  0xec   : > { %v719_v53 = vmul.f32 %v5384_v49, %v5384_v49  ;;  %v720_v54 = vmul.f32 %v5386_v50, %v5386_v50 }
  0xee   : > { %v739_v55 = vsel %vm671_vm0, %v719_v53, 0.0  ;;  %v742_v56 = vsel %vm671_vm0, %v720_v54, 0.0 }
  0xef   : > { %737 = vadd.xlane.f32.xlu1 %v736_v52  ;;  %740 = vadd.xlane.f32.xlu0 %v739_v55 }
  0xf3   : > { %743 = vadd.xlane.f32.xlu1 %v742_v56 }
 0x16c   : > { %v723_v59 = vpop.xlane.xlu0 %722 }
 0x16d   : > { %v745_v60 = vmul.f32 0.03125, %v723_v59  ;;  %v5429_v59 = vld [vmem:[%s6599_s4] ss:$0 sm:$0xff] }
 0x16f   : > { %v753_v61 = vadd.f32 1e-05, %v745_v60 }
 0x170   : > { %v726_v62 = vpop.xlane.xlu1 %725  ;;  %v729_v63 = vpop.xlane.xlu0 %728 }
 0x171   : > { %4867 = vrsqrt.f32 %v753_v61  ;;  %v746_v0 = vmul.f32 0.03125, %v726_v62  ;;  %v747_v1 = vmul.f32 0.03125, %v729_v63  ;;  %v5439_v63 = vld [vmem:[%s6600_s5] sm:$0xff] }
 0x173   : > { %v754_v2 = vadd.f32 1e-05, %v746_v0  ;;  %v755_v3 = vadd.f32 1e-05, %v747_v1  ;;  %v5444_v0 = vld [vmem:[%s6600_s5 + $0x8] sm:$0xff] }
 0x174   : > { %v732_v4 = vpop.xlane.xlu1 %731  ;;  %v735_v5 = vpop.xlane.xlu0 %734 }
 0x175   : > { %4869 = vrsqrt.f32 %v754_v2  ;;  %v748_v6 = vmul.f32 0.03125, %v732_v4  ;;  %v749_v7 = vmul.f32 0.03125, %v735_v5 }
 0x176   : > { %4871 = vrsqrt.f32 %v755_v3 }
 0x177   : > { %v756_v8 = vadd.f32 1e-05, %v748_v6  ;;  %v757_v9 = vadd.f32 1e-05, %v749_v7 }
 0x178   : > { %v738_v10 = vpop.xlane.xlu1 %737  ;;  %v741_v11 = vpop.xlane.xlu0 %740 }
 0x179   : > { %4873 = vrsqrt.f32 %v756_v8  ;;  %v750_v12 = vmul.f32 0.03125, %v738_v10  ;;  %v751_v13 = vmul.f32 0.03125, %v741_v11  ;;  %v5464_v10 = vld [vmem:[%s6600_s5 + $0x38] sm:$0xff] }
 0x17a   : > { %4875 = vrsqrt.f32 %v757_v9  ;;  %v5459_v9 = vld [vmem:[%s6600_s5 + $0x30] sm:$0xff] }
 0x17b   : > { %v758_v14 = vadd.f32 1e-05, %v750_v12  ;;  %v759_v15 = vadd.f32 1e-05, %v751_v13 }
 0x17c   : > { %v744_v16 = vpop.xlane.xlu1 %743 }
 0x17d   : > { %4877 = vrsqrt.f32 %v758_v14  ;;  %v752_v17 = vmul.f32 0.03125, %v744_v16  ;;  %v5476_v14 = vld [vmem:[%s6600_s5 + $0x20] sm:$0xff] }
 0x17e   : > { %v4868_v18 = vpop.eup %4867  ;;  %4879 = vrsqrt.f32 %v759_v15  ;;  %v5481_v15 = vld [vmem:[%s6600_s5 + $0x28] sm:$0xff] }
 0x17f   : > { %v760_v19 = vadd.f32 1e-05, %v752_v17  ;;  %v769_v20 = vmul.f32 %v4868_v18, %v5356_v21 }
 0x181   : > { %4881 = vrsqrt.f32 %v760_v19  ;;  %v784_v27 = vmul.f32 %v4054_v23, %v769_v20 }
 0x182   : > { %v4870_v24 = vpop.eup %4869 }
 0x183   : > { %v4872_v25 = vpop.eup %4871  ;;  %v770_v26 = vmul.f32 %v4870_v24, %v5364_v29  ;;  %v799_v21 = vadd.f32 %v4055_v28, %v784_v27 }
 0x184   : > { %v771_v31 = vmul.f32 %v4872_v25, %v5358_v22 }
 0x185   : > { %v785_v32 = vmul.f32 %v4054_v23, %v770_v26 }
 0x186   : > { %v4874_v33 = vpop.eup %4873  ;;  %v786_v37 = vmul.f32 %v4054_v23, %v771_v31  ;;  %v958_v31 = vld [vmem:[%s6600_s5 + $0x50] sm:$0xff] }
 0x187   : > { %v4876_v34 = vpop.eup %4875  ;;  %v800_v35 = vadd.f32 %v4055_v28, %v785_v32  ;;  %v772_v36 = vmul.f32 %v4874_v33, %v5366_v30  ;;  %v959_v32 = vld [vmem:[%s6600_s5 + $0x58] sm:$0xff] }
 0x188   : > { %v773_v38 = vmul.f32 %v4876_v34, %v5374_v39  ;;  %v801_v44 = vadd.f32 %v4055_v28, %v786_v37 }
 0x189   : > { %v807_v41 = vpack.c.bf16 %v800_v35, %v799_v21  ;;  %v787_v42 = vmul.f32 %v4054_v23, %v772_v36  ;;  %v956_v35 = vld [vmem:[%s6600_s5 + $0x40] sm:$0xff]  ;;  %v957_v36 = vld [vmem:[%s6600_s5 + $0x48] sm:$0xff] }
 0x18a   : > { %v4878_v29 = vpop.eup %4877  ;;  %v788_v46 = vmul.f32 %v4054_v23, %v773_v38 }
 0x18b   : > { %v4880_v43 = vpop.eup %4879  ;;  %4416 = vmatprep.mubr.msk.bf16.mxu0 %vm671_vm0, %v807_v41  ;;  %v802_v45 = vadd.f32 %v4055_v28, %v787_v42  ;;  %v774_v22 = vmul.f32 %v4878_v29, %v5376_v40 }
 0x18c   : > { %v775_v47 = vmul.f32 %v4880_v43, %v5384_v49  ;;  %v803_v30 = vadd.f32 %v4055_v28, %v788_v46 }
 0x18d   : > { %v808_v48 = vpack.c.bf16 %v802_v45, %v801_v44  ;;  %v789_v51 = vmul.f32 %v4054_v23, %v774_v22 }
 0x18e   : > { %v4882_v52 = vpop.eup %4881  ;;  %v790_v54 = vmul.f32 %v4054_v23, %v775_v47 }
 0x18f   : > { %4417 = vmatmul.mubr.msk.bf16.vlgmr.msra.gmra.mxu0 %vm671_vm0, %v808_v48  ;;  %v804_v39 = vadd.f32 %v4055_v28, %v789_v51  ;;  %v776_v53 = vmul.f32 %v4882_v52, %v5386_v50  ;;  %v963_v51 = vld [vmem:[%s6600_s5 + $0x78] sm:$0xff] }
 0x190   : > { %v805_v57 = vadd.f32 %v4055_v28, %v790_v54  ;;  %v961_v54 = vld [vmem:[%s6600_s5 + $0x68] sm:$0xff] }
 0x191   : > { %v809_v55 = vpack.c.bf16 %v804_v39, %v803_v30  ;;  %v791_v56 = vmul.f32 %v4054_v23, %v776_v53  ;;  %v960_v53 = vld [vmem:[%s6600_s5 + $0x60] sm:$0xff] }
 0x193   : > { %4420 = vmatprep.mubr.msk.bf16.mxu0 %vm671_vm0, %v809_v55  ;;  %v806_v58 = vadd.f32 %v4055_v28, %v791_v56 }
 0x195   : > { %v810_v40 = vpack.c.bf16 %v806_v58, %v805_v57 }
 0x197   : > { %4421 = vmatmul.mubr.msk.bf16.gmra.mxu0 %vm671_vm0, %v810_v40 }
 0x198   : > { %4424 = vmatprep.mubr.msk.bf16.mxu0 %vm671_vm0, %v807_v41 }
 0x19f   : > { %4425 = vmatmul.mubr.msk.bf16.gmra.mxu0 %vm671_vm0, %v808_v48  ;;  %v962_v48 = vld [vmem:[%s6600_s5 + $0x70] sm:$0xff] }
 0x1a0   : > { %4428 = vmatprep.mubr.msk.bf16.mxu0 %vm671_vm0, %v809_v55 }
 0x1a7   : > { %4429 = vmatmul.mubr.msk.bf16.gmra.mxu0 %vm671_vm0, %v810_v40 }
 0x24f   : > { %v5424_v49 = vpop.f32.mrf.mxu0 }
 0x251   : > { %v880_v50 = vpop.f32.mrf.mxu0 }
 0x252   : > { %v5434_v61 = vadd.f32 %v5429_v59, %v880_v50 }
 0x253   : > { %v5431_v60 = vpop.f32.mrf.mxu0 }
 0x254   : > { %v964_v3 = vmul.f32 %v5439_v63, %v5434_v61 }
 0x255   : > { %v883_v62 = vpop.f32.mrf.mxu0 }
 0x256   : > { %v5447_v1 = vadd.f32 %v5429_v59, %v883_v62 }
 0x257   : > { %v4422_v2 = vpop.f32.mrf.mxu0 }
 0x258   : > { %v965_v4 = vmul.f32 %v5444_v0, %v5447_v1  ;;  %v5454_v6 = vadd.f32 %v4422_v2, %v5429_v59 }
 0x259   : > { %v896_v5 = vpop.f32.mrf.mxu0 }
 0x25a   : > { %v980_v7 = vpack.c.bf16 %v965_v4, %v964_v3  ;;  %v5467_v11 = vadd.f32 %v5429_v59, %v896_v5  ;;  %v5488_v17 = vmul.f32 %v5459_v9, %v5454_v6  ;;  %v5591_v3 = vadd.f32 %v5431_v60, %v5429_v59 }
 0x25b   : > { %v4423_v8 = vpop.f32.mrf.mxu0 }
 0x25c   : > { %v5470_v12 = vadd.f32 %v4423_v8, %v5429_v59  ;;  %4448 = vmatprep.mubr.msk.bf16.mxu1 %vm1124_vm1, %v980_v7  ;;  %v5496_v20 = vmul.f32 %v5476_v14, %v5467_v11  ;;  %v5600_v7 = vadd.f32 %v5424_v49, %v5429_v59 }
 0x25d   : > { %v899_v13 = vpop.f32.mrf.mxu0 }
 0x25e   : > { %v5484_v16 = vadd.f32 %v5429_v59, %v899_v13  ;;  %v5492_v18 = vmul.f32 %v5464_v10, %v5470_v12  ;;  %v991_v4 = vpack.c.bf16 %v5470_v12, %v5454_v6  ;;  %v989_v60 = vpack.c.bf16 %v5591_v3, %v5600_v7 }
 0x25f   : > { %v4426_v19 = vpop.f32.mrf.mxu0 }
 0x260   : > { %v983_v23 = vpack.c.bf16 %v5492_v18, %v5488_v17  ;;  %v5502_v24 = vmul.f32 %v5481_v15, %v5484_v16  ;;  %v5505_v26 = vadd.f32 %v4426_v19, %v5429_v59  ;;  %v990_v49 = vpack.c.bf16 %v5484_v16, %v5467_v11  ;;  %v950_v19 = vld [vmem:[%s6600_s5 + $0x10] sm:$0xff] }
 0x261   : > { %v912_v25 = vpop.f32.mrf.mxu0 }
 0x262   : > { %v982_v27 = vpack.c.bf16 %v5502_v24, %v5496_v20  ;;  %v5516_v33 = vadd.f32 %v5429_v59, %v912_v25  ;;  %v5531_v38 = vmul.f32 %v958_v31, %v5505_v26 }
 0x263   : > { %v4427_v28 = vpop.f32.mrf.mxu0 }
 0x264   : > { %v5519_v34 = vadd.f32 %v4427_v28, %v5429_v59  ;;  %v5537_v29 = vmul.f32 %v956_v35, %v5516_v33 }
 0x265   : > { %v915_v21 = vpop.f32.mrf.mxu0 }
 0x266   : > { %v5528_v37 = vadd.f32 %v5429_v59, %v915_v21  ;;  %v5534_v41 = vmul.f32 %v959_v32, %v5519_v34  ;;  %v993_v8 = vpack.c.bf16 %v5519_v34, %v5505_v26 }
 0x267   : > { %v4430_v42 = vpop.f32.mrf.mxu0 }
 0x268   : > { %v985_v43 = vpack.c.bf16 %v5534_v41, %v5531_v38  ;;  %v5542_v44 = vmul.f32 %v957_v36, %v5528_v37  ;;  %v5545_v22 = vadd.f32 %v4430_v42, %v5429_v59  ;;  %v992_v13 = vpack.c.bf16 %v5528_v37, %v5516_v33 }
 0x269   : > { %v928_v45 = vpop.f32.mrf.mxu0 }
 0x26a   : > { %v984_v46 = vpack.c.bf16 %v5542_v44, %v5537_v29  ;;  %v5556_v52 = vadd.f32 %v5429_v59, %v928_v45  ;;  %v5573_v57 = vmul.f32 %v962_v48, %v5545_v22 }
 0x26b   : > { %v4431_v47 = vpop.f32.mrf.mxu0 }
 0x26c   : > { %v5559_v30 = vadd.f32 %v4431_v47, %v5429_v59  ;;  %v5584_v62 = vmul.f32 %v960_v53, %v5556_v52 }
 0x26d   : > { %v931_v39 = vpop.f32.mrf.mxu0 }
 0x26e   : > { %v5568_v55 = vadd.f32 %v5429_v59, %v931_v39  ;;  %v995_v56 = vpack.c.bf16 %v5559_v30, %v5545_v22  ;;  %v5576_v58 = vmul.f32 %v963_v51, %v5559_v30  ;;  %v988_v59 = vpack.c.bf16 %v5447_v1, %v5434_v61 }
 0x270   : > { %1122 = vrot.lane.b32.xlu0 %v995_v56, %s5131_s25  ;;  %v994_v40 = vpack.c.bf16 %v5568_v55, %v5556_v52  ;;  %v987_v50 = vpack.c.bf16 %v5576_v58, %v5573_v57  ;;  %v5587_v2 = vmul.f32 %v961_v54, %v5568_v55 }
 0x272   : > { %1120 = vrot.lane.b32.xlu1 %v994_v40, %s5131_s25  ;;  %v986_v5 = vpack.c.bf16 %v5587_v2, %v5584_v62 }
 0x274   : > { %1114 = vrot.lane.b32.xlu0 %v991_v4, %s5131_s25 }
 0x276   : > { %1118 = vrot.lane.b32.xlu1 %v993_v8, %s5131_s25  ;;  %v966_v8 = vmul.f32 %v950_v19, %v5600_v7 }
 0x278   : > { %1110 = vrot.lane.b32.xlu0 %v989_v60, %s5131_s25 }
 0x27a   : > { %1116 = vrot.lane.b32.xlu1 %v992_v13, %s5131_s25  ;;  %v1084_v13 = vld [vmem:[%s6601_s6] sm:$0xff] }
 0x27c   : > { %1040 = vrot.lane.b32.xlu0 %v962_v48, %s5132_s24 }
 0x27e   : > { %1112 = vrot.lane.b32.xlu1 %v990_v49, %s5131_s25  ;;  %v1087_v49 = vld [vmem:[%s6601_s6 + $0x18] sm:$0xff] }
 0x280   : > { %1032 = vrot.lane.b32.xlu0 %v958_v31, %s5132_s24 }
 0x282   : > { %1108 = vrot.lane.b32.xlu1 %v988_v59, %s5131_s25 }
 0x284   : > { %1028 = vrot.lane.b32.xlu0 %v956_v35, %s5132_s24 }
 0x286   : > { %1042 = vrot.lane.b32.xlu1 %v963_v51, %s5132_s24 }
 0x288   : > { %1024 = vrot.lane.b32.xlu0 %v5459_v9, %s5132_s24  ;;  %v951_v9 = vld [vmem:[%s6600_s5 + $0x18] sm:$0xff] }
 0x28a   : > { %1036 = vrot.lane.b32.xlu1 %v960_v53, %s5132_s24 }
 0x28c   : > { %1020 = vrot.lane.b32.xlu0 %v5476_v14, %s5132_s24 }
 0x28e   : > { %1038 = vrot.lane.b32.xlu1 %v961_v54, %s5132_s24 }
 0x290   : > { %1016 = vrot.lane.b32.xlu0 %v950_v19, %s5132_s24 }
 0x292   : > { %1034 = vrot.lane.b32.xlu1 %v959_v32, %s5132_s24 }
 0x294   : > { %1012 = vrot.lane.b32.xlu0 %v5439_v63, %s5132_s24 }
 0x296   : > { %1030 = vrot.lane.b32.xlu1 %v957_v36, %s5132_s24 }
 0x29a   : > { %1026 = vrot.lane.b32.xlu1 %v5464_v10, %s5132_s24 }
 0x29e   : > { %1022 = vrot.lane.b32.xlu1 %v5481_v15, %s5132_s24 }
 0x2a2   : > { %1018 = vrot.lane.b32.xlu1 %v951_v9, %s5132_s24 }
 0x2a6   : > { %1014 = vrot.lane.b32.xlu1 %v5444_v0, %s5132_s24 }
 0x2e2   : > { %v1123_v14 = vpop.permute.xlu0 %1122 }
 0x2e3   : > { %4744 = vmatprep.subr.msk.bf16.mxu1 %vm1124_vm1, %v1123_v14  ;;  %v1171_v25 = vsel %vm1124_vm1, %v1123_v14, 0 }
 0x2e4   : > { %4433 = vmatpush3.bf16.xpose.msra.mxu1 %v1171_v25  ;;  %v1121_v28 = vpop.permute.xlu1 %1120  ;;  %v1085_v25 = vld [vmem:[%s6601_s6 + $0x8] sm:$0xff] }
 0x2e5   : > { %4745 = vmatprep.subr.msk.bf16.mxu1 %vm1124_vm1, %v1121_v28  ;;  %v1168_v15 = vsel %vm1124_vm1, %v1121_v28, 0  ;;  %v1090_v28 = vld [vmem:[%s6601_s6 + $0x30] sm:$0xff] }
 0x2e6   : > { %v1115_v10 = vpop.permute.xlu0 %1114 }
 0x2e8   : > { %v1119_v63 = vpop.permute.xlu1 %1118 }
 0x2e9   : > { %v1165_v0 = vsel %vm1124_vm1, %v1119_v63, 0 }
 0x2ea   : > { %v1111_v32 = vpop.permute.xlu0 %1110 }
 0x2eb   : > { %v1153_v4 = vsel %vm1124_vm1, %v1111_v32, 0 }
 0x2ec   : > { %4435 = vmatpush3.bf16.xpose.msra.mxu1 %v1168_v15  ;;  %v1117_v31 = vpop.permute.xlu1 %1116 }
 0x2ed   : > { %4746 = vmatprep.subr.msk.bf16.mxu1 %vm1124_vm1, %v1119_v63  ;;  %v1162_v51 = vsel %vm1124_vm1, %v1117_v31, 0 }
 0x2ee   : > { %v1041_v36 = vpop.permute.xlu0 %1040 }
 0x2ef   : > { %v1074_v45 = vmul.f32 %v1041_v36, %v5545_v22  ;;  %v1159_v22 = vsel %vm1124_vm1, %v1115_v10, 0 }
 0x2f0   : > { %v1113_v21 = vpop.permute.xlu1 %1112 }
 0x2f2   : > { %v5679_v17 = vpop.permute.xlu0 %1032 }
 0x2f4   : > { %4437 = vmatpush3.bf16.xpose.msra.mxu1 %v1165_v0  ;;  %v1109_v35 = vpop.permute.xlu1 %1108 }
 0x2f5   : > { %4747 = vmatprep.subr.msk.bf16.mxu1 %vm1124_vm1, %v1117_v31 }
 0x2f6   : > { %v5681_v18 = vpop.permute.xlu0 %1028 }
 0x2f8   : > { %v1043_v42 = vpop.permute.xlu1 %1042 }
 0x2f9   : > { %v1075_v47 = vmul.f32 %v1043_v42, %v5559_v30  ;;  %v1156_v30 = vsel %vm1124_vm1, %v1113_v21, 0 }
 0x2fb   : > { %v1083_v48 = vpack.c.bf16 %v1075_v47, %v1074_v45  ;;  %v1089_v45 = vld [vmem:[%s6601_s6 + $0x28] sm:$0xff]  ;;  %v1094_v47 = vld [vmem:[%s6601_s6 + $0x50] sm:$0xff] }
 0x2fc   : > { %4439 = vmatpush3.bf16.xpose.msra.mxu1 %v1162_v51  ;;  %v1037_v39 = vpop.permute.xlu1 %1036 }
 0x2fd   : > { %4748 = vmatprep.subr.msk.bf16.mxu1 %vm1124_vm1, %v1115_v10  ;;  %1444 = vrot.lane.b32.xlu0 %v1083_v48, %s5133_s23  ;;  %v1072_v54 = vmul.f32 %v1037_v39, %v5556_v52  ;;  %v1150_v52 = vsel %vm1124_vm1, %v1109_v35, 0 }
 0x300   : > { %v1039_v53 = vpop.permute.xlu1 %1038 }
 0x301   : > { %v1073_v56 = vmul.f32 %v1039_v53, %v5568_v55  ;;  %v967_v55 = vmul.f32 %v951_v9, %v5591_v3 }
 0x303   : > { %v1082_v40 = vpack.c.bf16 %v1073_v56, %v1072_v54  ;;  %v981_v60 = vpack.c.bf16 %v967_v55, %v966_v8  ;;  %v1092_v54 = vld [vmem:[%s6601_s6 + $0x40] sm:$0xff]  ;;  %v1095_v56 = vld [vmem:[%s6601_s6 + $0x58] sm:$0xff] }
 0x304   : > { %4441 = vmatpush3.bf16.xpose.msra.mxu1 %v1159_v22  ;;  %v5683_v20 = vpop.permute.xlu1 %1034 }
 0x305   : > { %4749 = vmatprep.subr.msk.bf16.mxu1 %vm1124_vm1, %v1113_v21  ;;  %1442 = vrot.lane.b32.xlu1 %v1082_v40, %s5133_s23  ;;  %v1091_v21 = vld [vmem:[%s6601_s6 + $0x38] sm:$0xff] }
 0x308   : > { %v5687_v24 = vpop.permute.xlu1 %1030 }
 0x30c   : > { %4443 = vmatpush3.bf16.xpose.msra.mxu1 %v1156_v30  ;;  %v5691_v38 = vpop.permute.xlu1 %1026 }
 0x30d   : > { %4750 = vmatprep.subr.msk.bf16.mxu1 %vm1124_vm1, %v1111_v32  ;;  %v1088_v32 = vld [vmem:[%s6601_s6 + $0x20] sm:$0xff] }
 0x310   : > { %v5695_v29 = vpop.permute.xlu1 %1022 }
 0x314   : > { %4445 = vmatpush3.bf16.xpose.msra.mxu1 %v1153_v4  ;;  %v5699_v44 = vpop.permute.xlu1 %1018 }
 0x315   : > { %4751 = vmatprep.subr.msk.bf16.mxu1 %vm1124_vm1, %v1109_v35 }
 0x318   : > { %v5701_v57 = vpop.permute.xlu1 %1014 }
 0x31c   : > { %4447 = vmatpush3.bf16.xpose.msra.mxu1 %v1150_v52  ;;  %v1093_v52 = vld [vmem:[%s6601_s6 + $0x48] sm:$0xff] }
 0x323   : > { %4449 = vmatmul.mubr.msk.bf16.vlgmr.msra.gmra.mxu1 %vm1124_vm1, %v981_v60  ;;  %v1098_v60 = vld [vmem:[%s6601_s6 + $0x70] sm:$0xff] }
 0x324   : > { %4452 = vmatprep.mubr.msk.bf16.mxu1 %vm1124_vm1, %v982_v27 }
 0x32b   : > { %4453 = vmatmul.mubr.msk.bf16.gmra.mxu1 %vm1124_vm1, %v983_v23  ;;  %v5685_v23 = vpop.permute.xlu0 %1024 }
 0x32c   : > { %4456 = vmatprep.mubr.msk.bf16.mxu1 %vm1124_vm1, %v984_v46 }
 0x32f   : > { %v5689_v27 = vpop.permute.xlu0 %1020 }
 0x333   : > { %4457 = vmatmul.mubr.msk.bf16.gmra.mxu1 %vm1124_vm1, %v985_v43  ;;  %v5693_v41 = vpop.permute.xlu0 %1016 }
 0x334   : > { %4460 = vmatprep.mubr.msk.bf16.mxu1 %vm1124_vm1, %v986_v5 }
 0x337   : > { %v5697_v43 = vpop.permute.xlu0 %1012 }
 0x33b   : > { %4461 = vmatmul.mubr.msk.bf16.gmra.mxu1 %vm1124_vm1, %v987_v50  ;;  %v1086_v50 = vld [vmem:[%s6601_s6 + $0x10] sm:$0xff] }
 0x36f   : > { %v1445_v46 = vpop.permute.xlu0 %1444 }
 0x370   : > { %4464 = vmatprep.subr.bf16.mxu0 %v1445_v46  ;;  %4728 = vmatprep.subr.bf16.mxu1 %v1445_v46 }
 0x371   : > { %4465 = vmatpush3.bf16.msra.mxu0 %v1445_v46  ;;  %4736 = vmatpush3.bf16.msra.mxu1 %v1445_v46 }
 0x377   : > { %v1443_v58 = vpop.permute.xlu1 %1442 }
 0x378   : > { %4466 = vmatprep.subr.bf16.mxu0 %v1443_v58  ;;  %4729 = vmatprep.subr.bf16.mxu1 %v1443_v58 }
 0x379   : > { %4467 = vmatpush3.bf16.msra.mxu0 %v1443_v58  ;;  %4737 = vmatpush3.bf16.msra.mxu1 %v1443_v58  ;;  %v1099_v58 = vld [vmem:[%s6601_s6 + $0x78] sm:$0xff] }
 0x3e3   : > { %v4450_v62 = vpop.f32.mrf.mxu1 }
 0x3e4   : > { %v5706_v2 = vadd.f32 %v4450_v62, %v1086_v50 }
 0x3e5   : > { %v1207_v5 = vpop.f32.mrf.mxu1 }
 0x3e6   : > { %1274 = vmax.xlane.f32.xlu0 %v5706_v2  ;;  %v5715_v19 = vadd.f32 %v1207_v5, %v1084_v13  ;;  %v1096_v13 = vld [vmem:[%s6601_s6 + $0x60] sm:$0xff] }
 0x3e7   : > { %v4451_v59 = vpop.f32.mrf.mxu1 }
 0x3e8   : > { %v5717_v9 = vadd.f32 %v4451_v59, %v1087_v49  ;;  %v1097_v59 = vld [vmem:[%s6601_s6 + $0x68] sm:$0xff] }
 0x3e9   : > { %v1210_v14 = vpop.f32.mrf.mxu1 }
 0x3ea   : > { %1270 = vmax.xlane.f32.xlu0 %v5715_v19  ;;  %1276 = vmax.xlane.f32.xlu1 %v5717_v9  ;;  %v5727_v10 = vadd.f32 %v1210_v14, %v1085_v25 }
 0x3eb   : > { %v4454_v63 = vpop.f32.mrf.mxu1 }
 0x3ec   : > { %v5729_v15 = vadd.f32 %v4454_v63, %v1090_v28  ;;  %v1069_v28 = vmul.f32 %v5687_v24, %v5528_v37  ;;  %v1068_v63 = vmul.f32 %v5681_v18, %v5516_v33 }
 0x3ed   : > { %v1223_v31 = vpop.f32.mrf.mxu1 }
 0x3ee   : > { %1272 = vmax.xlane.f32.xlu1 %v5727_v10  ;;  %1282 = vmax.xlane.f32.xlu0 %v5729_v15  ;;  %v5739_v35 = vadd.f32 %v1223_v31, %v1088_v32  ;;  %v1080_v31 = vpack.c.bf16 %v1069_v28, %v1068_v63  ;;  %v1071_v32 = vmul.f32 %v5683_v20, %v5519_v34 }
 0x3ef   : > { %v4455_v0 = vpop.f32.mrf.mxu1 }
 0x3f0   : > { %v5741_v36 = vadd.f32 %v4455_v0, %v1091_v21  ;;  %v1070_v21 = vmul.f32 %v5679_v17, %v5505_v26 }
 0x3f1   : > { %v1226_v42 = vpop.f32.mrf.mxu1 }
 0x3f2   : > { %1284 = vmax.xlane.f32.xlu1 %v5741_v36  ;;  %1278 = vmax.xlane.f32.xlu0 %v5739_v35  ;;  %v5751_v51 = vadd.f32 %v1226_v42, %v1089_v45  ;;  %v1081_v0 = vpack.c.bf16 %v1071_v32, %v1070_v21 }
 0x3f3   : > { %v4458_v48 = vpop.f32.mrf.mxu1 }
 0x3f4   : > { %v5753_v39 = vadd.f32 %v4458_v48, %v1094_v47 }
 0x3f5   : > { %v1239_v53 = vpop.f32.mrf.mxu1 }
 0x3f6   : > { %1280 = vmax.xlane.f32.xlu1 %v5751_v51  ;;  %1290 = vmax.xlane.f32.xlu0 %v5753_v39  ;;  %v5763_v22 = vadd.f32 %v1239_v53, %v1092_v54 }
 0x3f7   : > { %v4459_v40 = vpop.f32.mrf.mxu1 }
 0x3f8   : > { %v5765_v30 = vadd.f32 %v4459_v40, %v1095_v56 }
 0x3f9   : > { %v1242_v4 = vpop.f32.mrf.mxu1 }
 0x3fa   : > { %1292 = vmax.xlane.f32.xlu1 %v5765_v30  ;;  %1286 = vmax.xlane.f32.xlu0 %v5763_v22  ;;  %v5772_v8 = vadd.f32 %v1242_v4, %v1093_v52 }
 0x3fb   : > { %v4462_v55 = vpop.f32.mrf.mxu1 }
 0x3fc   : > { %v5781_v62 = vadd.f32 %v4462_v55, %v1098_v60 }
 0x3fd   : > { %v1255_v46 = vpop.f32.mrf.mxu1 }
 0x3fe   : > { %1288 = vmax.xlane.f32.xlu0 %v5772_v8  ;;  %v5793_v14 = vadd.f32 %v1255_v46, %v1096_v13 }
 0x3ff   : > { %v4463_v50 = vpop.f32.mrf.mxu1 }
 0x400   : > { %v5783_v5 = vadd.f32 %v4463_v50, %v1099_v58 }
 0x401   : > { %v1258_v49 = vpop.f32.mrf.mxu1 }
 0x402   : > { %1300 = vmax.xlane.f32.xlu1 %v5783_v5  ;;  %1298 = vmax.xlane.f32.xlu0 %v5781_v62  ;;  %v5795_v25 = vadd.f32 %v1258_v49, %v1097_v59 }
 0x406   : > { %1296 = vmax.xlane.f32.xlu1 %v5795_v25  ;;  %1294 = vmax.xlane.f32.xlu0 %v5793_v14 }
 0x417   : > { %1438 = vrot.lane.b32.xlu1 %v1080_v31, %s5133_s23 }
 0x41c   : > { %1440 = vrot.lane.b32.xlu0 %v1081_v0, %s5133_s23 }
 0x46f   : > { %v1275_v42 = vpop.xlane.xlu0 %1274 }
 0x470   : > { %v1304_v45 = vsub.f32 %v5706_v2, %v1275_v42 }
 0x472   : > { %v1322_v47 = vmul.f32 1.442695, %v1304_v45 }
 0x473   : > { %v1271_v37 = vpop.xlane.xlu0 %1270  ;;  %v1277_v24 = vpop.xlane.xlu1 %1276 }
 0x474   : > { %4883 = vpow2.f32 %v1322_v47  ;;  %v1302_v33 = vsub.f32 %v5715_v19, %v1271_v37  ;;  %v1305_v18 = vsub.f32 %v5717_v9, %v1277_v24 }
 0x476   : > { %v1318_v34 = vmul.f32 1.442695, %v1302_v33  ;;  %v1324_v20 = vmul.f32 1.442695, %v1305_v18 }
 0x477   : > { %v1273_v48 = vpop.xlane.xlu1 %1272  ;;  %v1283_v53 = vpop.xlane.xlu0 %1282 }
 0x478   : > { %4885 = vpow2.f32 %v1318_v34  ;;  %v1303_v26 = vsub.f32 %v5727_v10, %v1273_v48  ;;  %v1308_v17 = vsub.f32 %v5729_v15, %v1283_v53 }
 0x479   : > { %4887 = vpow2.f32 %v1324_v20 }
 0x47a   : > { %v1320_v54 = vmul.f32 1.442695, %v1303_v26  ;;  %v1330_v2 = vmul.f32 1.442695, %v1308_v17 }
 0x47b   : > { %v1285_v56 = vpop.xlane.xlu1 %1284  ;;  %v1279_v40 = vpop.xlane.xlu0 %1278 }
 0x47c   : > { %4889 = vpow2.f32 %v1320_v54  ;;  %v1309_v4 = vsub.f32 %v5741_v36, %v1285_v56  ;;  %v1306_v19 = vsub.f32 %v5739_v35, %v1279_v40 }
 0x47d   : > { %4891 = vpow2.f32 %v1330_v2 }
 0x47e   : > { %v1332_v9 = vmul.f32 1.442695, %v1309_v4  ;;  %v1326_v52 = vmul.f32 1.442695, %v1306_v19  ;;  %v1065_v19 = vmul.f32 %v5695_v29, %v5484_v16  ;;  %v1067_v29 = vmul.f32 %v5691_v38, %v5470_v12 }
 0x47f   : > { %v1281_v55 = vpop.xlane.xlu1 %1280  ;;  %v1291_v60 = vpop.xlane.xlu0 %1290 }
 0x480   : > { %4893 = vpow2.f32 %v1332_v9  ;;  %v1307_v10 = vsub.f32 %v5751_v51, %v1281_v55  ;;  %v1312_v15 = vsub.f32 %v5753_v39, %v1291_v60  ;;  %v1064_v9 = vmul.f32 %v5689_v27, %v5467_v11 }
 0x481   : > { %v5818_v46 = vpop.eup %4883  ;;  %4895 = vpow2.f32 %v1326_v52  ;;  %v1662_v52 = vlaneseq  ;;  %v1063_v60 = vmul.f32 %v5699_v44, %v5591_v3  ;;  %v1060_v27 = vmul.f32 %v5697_v43, %v5434_v61 }
 0x482   : > { %v1328_v58 = vmul.f32 1.442695, %v1307_v10  ;;  %v1338_v50 = vmul.f32 1.442695, %v1312_v15  ;;  %1354 = vadd.xlane.f32.xlu1 %v5818_v46  ;;  %v1078_v55 = vpack.c.bf16 %v1065_v19, %v1064_v9  ;;  %v1062_v10 = vmul.f32 %v5693_v41, %v5600_v7 }
 0x483   : > { %v1293_v36 = vpop.xlane.xlu1 %1292  ;;  %v1287_v13 = vpop.xlane.xlu0 %1286  ;;  %v1663_v15 = vshrl.u32 %v1662_v52, 7  ;;  %v1066_v44 = vmul.f32 %v5685_v23, %v5454_v6 }
 0x484   : > { %4897 = vpow2.f32 %v1328_v58  ;;  %v1310_v35 = vsub.f32 %v5763_v22, %v1287_v13  ;;  %v1313_v59 = vsub.f32 %v5765_v30, %v1293_v36  ;;  %v1077_v58 = vpack.c.bf16 %v1063_v60, %v1062_v10 }
 0x485   : > { %v5822_v49 = vpop.eup %4885  ;;  %4899 = vpow2.f32 %v1338_v50  ;;  %v1061_v50 = vmul.f32 %v5701_v57, %v5447_v1  ;;  %v1664_v36 = vsub.s32 0, %v1663_v15  ;;  %v1692_v41 = vsub.s32 1, %v1663_v15 }
 0x486   : > { %v5825_v51 = vpop.eup %4887  ;;  %v1334_v39 = vmul.f32 1.442695, %v1310_v35  ;;  %1350 = vadd.xlane.f32.xlu1 %v5822_v49  ;;  %v1340_v32 = vmul.f32 1.442695, %v1313_v59  ;;  %v1660_v35 = vld [vmem:[#allocation3] sm:$0xff]  ;;  %v1079_v59 = vpack.c.bf16 %v1067_v29, %v1066_v44  ;;  %v2098_v57 = vsub.s32 3, %v1663_v15 }
 0x487   : > { %1356 = vadd.xlane.f32.xlu0 %v5825_v51  ;;  %v1289_v28 = vpop.xlane.xlu0 %1288  ;;  %v1076_v13 = vpack.c.bf16 %v1061_v50, %v1060_v27  ;;  %v1693_v38 = vrot.slane %v1660_v35, %v1692_v41 }
 0x488   : > { %v1311_v63 = vsub.f32 %v5772_v8, %v1289_v28  ;;  %4901 = vpow2.f32 %v1334_v39  ;;  %v1665_v39 = vrot.slane %v1660_v35, %v1664_v36  ;;  %v1948_v28 = vsub.s32 2, %v1663_v15 }
 0x489   : > { %v5830_v31 = vpop.eup %4889  ;;  %4903 = vpow2.f32 %v1340_v32  ;;  %v2099_v43 = vrot.slane %v1660_v35, %v2098_v57  ;;  %v2248_v32 = vsub.s32 4, %v1663_v15 }
 0x48a   : > { %v5832_v22 = vpop.eup %4891  ;;  %v1336_v0 = vmul.f32 1.442695, %v1311_v63  ;;  %v2398_v63 = vsub.s32 5, %v1663_v15  ;;  %v1949_v23 = vrot.slane %v1660_v35, %v1948_v28 }
 0x48b   : > { %1362 = vadd.xlane.f32.xlu1 %v5832_v22  ;;  %1352 = vadd.xlane.f32.xlu0 %v5830_v31  ;;  %v1301_v30 = vpop.xlane.xlu1 %1300  ;;  %v1299_v21 = vpop.xlane.xlu0 %1298 }
 0x48c   : > { %v1317_v42 = vsub.f32 %v5783_v5, %v1301_v30  ;;  %v1316_v45 = vsub.f32 %v5781_v62, %v1299_v21  ;;  %4905 = vpow2.f32 %v1336_v0  ;;  %v2399_v30 = vrot.slane %v1660_v35, %v2398_v63 }
 0x48d   : > { %v5838_v47 = vpop.eup %4893  ;;  %v2249_v21 = vrot.slane %v1660_v35, %v2248_v32  ;;  %v2548_v0 = vsub.s32 6, %v1663_v15 }
 0x48e   : > { %v5840_v8 = vpop.eup %4895  ;;  %v1346_v37 = vmul.f32 1.442695, %v1316_v45  ;;  %v1348_v18 = vmul.f32 1.442695, %v1317_v42  ;;  %v2698_v45 = vsub.s32 7, %v1663_v15 }
 0x48f   : > { %1364 = vadd.xlane.f32.xlu0 %v5838_v47  ;;  %1358 = vadd.xlane.f32.xlu1 %v5840_v8  ;;  %v1297_v24 = vpop.xlane.xlu1 %1296  ;;  %v1295_v33 = vpop.xlane.xlu0 %1294  ;;  %v2549_v42 = vrot.slane %v1660_v35, %v2548_v0 }
 0x490   : > { %v1314_v34 = vsub.f32 %v5793_v14, %v1295_v33  ;;  %4907 = vpow2.f32 %v1346_v37  ;;  %v1315_v62 = vsub.f32 %v5795_v25, %v1297_v24  ;;  %v2699_v37 = vrot.slane %v1660_v35, %v2698_v45 }
 0x491   : > { %v5845_v20 = vpop.eup %4897  ;;  %4909 = vpow2.f32 %v1348_v18 }
 0x492   : > { %v5848_v5 = vpop.eup %4899  ;;  %v1342_v48 = vmul.f32 1.442695, %v1314_v34  ;;  %v1344_v26 = vmul.f32 1.442695, %v1315_v62 }
 0x493   : > { %1360 = vadd.xlane.f32.xlu0 %v5845_v20  ;;  %1370 = vadd.xlane.f32.xlu1 %v5848_v5  ;;  %v1441_v53 = vpop.permute.xlu0 %1440  ;;  %v1439_v17 = vpop.permute.xlu1 %1438 }
 0x494   : > { %4468 = vmatprep.subr.bf16.mxu0 %v1441_v53  ;;  %4730 = vmatprep.subr.bf16.mxu1 %v1441_v53  ;;  %4911 = vpow2.f32 %v1342_v48 }
 0x495   : > { %4469 = vmatpush3.bf16.msra.mxu0 %v1441_v53  ;;  %4738 = vmatpush3.bf16.msra.mxu1 %v1441_v53  ;;  %v5852_v14 = vpop.eup %4901  ;;  %4913 = vpow2.f32 %v1344_v26 }
 0x496   : > { %4470 = vmatprep.subr.bf16.mxu0 %v1439_v17  ;;  %4731 = vmatprep.subr.bf16.mxu1 %v1439_v17  ;;  %v5855_v25 = vpop.eup %4903 }
 0x497   : > { %1366 = vadd.xlane.f32.xlu0 %v5852_v14 }
 0x499   : > { %4471 = vmatpush3.bf16.msra.mxu0 %v1439_v17  ;;  %4739 = vmatpush3.bf16.msra.mxu1 %v1439_v17  ;;  %v5858_v54 = vpop.eup %4905 }
 0x49b   : > { %1372 = vadd.xlane.f32.xlu0 %v5855_v25 }
 0x49d   : > { %v5860_v2 = vpop.eup %4907 }
 0x49e   : > { %1378 = vadd.xlane.f32.xlu1 %v5860_v2  ;;  %v5864_v56 = vpop.eup %4909 }
 0x49f   : > { %1368 = vadd.xlane.f32.xlu0 %v5858_v54 }
 0x4a1   : > { %v5866_v40 = vpop.eup %4911 }
 0x4a2   : > { %1374 = vadd.xlane.f32.xlu1 %v5866_v40  ;;  %v5870_v4 = vpop.eup %4913 }
 0x4a3   : > { %1380 = vadd.xlane.f32.xlu0 %v5864_v56 }
 0x4a7   : > { %1376 = vadd.xlane.f32.xlu0 %v5870_v4 }
 0x4b3   : > { %1434 = vrot.lane.b32.xlu1 %v1078_v55, %s5133_s23 }
 0x4b7   : > { %1432 = vrot.lane.b32.xlu1 %v1077_v58, %s5133_s23 }
 0x4bb   : > { %1430 = vrot.lane.b32.xlu1 %v1076_v13, %s5133_s23 }
 0x4bd   : > { %1436 = vrot.lane.b32.xlu0 %v1079_v59, %s5133_s23 }
 0x4bf   : > { %1667 = vrot.lane.b32.xlu1 %v1665_v39, %s5134_s3 }
 0x4c1   : > { %1695 = vrot.lane.b32.xlu0 %v1693_v38, %s5134_s3 }
 0x4c3   : > { %2101 = vrot.lane.b32.xlu1 %v2099_v43, %s5134_s3 }
 0x4c5   : > { %1951 = vrot.lane.b32.xlu0 %v1949_v23, %s5134_s3 }
 0x4c7   : > { %2401 = vrot.lane.b32.xlu1 %v2399_v30, %s5134_s3 }
 0x4c9   : > { %2251 = vrot.lane.b32.xlu0 %v2249_v21, %s5134_s3 }
 0x4cd   : > { %2551 = vrot.lane.b32.xlu0 %v2549_v42, %s5134_s3 }
 0x4d1   : > { %2701 = vrot.lane.b32.xlu0 %v2699_v37, %s5134_s3 }
 0x50b   : > { %v1355_v24 = vpop.xlane.xlu1 %1354 }
 0x50f   : > { %v1351_v18 = vpop.xlane.xlu1 %1350 }
 0x510   : > { %v1357_v33 = vpop.xlane.xlu0 %1356  ;;  %4915 = vrcp.f32 %v1351_v18  ;;  %v4201_v18 = vld [vmem:[#allocation3 + $0x8] ss:$0 sm:$0xff] }
 0x514   : > { %v1353_v34 = vpop.xlane.xlu0 %1352  ;;  %v1363_v62 = vpop.xlane.xlu1 %1362 }
 0x515   : > { %4917 = vrcp.f32 %v1353_v34 }
 0x518   : > { %v1365_v48 = vpop.xlane.xlu0 %1364  ;;  %v1359_v26 = vpop.xlane.xlu1 %1358 }
 0x51c   : > { %v1361_v53 = vpop.xlane.xlu0 %1360  ;;  %v1371_v52 = vpop.xlane.xlu1 %1370 }
 0x51d   : > { %v4916_v19 = vpop.eup %4915 }
 0x51e   : > { %v1398_v60 = vmul.f32 %v4916_v19, %v5822_v49  ;;  %v4818_v19 = vld [vmem:[#allocation5] sm:$0xff]  }
 0x520   : > { %v1367_v17 = vpop.xlane.xlu0 %1366 }
 0x521   : > { %4919 = vrcp.f32 %v1367_v17 }
 0x522   : > { %v4918_v9 = vpop.eup %4917 }
 0x523   : > { %v1399_v10 = vmul.f32 %v4918_v9, %v5830_v31 }
 0x524   : > { %v1373_v55 = vpop.xlane.xlu0 %1372 }
 0x525   : > { %v1414_v15 = vpack.c.bf16 %v1399_v10, %v1398_v60 }
 0x527   : > { %4480 = vmatprep.mubr.bf16.mxu0 %v1414_v15  ;;  %v1379_v58 = vpop.xlane.xlu1 %1378 }
 0x528   : > { %v1369_v50 = vpop.xlane.xlu0 %1368 }
 0x529   : > { %4921 = vrcp.f32 %v1369_v50 }
 0x52a   : > { %4923 = vrcp.f32 %v1355_v24 }
 0x52b   : > { %v1375_v29 = vpop.xlane.xlu1 %1374  ;;  %4925 = vrcp.f32 %v1357_v33 }
 0x52c   : > { %v1381_v27 = vpop.xlane.xlu0 %1380  ;;  %4927 = vrcp.f32 %v1373_v55 }
 0x52d   : > { %4929 = vrcp.f32 %v1371_v52 }
 0x52e   : > { %4931 = vrcp.f32 %v1361_v53  ;;  %v4920_v41 = vpop.eup %4919 }
 0x52f   : > { %v1435_v36 = vpop.permute.xlu1 %1434  ;;  %v1406_v59 = vmul.f32 %v4920_v41, %v5852_v14 }
 0x530   : > { %v1377_v44 = vpop.xlane.xlu0 %1376 }
 0x531   : > { %4933 = vrcp.f32 %v1377_v44 }
 0x532   : > { %4935 = vrcp.f32 %v1359_v26 }
 0x533   : > { %4937 = vrcp.f32 %v1375_v29  ;;  %v1433_v49 = vpop.permute.xlu1 %1432 }
 0x534   : > { %v1437_v31 = vpop.permute.xlu0 %1436  ;;  %4939 = vrcp.f32 %v1363_v62 }
 0x535   : > { %4472 = vmatprep.subr.bf16.mxu0 %v1437_v31  ;;  %4732 = vmatprep.subr.bf16.mxu1 %v1437_v31  ;;  %4941 = vrcp.f32 %v1365_v48 }
 0x536   : > { %4473 = vmatpush3.bf16.msra.mxu0 %v1437_v31  ;;  %4740 = vmatpush3.bf16.msra.mxu1 %v1437_v31  ;;  %v4922_v13 = vpop.eup %4921  ;;  %4943 = vrcp.f32 %v1381_v27 }
 0x537   : > { %4474 = vmatprep.subr.bf16.mxu0 %v1435_v36  ;;  %4733 = vmatprep.subr.bf16.mxu1 %v1435_v36  ;;  %4945 = vrcp.f32 %v1379_v58  ;;  %v1407_v39 = vmul.f32 %v4922_v13, %v5858_v54  ;;  %v4924_v57 = vpop.eup %4923  ;;  %v1431_v32 = vpop.permute.xlu1 %1430 }
 0x538   : > { %v1696_v35 = vpop.permute.xlu0 %1695  ;;  %v4926_v23 = vpop.eup %4925  ;;  %v1400_v55 = vmul.f32 %v4924_v57, %v5818_v46 }
 0x539   : > { %v1704_v38 = vmul.f32 %v1696_v35, %v5454_v6  ;;  %v1705_v28 = vmul.f32 %v1696_v35, %v5470_v12  ;;  %v1702_v43 = vmul.f32 %v1696_v35, %v5467_v11  ;;  %v1703_v63 = vmul.f32 %v1696_v35, %v5484_v16  ;;  %v4928_v0 = vpop.eup %4927 }
 0x53a   : > { %4475 = vmatpush3.bf16.msra.mxu0 %v1435_v36  ;;  %4741 = vmatpush3.bf16.msra.mxu1 %v1435_v36  ;;  %v1418_v30 = vpack.c.bf16 %v1407_v39, %v1406_v59  ;;  %v1698_v21 = vmul.f32 %v1696_v35, %v5434_v61  ;;  %v1699_v42 = vmul.f32 %v1696_v35, %v5447_v1  ;;  %v4930_v45 = vpop.eup %4929 }
 0x53b   : > { %4476 = vmatprep.subr.bf16.mxu0 %v1433_v49  ;;  %4734 = vmatprep.subr.bf16.mxu1 %v1433_v49  ;;  %v1709_v14 = vpack.c.bf16 %v1705_v28, %v1704_v38  ;;  %v1708_v54 = vpack.c.bf16 %v1703_v63, %v1702_v43  ;;  %v4932_v37 = vpop.eup %4931  ;;  %v1401_v34 = vmul.f32 %v4926_v23, %v5825_v51  ;;  %v5919_v52 = vpop.permute.xlu1 %1667 }
 0x53c   : > { %4488 = vmatprep.mubr.bf16.mxu1 %v1418_v30  ;;  %v5911_v24 = vpop.permute.xlu0 %1951  ;;  %v1409_v62 = vmul.f32 %v4928_v0, %v5855_v25  ;;  %v1706_v53 = vpack.c.bf16 %v1699_v42, %v1698_v21  ;;  %v1700_v26 = vmul.f32 %v1696_v35, %v5600_v7  ;;  %v1701_v17 = vmul.f32 %v1696_v35, %v5591_v3 }
 0x53d   : > { %1749 = vrot.lane.b32.xlu1 %v1709_v14, %s5135_s27  ;;  %1747 = vrot.lane.b32.xlu0 %v1708_v54, %s5135_s27  ;;  %v1960_v60 = vmul.f32 %v5911_v24, %v5454_v6  ;;  %v1961_v51 = vmul.f32 %v5911_v24, %v5470_v12  ;;  %v1408_v25 = vmul.f32 %v4930_v45, %v5848_v5 }
 0x53e   : > { %v4934_v33 = vpop.eup %4933  ;;  %4477 = vmatpush3.bf16.msra.mxu0 %v1433_v49  ;;  %4742 = vmatpush3.bf16.msra.mxu1 %v1433_v49  ;;  %v1403_v10 = vmul.f32 %v4932_v37, %v5845_v20  ;;  %v1415_v46 = vpack.c.bf16 %v1401_v34, %v1400_v55  ;;  %v1707_v36 = vpack.c.bf16 %v1701_v17, %v1700_v26 }
 0x53f   : > { %v4936_v48 = vpop.eup %4935  ;;  %4478 = vmatprep.subr.bf16.mxu0 %v1431_v32  ;;  %4735 = vmatprep.subr.bf16.mxu1 %v1431_v32  ;;  %v1411_v15 = vmul.f32 %v4934_v33, %v5870_v4  ;;  %v1419_v27 = vpack.c.bf16 %v1409_v62, %v1408_v25  ;;  %v1676_v49 = vmul.f32 %v5919_v52, %v5454_v6 }
 0x540   : > { %v4938_v9 = vpop.eup %4937  ;;  %v1402_v50 = vmul.f32 %v4936_v48, %v5840_v8  ;;  %v1965_v31 = vpack.c.bf16 %v1961_v51, %v1960_v60  ;;  %v1677_v20 = vmul.f32 %v5919_v52, %v5470_v12  ;;  %v1958_v4 = vmul.f32 %v5911_v24, %v5467_v11  ;;  %v2252_v42 = vpop.permute.xlu0 %2251 }
 0x541   : > { %2851 = vrot.lane.b32.xlu1 %v4201_v18, %s5134_s3  ;;  %1743 = vrot.lane.b32.xlu0 %v1706_v53, %s5135_s27  ;;  %v4940_v58 = vpop.eup %4939  ;;  %v1410_v44 = vmul.f32 %v4938_v9, %v5866_v40  ;;  %v1959_v8 = vmul.f32 %v5911_v24, %v5484_v16  ;;  %v1674_v39 = vmul.f32 %v5919_v52, %v5467_v11 }
 0x542   : > { %4479 = vmatpush3.bf16.msra.mxu0 %v1431_v32  ;;  %4743 = vmatpush3.bf16.msra.mxu1 %v1431_v32  ;;  %v4942_v29 = vpop.eup %4941  ;;  %v1416_v13 = vpack.c.bf16 %v1403_v10, %v1402_v50  ;;  %v1675_v57 = vmul.f32 %v5919_v52, %v5484_v16  ;;  %v1681_v38 = vpack.c.bf16 %v1677_v20, %v1676_v49 }
 0x543   : > { %4496 = vmatprep.subr.bf16.mxu0 %v4818_v19  ;;  %v4944_v5 = vpop.eup %4943  ;;  %v1420_v40 = vpack.c.bf16 %v1411_v15, %v1410_v44  ;;  %v1405_v35 = vmul.f32 %v4942_v29, %v5838_v47  ;;  %v1964_v28 = vpack.c.bf16 %v1959_v8, %v1958_v4  ;;  %v1956_v43 = vmul.f32 %v5911_v24, %v5600_v7 }
 0x544   : > { %v4946_v41 = vpop.eup %4945  ;;  %v1413_v59 = vmul.f32 %v4944_v5, %v5864_v56  ;;  %v1957_v63 = vmul.f32 %v5911_v24, %v5591_v3  ;;  %v1404_v47 = vmul.f32 %v4940_v58, %v5832_v22  ;;  %v1680_v30 = vpack.c.bf16 %v1675_v57, %v1674_v39 }
 0x545   : > { %4481 = vmatmul.mubr.bf16.vlgmr.msra.gmra.mxu0 %v1415_v46  ;;  %4489 = vmatmul.mubr.bf16.vlgmr.msra.gmra.mxu1 %v1419_v27  ;;  %v1412_v23 = vmul.f32 %v4946_v41, %v5860_v2  ;;  %v1672_v21 = vmul.f32 %v5919_v52, %v5600_v7  ;;  %v1673_v14 = vmul.f32 %v5919_v52, %v5591_v3  ;;  %v4819_v2 = vld [vmem:[%s6602_s7] sm:$0xff]  }
 0x546   : > { %1745 = vrot.lane.b32.xlu1 %v1707_v36, %s5135_s27  ;;  %2005 = vrot.lane.b32.xlu0 %v1965_v31, %s5135_s27  ;;  %v1417_v56 = vpack.c.bf16 %v1405_v35, %v1404_v47  ;;  %v1963_v0 = vpack.c.bf16 %v1957_v63, %v1956_v43  ;;  %v1954_v54 = vmul.f32 %v5911_v24, %v5434_v61  ;;  %v2552_v36 = vpop.permute.xlu0 %2551 }
 0x547   : > { %4484 = vmatprep.mubr.bf16.mxu0 %v1416_v13  ;;  %4492 = vmatprep.mubr.bf16.mxu1 %v1420_v40  ;;  %v1421_v32 = vpack.c.bf16 %v1413_v59, %v1412_v23  ;;  %v1955_v22 = vmul.f32 %v5911_v24, %v5447_v1  ;;  %v1670_v45 = vmul.f32 %v5919_v52, %v5434_v61  ;;  %v2102_v24 = vpop.permute.xlu1 %2101 }
 0x548   : > { %4497 = vmatpush3.bf16.msra.mxu0 %v4818_v19  ;;  %v1671_v37 = vmul.f32 %v5919_v52, %v5447_v1  ;;  %v1679_v33 = vpack.c.bf16 %v1673_v14, %v1672_v21  ;;  %v2260_v34 = vmul.f32 %v2252_v42, %v5454_v6  ;;  %v2261_v62 = vmul.f32 %v2252_v42, %v5470_v12 }
 0x549   : > { %v1962_v18 = vpack.c.bf16 %v1955_v22, %v1954_v54  ;;  %v2110_v48 = vmul.f32 %v2102_v24, %v5454_v6  ;;  %v2111_v53 = vmul.f32 %v2102_v24, %v5470_v12  ;;  %v2258_v19 = vmul.f32 %v2252_v42, %v5467_v11 }
 0x54a   : > { %1863 = vrot.lane.b32.xlu1 %v1681_v38, %s5135_s27  ;;  %2003 = vrot.lane.b32.xlu0 %v1964_v28, %s5135_s27  ;;  %v1678_v26 = vpack.c.bf16 %v1671_v37, %v1670_v45  ;;  %v2265_v17 = vpack.c.bf16 %v2261_v62, %v2260_v34  ;;  %v2259_v9 = vmul.f32 %v2252_v42, %v5484_v16 }
 0x54b   : > { %v2115_v52 = vpack.c.bf16 %v2111_v53, %v2110_v48  ;;  %v2108_v55 = vmul.f32 %v2102_v24, %v5467_v11  ;;  %v2109_v51 = vmul.f32 %v2102_v24, %v5484_v16  ;;  %v2256_v25 = vmul.f32 %v2252_v42, %v5600_v7  ;;  %v2402_v5 = vpop.permute.xlu1 %2401 }
 0x54c   : > { %v2264_v60 = vpack.c.bf16 %v2259_v9, %v2258_v19  ;;  %v2257_v10 = vmul.f32 %v2252_v42, %v5591_v3  ;;  %v2106_v15 = vmul.f32 %v2102_v24, %v5600_v7  ;;  %v2107_v58 = vmul.f32 %v2102_v24, %v5591_v3 }
 0x54d   : > { %4485 = vmatmul.mubr.bf16.gmra.mxu0 %v1417_v56  ;;  %4493 = vmatmul.mubr.bf16.gmra.mxu1 %v1421_v32  ;;  %v2114_v46 = vpack.c.bf16 %v2109_v51, %v2108_v55  ;;  %v2254_v29 = vmul.f32 %v2252_v42, %v5434_v61  ;;  %v2255_v27 = vmul.f32 %v2252_v42, %v5447_v1  ;;  %v2702_v42 = vpop.permute.xlu0 %2701 }
 0x54e   : > { %1861 = vrot.lane.b32.xlu1 %v1680_v30, %s5135_s27  ;;  %2001 = vrot.lane.b32.xlu0 %v1963_v0, %s5135_s27  ;;  %v2263_v50 = vpack.c.bf16 %v2257_v10, %v2256_v25  ;;  %v2113_v44 = vpack.c.bf16 %v2107_v58, %v2106_v15  ;;  %v2104_v49 = vmul.f32 %v2102_v24, %v5434_v61 }
 0x54f   : > { %4530 = vmatprep.mubr.msk.bf16.mxu1 %vm1755_vm2, %v4819_v2  ;;  %v2262_v31 = vpack.c.bf16 %v2255_v27, %v2254_v29  ;;  %v2105_v20 = vmul.f32 %v2102_v24, %v5447_v1  ;;  %v2560_v4 = vmul.f32 %v2552_v36, %v5454_v6  ;;  %v2561_v8 = vmul.f32 %v2552_v36, %v5470_v12 }
 0x550   : > { %v2410_v41 = vmul.f32 %v2402_v5, %v5454_v6  ;;  %v2411_v13 = vmul.f32 %v2402_v5, %v5470_v12  ;;  %v2558_v59 = vmul.f32 %v2552_v36, %v5467_v11  ;;  %v2559_v39 = vmul.f32 %v2552_v36, %v5484_v16 }
 0x551   : > { %v2112_v40 = vpack.c.bf16 %v2105_v20, %v2104_v49  ;;  %v2565_v35 = vpack.c.bf16 %v2561_v8, %v2560_v4  ;;  %v2408_v38 = vmul.f32 %v2402_v5, %v5467_v11  ;;  %v2409_v43 = vmul.f32 %v2402_v5, %v5484_v16  ;;  %v4824_v8 = vld [vmem:[%s6602_s7 + $0x68] sm:$0xff]  }
 0x552   : > { %1859 = vrot.lane.b32.xlu1 %v1679_v33, %s5135_s27  ;;  %1999 = vrot.lane.b32.xlu0 %v1962_v18, %s5135_s27  ;;  %v2415_v57 = vpack.c.bf16 %v2411_v13, %v2410_v41  ;;  %v2564_v28 = vpack.c.bf16 %v2559_v39, %v2558_v59  ;;  %v2556_v63 = vmul.f32 %v2552_v36, %v5600_v7  ;;  %v4825_v41 = vld [vmem:[%s6602_s7 + $0x70] sm:$0xff]   ;;  %v4827_v59 = vld [vmem:[%s6602_s7 + $0xa0] sm:$0xff]  }
 0x553   : > { %v2557_v47 = vmul.f32 %v2552_v36, %v5591_v3  ;;  %v2406_v23 = vmul.f32 %v2402_v5, %v5600_v7  ;;  %v2407_v56 = vmul.f32 %v2402_v5, %v5591_v3  ;;  %v2414_v32 = vpack.c.bf16 %v2409_v43, %v2408_v38  ;;  %v4828_v38 = vld [vmem:[%s6602_s7 + $0xa8] sm:$0xff]  }
 0x554   : > { %v2554_v21 = vmul.f32 %v2552_v36, %v5434_v61  ;;  %v2555_v0 = vmul.f32 %v2552_v36, %v5447_v1  ;;  %v2404_v22 = vmul.f32 %v2402_v5, %v5434_v61  ;;  %v2405_v2 = vmul.f32 %v2402_v5, %v5447_v1  ;;  %v4822_v5 = vld [vmem:[%s6602_s7 + $0x18] sm:$0xff]  }
 0x555   : > { %v2563_v30 = vpack.c.bf16 %v2557_v47, %v2556_v63  ;;  %v2413_v14 = vpack.c.bf16 %v2407_v56, %v2406_v23  ;;  %v2710_v37 = vmul.f32 %v2702_v42, %v5454_v6  ;;  %v2711_v24 = vmul.f32 %v2702_v42, %v5470_v12  ;;  %v4842_v47 = vld [vmem:[%s6602_s7 + $0xb8] sm:$0xff]   ;;  %v4845_v23 = vld [vmem:[%s6602_s7 + $0xe0] sm:$0xff]  }
 0x556   : > { %1857 = vrot.lane.b32.xlu1 %v1678_v26, %s5135_s27  ;;  %2305 = vrot.lane.b32.xlu0 %v2265_v17, %s5135_s27  ;;  %v2562_v54 = vpack.c.bf16 %v2555_v0, %v2554_v21  ;;  %v2412_v45 = vpack.c.bf16 %v2405_v2, %v2404_v22  ;;  %v2708_v18 = vmul.f32 %v2702_v42, %v5467_v11  ;;  %v4846_v21 = vld [vmem:[%s6602_s7 + $0xe8] sm:$0xff]   ;;  %v4849_v0 = vld [vmem:[%s6602_s7 + $0xf0] sm:$0xff]  }
 0x557   : > { %v2715_v33 = vpack.c.bf16 %v2711_v24, %v2710_v37  ;;  %v2709_v34 = vmul.f32 %v2702_v42, %v5484_v16  ;;  %v2706_v48 = vmul.f32 %v2702_v42, %v5600_v7  ;;  %v2707_v53 = vmul.f32 %v2702_v42, %v5591_v3 }
 0x558   : > { %v2704_v17 = vmul.f32 %v2702_v42, %v5434_v61  ;;  %v2705_v19 = vmul.f32 %v2702_v42, %v5447_v1 }
 0x559   : > { %v2714_v62 = vpack.c.bf16 %v2709_v34, %v2708_v18  ;;  %v2713_v26 = vpack.c.bf16 %v2707_v53, %v2706_v48 }
 0x55a   : > { %2155 = vrot.lane.b32.xlu1 %v2115_v52, %s5135_s27  ;;  %2303 = vrot.lane.b32.xlu0 %v2264_v60, %s5135_s27  ;;  %v2712_v9 = vpack.c.bf16 %v2705_v19, %v2704_v17 }
 0x55e   : > { %2153 = vrot.lane.b32.xlu1 %v2114_v46, %s5135_s27  ;;  %2301 = vrot.lane.b32.xlu0 %v2263_v50, %s5135_s27 }
 0x562   : > { %2151 = vrot.lane.b32.xlu1 %v2113_v44, %s5135_s27  ;;  %2299 = vrot.lane.b32.xlu0 %v2262_v31, %s5135_s27  ;;  %v4823_v31 = vld [vmem:[%s6602_s7 + $0x60] sm:$0xff]  }
 0x566   : > { %2149 = vrot.lane.b32.xlu1 %v2112_v40, %s5135_s27  ;;  %2605 = vrot.lane.b32.xlu0 %v2565_v35, %s5135_s27  ;;  %v4826_v35 = vld [vmem:[%s6602_s7 + $0x78] sm:$0xff]  }
 0x56a   : > { %2455 = vrot.lane.b32.xlu1 %v2415_v57, %s5135_s27  ;;  %2603 = vrot.lane.b32.xlu0 %v2564_v28, %s5135_s27  ;;  %v4841_v28 = vld [vmem:[%s6602_s7 + $0xb0] sm:$0xff]  }
 0x56e   : > { %2453 = vrot.lane.b32.xlu1 %v2414_v32, %s5135_s27  ;;  %2601 = vrot.lane.b32.xlu0 %v2563_v30, %s5135_s27 }
 0x572   : > { %2451 = vrot.lane.b32.xlu1 %v2413_v14, %s5135_s27  ;;  %2599 = vrot.lane.b32.xlu0 %v2562_v54, %s5135_s27  ;;  %v4850_v54 = vld [vmem:[%s6602_s7 + $0xf8] sm:$0xff]  }
 0x576   : > { %2449 = vrot.lane.b32.xlu1 %v2412_v45, %s5135_s27 }
 0x57a   : > { %2755 = vrot.lane.b32.xlu1 %v2715_v33, %s5135_s27 }
 0x57e   : > { %2753 = vrot.lane.b32.xlu1 %v2714_v62, %s5135_s27 }
 0x582   : > { %2751 = vrot.lane.b32.xlu1 %v2713_v26, %s5135_s27 }
 0x586   : > { %2749 = vrot.lane.b32.xlu1 %v2712_v9, %s5135_s27 }
 0x5af   : > { %v6038_v52 = vpop.permute.xlu1 %1749  ;;  %v1748_v32 = vpop.permute.xlu0 %1747 }
 0x5b0   : > { %4506 = vmatprep.subr.bf16.mxu0 %v6038_v52 }
 0x5b3   : > { %v2852_v55 = vpop.permute.xlu1 %2851  ;;  %v1744_v14 = vpop.permute.xlu0 %1743 }
 0x5b4   : > { %v2860_v60 = vmul.f32 %v2852_v55, %v5454_v6  ;;  %v2861_v51 = vmul.f32 %v2852_v55, %v5470_v12  ;;  %v2858_v10 = vmul.f32 %v2852_v55, %v5467_v11  ;;  %v2859_v15 = vmul.f32 %v2852_v55, %v5484_v16 }
 0x5b5   : > { %v2856_v50 = vmul.f32 %v2852_v55, %v5600_v7  ;;  %v2857_v29 = vmul.f32 %v2852_v55, %v5591_v3  ;;  %v2854_v12 = vmul.f32 %v2852_v55, %v5434_v61  ;;  %v2855_v11 = vmul.f32 %v2852_v55, %v5447_v1  ;;  %v4820_v7 = vld [vmem:[%s6602_s7 + $0x8] sm:$0xff]   ;;  %v4821_v61 = vld [vmem:[%s6602_s7 + $0x10] sm:$0xff]  }
 0x5b6   : > { %v2865_v25 = vpack.c.bf16 %v2861_v51, %v2860_v60  ;;  %v2864_v46 = vpack.c.bf16 %v2859_v15, %v2858_v10 }
 0x5b7   : > { %v2863_v6 = vpack.c.bf16 %v2857_v29, %v2856_v50  ;;  %v2862_v36 = vpack.c.bf16 %v2855_v11, %v2854_v12 }
 0x5b8   : > { %v6045_v58 = vpop.permute.xlu1 %1745  ;;  %2905 = vrot.lane.b32.xlu0 %v2865_v25, %s5135_s27  ;;  %v2006_v22 = vpop.permute.xlu0 %2005 }
 0x5bc   : > { %v1864_v27 = vpop.permute.xlu1 %1863  ;;  %2903 = vrot.lane.b32.xlu0 %v2864_v46, %s5135_s27  ;;  %v2004_v24 = vpop.permute.xlu0 %2003 }
 0x5bd   : > { %4522 = vmatprep.subr.bf16.mxu1 %v1864_v27 }
 0x5be   : > { %4523 = vmatpush3.bf16.msra.mxu1 %v1864_v27 }
 0x5c0   : > { %v1862_v16 = vpop.permute.xlu1 %1861  ;;  %2901 = vrot.lane.b32.xlu0 %v2863_v6, %s5135_s27  ;;  %v2002_v55 = vpop.permute.xlu0 %2001 }
 0x5c1   : > { %4524 = vmatprep.subr.bf16.mxu1 %v1862_v16 }
 0x5c2   : > { %4525 = vmatpush3.bf16.msra.mxu1 %v1862_v16 }
 0x5c4   : > { %v1860_v44 = vpop.permute.xlu1 %1859  ;;  %2899 = vrot.lane.b32.xlu0 %v2862_v36, %s5135_s27  ;;  %v2000_v6 = vpop.permute.xlu0 %1999 }
 0x5c5   : > { %4526 = vmatprep.subr.bf16.mxu1 %v1860_v44 }
 0x5c6   : > { %4527 = vmatpush3.bf16.msra.mxu1 %v1860_v44  ;;  %v4829_v44 = vld [vmem:[%s6602_s7 + $0x20] sm:$0xff]  }
 0x5c8   : > { %v1858_v3 = vpop.permute.xlu1 %1857 }
 0x5c9   : > { %4528 = vmatprep.subr.bf16.mxu1 %v1858_v3 }
 0x5ca   : > { %4529 = vmatpush3.bf16.msra.mxu1 %v1858_v3 }
 0x5cc   : > { %v2156_v1 = vpop.permute.xlu1 %2155 }
 0x5cd   : > { %4554 = vmatprep.subr.bf16.mxu1 %v2156_v1  ;;  %4531 = vmatmul.mubr.msk.bf16.vlgmr.msra.gmra.mxu1 %vm1755_vm2, %v4820_v7  ;;  %v4830_v7 = vld [vmem:[%s6602_s7 + $0x28] sm:$0xff]  }
 0x5ce   : > { %4555 = vmatpush3.bf16.msra.mxu1 %v2156_v1  ;;  %4534 = vmatprep.mubr.msk.bf16.mxu1 %vm1755_vm2, %v4821_v61  ;;  %v4831_v61 = vld [vmem:[%s6602_s7 + $0x30] sm:$0xff]  }
 0x5d0   : > { %v2154_v49 = vpop.permute.xlu1 %2153 }
 0x5d1   : > { %4556 = vmatprep.subr.bf16.mxu1 %v2154_v49 }
 0x5d2   : > { %4557 = vmatpush3.bf16.msra.mxu1 %v2154_v49 }
 0x5d4   : > { %v2152_v20 = vpop.permute.xlu1 %2151 }
 0x5d5   : > { %4558 = vmatprep.subr.bf16.mxu1 %v2152_v20  ;;  %4535 = vmatmul.mubr.msk.bf16.gmra.mxu1 %vm1755_vm2, %v4822_v5  ;;  %v4833_v5 = vld [vmem:[%s6602_s7 + $0x40] sm:$0xff]  }
 0x5d6   : > { %4559 = vmatpush3.bf16.msra.mxu1 %v2152_v20  ;;  %4562 = vmatprep.mubr.msk.bf16.mxu1 %vm1755_vm2, %v4823_v31  ;;  %v4834_v20 = vld [vmem:[%s6602_s7 + $0x48] sm:$0xff]  }
 0x5d8   : > { %v2150_v4 = vpop.permute.xlu1 %2149 }
 0x5d9   : > { %4560 = vmatprep.subr.bf16.mxu1 %v2150_v4 }
 0x5da   : > { %4561 = vmatpush3.bf16.msra.mxu1 %v2150_v4  ;;  %v4835_v4 = vld [vmem:[%s6602_s7 + $0x50] sm:$0xff]  }
 0x5dc   : > { %v2456_v13 = vpop.permute.xlu1 %2455 }
 0x5dd   : > { %4586 = vmatprep.subr.bf16.mxu1 %v2456_v13  ;;  %4563 = vmatmul.mubr.msk.bf16.vlgmr.msra.gmra.mxu1 %vm1755_vm2, %v4824_v8 }
 0x5de   : > { %4587 = vmatpush3.bf16.msra.mxu1 %v2456_v13  ;;  %4566 = vmatprep.mubr.msk.bf16.mxu1 %vm1755_vm2, %v4825_v41  ;;  %v4836_v41 = vld [vmem:[%s6602_s7 + $0x58] sm:$0xff]   ;;  %v4837_v13 = vld [vmem:[%s6602_s7 + $0x80] sm:$0xff]  }
 0x5e0   : > { %v2454_v40 = vpop.permute.xlu1 %2453 }
 0x5e1   : > { %4588 = vmatprep.subr.bf16.mxu1 %v2454_v40 }
 0x5e2   : > { %4589 = vmatpush3.bf16.msra.mxu1 %v2454_v40 }
 0x5e4   : > { %v2452_v39 = vpop.permute.xlu1 %2451 }
 0x5e5   : > { %4590 = vmatprep.subr.bf16.mxu1 %v2452_v39  ;;  %4567 = vmatmul.mubr.msk.bf16.gmra.mxu1 %vm1755_vm2, %v4826_v35  ;;  %v4838_v35 = vld [vmem:[%s6602_s7 + $0x88] sm:$0xff]  }
 0x5e6   : > { %4591 = vmatpush3.bf16.msra.mxu1 %v2452_v39  ;;  %4594 = vmatprep.mubr.msk.bf16.mxu1 %vm1755_vm2, %v4827_v59  ;;  %v4839_v39 = vld [vmem:[%s6602_s7 + $0x90] sm:$0xff]  }
 0x5e8   : > { %v2450_v57 = vpop.permute.xlu1 %2449 }
 0x5e9   : > { %4592 = vmatprep.subr.bf16.mxu1 %v2450_v57 }
 0x5ea   : > { %4593 = vmatpush3.bf16.msra.mxu1 %v2450_v57 }
 0x5ec   : > { %v2756_v43 = vpop.permute.xlu1 %2755 }
 0x5ed   : > { %4618 = vmatprep.subr.bf16.mxu1 %v2756_v43  ;;  %4595 = vmatmul.mubr.msk.bf16.vlgmr.msra.gmra.mxu1 %vm1755_vm2, %v4828_v38  ;;  %v4840_v38 = vld [vmem:[%s6602_s7 + $0x98] sm:$0xff]  }
 0x5ee   : > { %4619 = vmatpush3.bf16.msra.mxu1 %v2756_v43  ;;  %4598 = vmatprep.mubr.msk.bf16.mxu1 %vm1755_vm2, %v4841_v28  ;;  %v4843_v28 = vld [vmem:[%s6602_s7 + $0xc0] sm:$0xff]  }
 0x5f0   : > { %v2754_v63 = vpop.permute.xlu1 %2753 }
 0x5f1   : > { %4620 = vmatprep.subr.bf16.mxu1 %v2754_v63 }
 0x5f2   : > { %4621 = vmatpush3.bf16.msra.mxu1 %v2754_v63  ;;  %v4844_v63 = vld [vmem:[%s6602_s7 + $0xc8] sm:$0xff]  }
 0x5f4   : > { %v2752_v56 = vpop.permute.xlu1 %2751 }
 0x5f5   : > { %4622 = vmatprep.subr.bf16.mxu1 %v2752_v56  ;;  %4599 = vmatmul.mubr.msk.bf16.gmra.mxu1 %vm1755_vm2, %v4842_v47 }
 0x5f6   : > { %4623 = vmatpush3.bf16.msra.mxu1 %v2752_v56  ;;  %4626 = vmatprep.mubr.msk.bf16.mxu1 %vm1755_vm2, %v4845_v23  ;;  %v4847_v23 = vld [vmem:[%s6602_s7 + $0xd0] sm:$0xff]  }
 0x5f8   : > { %v2750_v30 = vpop.permute.xlu1 %2749 }
 0x5f9   : > { %4624 = vmatprep.subr.bf16.mxu1 %v2750_v30 }
 0x5fa   : > { %4625 = vmatpush3.bf16.msra.mxu1 %v2750_v30  ;;  %v4851_v30 = vld [vmem:[%s6602_s7 + $0x100] sm:$0xff]  }
 0x5fd   : > { %4627 = vmatmul.mubr.msk.bf16.vlgmr.msra.gmra.mxu1 %vm1755_vm2, %v4846_v21 }
 0x5fe   : > { %4630 = vmatprep.mubr.msk.bf16.mxu1 %vm1755_vm2, %v4849_v0  ;;  %v4852_v0 = vld [vmem:[%s6602_s7 + $0x108] sm:$0xff]  }
 0x605   : > { %v4482_v2 = vpop.f32.mrf.mxu0  ;;  %v4490_v42 = vpop.f32.mrf.mxu1  ;;  %4631 = vmatmul.mubr.msk.bf16.gmra.mxu1 %vm1755_vm2, %v4850_v54  ;;  %v4854_v54 = vld [vmem:[%s6602_s7 + $0x118] sm:$0xff]  }
 0x606   : > { %v1553_v17 = vadd.f32 %v4490_v42, %v4482_v2 }
 0x607   : > { %v1488_v45 = vpop.f32.mrf.mxu0  ;;  %v1520_v37 = vpop.f32.mrf.mxu1 }
 0x608   : > { %v1551_v53 = vadd.f32 %v1520_v37, %v1488_v45 }
 0x609   : > { %v4483_v33 = vpop.f32.mrf.mxu0  ;;  %v4491_v18 = vpop.f32.mrf.mxu1 }
 0x60a   : > { %v1554_v34 = vadd.f32 %v4491_v18, %v4483_v33 }
 0x60b   : > { %v1491_v62 = vpop.f32.mrf.mxu0  ;;  %v1523_v48 = vpop.f32.mrf.mxu1 }
 0x60c   : > { %v1552_v26 = vadd.f32 %v1523_v48, %v1491_v62  ;;  %v1560_v51 = vpack.c.bf16 %v1554_v34, %v1553_v17 }
 0x60d   : > { %v4486_v19 = vpop.f32.mrf.mxu0  ;;  %v4494_v9 = vpop.f32.mrf.mxu1 }
 0x60e   : > { %v1559_v60 = vpack.c.bf16 %v1552_v26, %v1551_v53  ;;  %v1557_v16 = vadd.f32 %v4494_v9, %v4486_v19 }
 0x60f   : > { %v1504_v25 = vpop.f32.mrf.mxu0  ;;  %v1536_v10 = vpop.f32.mrf.mxu1 }
 0x610   : > { %4498 = vmatprep.mubr.msk.bf16.mxu0 %vm1124_vm1, %v1559_v60  ;;  %v1555_v12 = vadd.f32 %v1536_v10, %v1504_v25 }
 0x611   : > { %v4487_v15 = vpop.f32.mrf.mxu0  ;;  %v4495_v46 = vpop.f32.mrf.mxu1  ;;  %4499 = vmatmul.mubr.msk.bf16.vlgmr.msra.gmra.mxu0 %vm1124_vm1, %v1560_v51 }
 0x612   : > { %4507 = vmatpush3.bf16.msra.mxu0 %v6038_v52  ;;  %v1558_v50 = vadd.f32 %v4495_v46, %v4487_v15  ;;  %v2306_v52 = vpop.permute.xlu0 %2305 }
 0x613   : > { %4508 = vmatprep.subr.bf16.mxu0 %v1748_v32  ;;  %v1507_v29 = vpop.f32.mrf.mxu0  ;;  %v1539_v27 = vpop.f32.mrf.mxu1 }
 0x614   : > { %v1556_v11 = vadd.f32 %v1539_v27, %v1507_v29  ;;  %v1562_v3 = vpack.c.bf16 %v1558_v50, %v1557_v16 }
 0x616   : > { %v1561_v36 = vpack.c.bf16 %v1556_v11, %v1555_v12  ;;  %4509 = vmatpush3.bf16.msra.mxu0 %v1748_v32  ;;  %v2304_v1 = vpop.permute.xlu0 %2303  ;;  %v4848_v32 = vld [vmem:[%s6602_s7 + $0xd8] sm:$0xff]  }
 0x617   : > { %4510 = vmatprep.subr.bf16.mxu0 %v6045_v58 }
 0x618   : > { %4502 = vmatprep.mubr.msk.bf16.mxu0 %vm1124_vm1, %v1561_v36 }
 0x619   : > { %4503 = vmatmul.mubr.msk.bf16.gmra.mxu0 %vm1124_vm1, %v1562_v3 }
 0x61a   : > { %4511 = vmatpush3.bf16.msra.mxu0 %v6045_v58  ;;  %4514 = vmatprep.mubr.msk.bf16.mxu0 %vm1755_vm2, %v4829_v44  ;;  %v4832_v58 = vld [vmem:[%s6602_s7 + $0x38] sm:$0xff]   ;;  %v2302_v49 = vpop.permute.xlu0 %2301 }
 0x61b   : > { %4512 = vmatprep.subr.bf16.mxu0 %v1744_v14 }
 0x61e   : > { %4513 = vmatpush3.bf16.msra.mxu0 %v1744_v14  ;;  %v2300_v31 = vpop.permute.xlu0 %2299  ;;  %v4853_v14 = vld [vmem:[%s6602_s7 + $0x110] sm:$0xff]  }
 0x61f   : > { %4538 = vmatprep.subr.bf16.mxu0 %v2006_v22 }
 0x621   : > { %4515 = vmatmul.mubr.msk.bf16.vlgmr.msra.gmra.mxu0 %vm1755_vm2, %v4830_v7 }
 0x622   : > { %4539 = vmatpush3.bf16.msra.mxu0 %v2006_v22  ;;  %4518 = vmatprep.mubr.msk.bf16.mxu0 %vm1755_vm2, %v4831_v61  ;;  %v2606_v8 = vpop.permute.xlu0 %2605 }
 0x623   : > { %4540 = vmatprep.subr.bf16.mxu0 %v2004_v24 }
 0x626   : > { %4541 = vmatpush3.bf16.msra.mxu0 %v2004_v24  ;;  %v2604_v40 = vpop.permute.xlu0 %2603 }
 0x627   : > { %4542 = vmatprep.subr.bf16.mxu0 %v2002_v55 }
 0x629   : > { %4519 = vmatmul.mubr.msk.bf16.gmra.mxu0 %vm1755_vm2, %v4832_v58 }
 0x62a   : > { %4543 = vmatpush3.bf16.msra.mxu0 %v2002_v55  ;;  %4546 = vmatprep.mubr.msk.bf16.mxu0 %vm1755_vm2, %v4833_v5  ;;  %v2602_v59 = vpop.permute.xlu0 %2601 }
 0x62b   : > { %4544 = vmatprep.subr.bf16.mxu0 %v2000_v6 }
 0x62e   : > { %4545 = vmatpush3.bf16.msra.mxu0 %v2000_v6  ;;  %v2600_v57 = vpop.permute.xlu0 %2599 }
 0x62f   : > { %4570 = vmatprep.subr.bf16.mxu0 %v2306_v52 }
 0x631   : > { %4547 = vmatmul.mubr.msk.bf16.vlgmr.msra.gmra.mxu0 %vm1755_vm2, %v4834_v20 }
 0x632   : > { %4571 = vmatpush3.bf16.msra.mxu0 %v2306_v52  ;;  %4550 = vmatprep.mubr.msk.bf16.mxu0 %vm1755_vm2, %v4835_v4  ;;  %v2906_v43 = vpop.permute.xlu0 %2905 }
 0x633   : > { %4572 = vmatprep.subr.bf16.mxu0 %v2304_v1 }
 0x636   : > { %4573 = vmatpush3.bf16.msra.mxu0 %v2304_v1  ;;  %v2904_v47 = vpop.permute.xlu0 %2903 }
 0x637   : > { %4574 = vmatprep.subr.bf16.mxu0 %v2302_v49 }
 0x639   : > { %4551 = vmatmul.mubr.msk.bf16.gmra.mxu0 %vm1755_vm2, %v4836_v41 }
 0x63a   : > { %4575 = vmatpush3.bf16.msra.mxu0 %v2302_v49  ;;  %4578 = vmatprep.mubr.msk.bf16.mxu0 %vm1755_vm2, %v4837_v13  ;;  %v2902_v56 = vpop.permute.xlu0 %2901 }
 0x63b   : > { %4576 = vmatprep.subr.bf16.mxu0 %v2300_v31 }
 0x63e   : > { %4577 = vmatpush3.bf16.msra.mxu0 %v2300_v31  ;;  %v2900_v21 = vpop.permute.xlu0 %2899 }
 0x63f   : > { %4602 = vmatprep.subr.bf16.mxu0 %v2606_v8 }
 0x641   : > { %4579 = vmatmul.mubr.msk.bf16.vlgmr.msra.gmra.mxu0 %vm1755_vm2, %v4838_v35 }
 0x642   : > { %4603 = vmatpush3.bf16.msra.mxu0 %v2606_v8  ;;  %4582 = vmatprep.mubr.msk.bf16.mxu0 %vm1755_vm2, %v4839_v39 }
 0x643   : > { %4604 = vmatprep.subr.bf16.mxu0 %v2604_v40 }
 0x646   : > { %4605 = vmatpush3.bf16.msra.mxu0 %v2604_v40 }
 0x647   : > { %4606 = vmatprep.subr.bf16.mxu0 %v2602_v59 }
 0x649   : > { %4583 = vmatmul.mubr.msk.bf16.gmra.mxu0 %vm1755_vm2, %v4840_v38 }
 0x64a   : > { %4607 = vmatpush3.bf16.msra.mxu0 %v2602_v59  ;;  %4610 = vmatprep.mubr.msk.bf16.mxu0 %vm1755_vm2, %v4843_v28 }
 0x64b   : > { %4608 = vmatprep.subr.bf16.mxu0 %v2600_v57 }
 0x64e   : > { %4609 = vmatpush3.bf16.msra.mxu0 %v2600_v57 }
 0x64f   : > { %4634 = vmatprep.subr.bf16.mxu0 %v2906_v43 }
 0x651   : > { %4611 = vmatmul.mubr.msk.bf16.vlgmr.msra.gmra.mxu0 %vm1755_vm2, %v4844_v63 }
 0x652   : > { %4635 = vmatpush3.bf16.msra.mxu0 %v2906_v43  ;;  %4614 = vmatprep.mubr.msk.bf16.mxu0 %vm1755_vm2, %v4847_v23 }
 0x653   : > { %4636 = vmatprep.subr.bf16.mxu0 %v2904_v47 }
 0x656   : > { %4637 = vmatpush3.bf16.msra.mxu0 %v2904_v47 }
 0x657   : > { %4638 = vmatprep.subr.bf16.mxu0 %v2902_v56 }
 0x659   : > { %4615 = vmatmul.mubr.msk.bf16.gmra.mxu0 %vm1755_vm2, %v4848_v32 }
 0x65a   : > { %4639 = vmatpush3.bf16.msra.mxu0 %v2902_v56  ;;  %4642 = vmatprep.mubr.msk.bf16.mxu0 %vm1755_vm2, %v4851_v30 }
 0x65b   : > { %4640 = vmatprep.subr.bf16.mxu0 %v2900_v21 }
 0x65e   : > { %4641 = vmatpush3.bf16.msra.mxu0 %v2900_v21 }
 0x661   : > { %4643 = vmatmul.mubr.msk.bf16.vlgmr.msra.gmra.mxu0 %vm1755_vm2, %v4852_v0 }
 0x662   : > { %4646 = vmatprep.mubr.msk.bf16.mxu0 %vm1755_vm2, %v4853_v14 }
 0x669   : > { %4647 = vmatmul.mubr.msk.bf16.gmra.mxu0 %vm1755_vm2, %v4854_v54 }
 0x68d   : > { %v4532_v22 = vpop.f32.mrf.mxu1 }
 0x68f   : > { %v1915_v2 = vpop.f32.mrf.mxu1 }
 0x691   : > { %v4533_v42 = vpop.f32.mrf.mxu1 }
 0x693   : > { %v1918_v45 = vpop.f32.mrf.mxu1 }
 0x695   : > { %v6202_v37 = vpop.f32.mrf.mxu1 }
 0x697   : > { %v6204_v24 = vpop.f32.mrf.mxu1 }
 0x699   : > { %v6206_v33 = vpop.f32.mrf.mxu1 }
 0x69b   : > { %v6208_v18 = vpop.f32.mrf.mxu1 }
 0x69d   : > { %v6210_v34 = vpop.f32.mrf.mxu1 }
 0x69f   : > { %v2207_v48 = vpop.f32.mrf.mxu1 }
 0x6a1   : > { %v4565_v17 = vpop.f32.mrf.mxu1 }
 0x6a3   : > { %v6222_v55 = vpop.f32.mrf.mxu1 }
 0x6a5   : > { %v6228_v25 = vpop.f32.mrf.mxu1 }
 0x6a7   : > { %v6232_v46 = vpop.f32.mrf.mxu1 }
 0x6a9   : > { %v6234_v27 = vpop.f32.mrf.mxu1 }
 0x6ab   : > { %v6236_v11 = vpop.f32.mrf.mxu1 }
 0x6ad   : > { %v6238_v44 = vpop.f32.mrf.mxu1 }
 0x6af   : > { %v2507_v7 = vpop.f32.mrf.mxu1 }
 0x6b1   : > { %v4597_v58 = vpop.f32.mrf.mxu1 }
 0x6b3   : > { %v6240_v31 = vpop.f32.mrf.mxu1 }
 0x6b5   : > { %v6242_v8 = vpop.f32.mrf.mxu1 }
 0x6b7   : > { %v6244_v40 = vpop.f32.mrf.mxu1 }
 0x6b9   : > { %v6246_v39 = vpop.f32.mrf.mxu1 }
 0x6ba   : > { %6634 = vst [vmem:[#allocation21_spill] sm:$0xff] %v6246_v39 }
 0x6bb   : > { %v6248_v28 = vpop.f32.mrf.mxu1 }
 0x6bc   : > { %6635 = vst [vmem:[#allocation22_spill] sm:$0xff] %v6248_v28 }
 0x6bd   : > { %v4628_v47 = vpop.f32.mrf.mxu1 }
 0x6bf   : > { %v2807_v14 = vpop.f32.mrf.mxu1 }
 0x6d1   : > { %v6212_v62 = vpop.f32.mrf.mxu0 }
 0x6d2   : > { %6626 = vst [vmem:[#allocation13_spill] sm:$0xff] %v6212_v62 }
 0x6d3   : > { %v6214_v53 = vpop.f32.mrf.mxu0 }
 0x6d4   : > { %6627 = vst [vmem:[#allocation14_spill] sm:$0xff] %v6214_v53  ;;  %v4629_v53 = vpop.f32.mrf.mxu1 }
 0x6d5   : > { %v6216_v26 = vpop.f32.mrf.mxu0 }
 0x6d6   : > { %6628 = vst [vmem:[#allocation15_spill] sm:$0xff] %v6216_v26 }
 0x6d7   : > { %v6218_v19 = vpop.f32.mrf.mxu0 }
 0x6d8   : > { %6629 = vst [vmem:[#allocation16_spill] sm:$0xff] %v6218_v19 }
 0x6d9   : > { %v6220_v9 = vpop.f32.mrf.mxu0 }
 0x6da   : > { %6630 = vst [vmem:[#allocation17_spill] sm:$0xff] %v6220_v9 }
 0x6db   : > { %v6224_v60 = vpop.f32.mrf.mxu0 }
 0x6dc   : > { %6631 = vst [vmem:[#allocation18_spill] sm:$0xff] %v6224_v60 }
 0x6dd   : > { %v6226_v51 = vpop.f32.mrf.mxu0 }
 0x6de   : > { %6632 = vst [vmem:[#allocation19_spill] sm:$0xff] %v6226_v51 }
 0x6df   : > { %v6230_v10 = vpop.f32.mrf.mxu0 }
 0x6e0   : > { %6633 = vst [vmem:[#allocation20_spill] sm:$0xff] %v6230_v10 }
 0x6e1   : > { %v4516_v15 = vpop.f32.mrf.mxu0 }
 0x6e2   : > { %v1924_v30 = vadd.f32 %v4532_v22, %v4516_v15 }
 0x6e3   : > { %v1802_v50 = vpop.f32.mrf.mxu0 }
 0x6e4   : > { %v1916_v56 = vadd.f32 %v1915_v2, %v1802_v50 }
 0x6e5   : > { %v4517_v29 = vpop.f32.mrf.mxu0 }
 0x6e6   : > { %v1927_v21 = vadd.f32 %v4533_v42, %v4517_v29 }
 0x6e7   : > { %v1805_v6 = vpop.f32.mrf.mxu0 }
 0x6e8   : > { %v1919_v10 = vadd.f32 %v1918_v45, %v1805_v6 }
 0x6e9   : > { %v4520_v12 = vpop.f32.mrf.mxu0 }
 0x6ea   : > { %v1940_v62 = vadd.f32 %v6202_v37, %v4520_v12 }
 0x6eb   : > { %v1818_v16 = vpop.f32.mrf.mxu0 }
 0x6ec   : > { %v1932_v39 = vadd.f32 %v6204_v24, %v1818_v16  ;;  %v5136_v16 = vmov 0.0  }
 0x6ed   : > { %v4521_v36 = vpop.f32.mrf.mxu0  ;;  %4650 = vmatprep.subr.bf16.mxu1 %v5136_v16  ;;  %4658 = vmatprep.mubr.msk.bf16.mxu1 %vm5137_vm4, %v5136_v16 }
 0x6ee   : > { %v1943_v42 = vadd.f32 %v6206_v33, %v4521_v36 }
 0x6ef   : > { %v1821_v3 = vpop.f32.mrf.mxu0 }
 0x6f1   : > { %v4548_v52 = vpop.f32.mrf.mxu0 }
 0x6f2   : > { %v2090_v51 = vadd.f32 %v4548_v52, %v1924_v30 }
 0x6f3   : > { %v2057_v61 = vpop.f32.mrf.mxu0 }
 0x6f4   : > { %v2088_v0 = vadd.f32 %v2057_v61, %v1916_v56  ;;  %v2240_v2 = vadd.f32 %v6210_v34, %v2090_v51  ;;  %v1935_v61 = vadd.f32 %v6208_v18, %v1821_v3 }
 0x6f5   : > { %v4549_v1 = vpop.f32.mrf.mxu0 }
 0x6f6   : > { %v2091_v60 = vadd.f32 %v4549_v1, %v1927_v21  ;;  %v2238_v19 = vadd.f32 %v2207_v48, %v2088_v0 }
 0x6f7   : > { %v2060_v49 = vpop.f32.mrf.mxu0 }
 0x6f8   : > { %v2089_v26 = vadd.f32 %v2060_v49, %v1919_v10  ;;  %v2241_v50 = vadd.f32 %v4565_v17, %v2091_v60  ;;  %v2810_v10 = vpop.f32.mrf.mxu1 }
 0x6f9   : > { %v4552_v5 = vpop.f32.mrf.mxu0 }
 0x6fa   : > { %v2094_v15 = vadd.f32 %v4552_v5, %v1940_v62  ;;  %v2239_v45 = vadd.f32 %v6222_v55, %v2089_v26  ;;  %v4632_v60 = vpop.f32.mrf.mxu1 }
 0x6fb   : > { %v2073_v20 = vpop.f32.mrf.mxu0 }
 0x6fc   : > { %v2092_v6 = vadd.f32 %v2073_v20, %v1932_v39  ;;  %v2244_v34 = vadd.f32 %v6228_v25, %v2094_v15 }
 0x6fd   : > { %v4553_v4 = vpop.f32.mrf.mxu0 }
 0x6fe   : > { %v2095_v37 = vadd.f32 %v4553_v4, %v1943_v42  ;;  %v2242_v17 = vadd.f32 %v6232_v46, %v2092_v6 }
 0x6ff   : > { %v2076_v41 = vpop.f32.mrf.mxu0 }
 0x700   : > { %v2093_v33 = vadd.f32 %v2076_v41, %v1935_v61  ;;  %v2245_v18 = vadd.f32 %v6234_v27, %v2095_v37 }
 0x701   : > { %v4580_v13 = vpop.f32.mrf.mxu0 }
 0x702   : > { %v2390_v52 = vadd.f32 %v4580_v13, %v2240_v2  ;;  %v2243_v25 = vadd.f32 %v6236_v11, %v2093_v33  ;;  %v2823_v13 = vpop.f32.mrf.mxu1 }
 0x703   : > { %v2357_v35 = vpop.f32.mrf.mxu0 }
 0x704   : > { %v2388_v22 = vadd.f32 %v2357_v35, %v2238_v19  ;;  %v2540_v26 = vadd.f32 %v6238_v44, %v2390_v52  ;;  %v4633_v56 = vpop.f32.mrf.mxu1 }
 0x705   : > { %v4581_v59 = vpop.f32.mrf.mxu0 }
 0x706   : > { %v2391_v48 = vadd.f32 %v4581_v59, %v2241_v50  ;;  %v2538_v1 = vadd.f32 %v2507_v7, %v2388_v22  ;;  %v2826_v50 = vpop.f32.mrf.mxu1 }
 0x707   : > { %v2360_v57 = vpop.f32.mrf.mxu0 }
 0x708   : > { %v2389_v24 = vadd.f32 %v2360_v57, %v2239_v45  ;;  %v2541_v19 = vadd.f32 %v4597_v58, %v2391_v48 }
 0x709   : > { %v4584_v38 = vpop.f32.mrf.mxu0 }
 0x70a   : > { %v2394_v51 = vadd.f32 %v4584_v38, %v2244_v34  ;;  %v2539_v3 = vadd.f32 %v6240_v31, %v2389_v24  ;;  %v6636_v31 = vld [vmem:[#allocation21_spill] sm:$0xff] }
 0x70b   : > { %v2373_v43 = vpop.f32.mrf.mxu0 }
 0x70c   : > { %v2392_v7 = vadd.f32 %v2373_v43, %v2242_v17  ;;  %v2544_v44 = vadd.f32 %v6242_v8, %v2394_v51  ;;  %v6637_v8 = vld [vmem:[#allocation22_spill] sm:$0xff] }
 0x70d   : > { %v4585_v63 = vpop.f32.mrf.mxu0 }
 0x70e   : > { %v2395_v20 = vadd.f32 %v4585_v63, %v2245_v18  ;;  %v2542_v27 = vadd.f32 %v6244_v40, %v2392_v7 }
 0x70f   : > { %v2376_v23 = vpop.f32.mrf.mxu0 }
 0x710   : > { %v2393_v58 = vadd.f32 %v2376_v23, %v2243_v25  ;;  %v2545_v38 = vadd.f32 %v6636_v31, %v2395_v20 }
 0x711   : > { %v4612_v32 = vpop.f32.mrf.mxu0 }
 0x712   : > { %v2690_v49 = vadd.f32 %v4612_v32, %v2540_v26  ;;  %v2543_v23 = vadd.f32 %v6637_v8, %v2393_v58 }
 0x713   : > { %v2657_v54 = vpop.f32.mrf.mxu0 }
 0x714   : > { %v2688_v55 = vadd.f32 %v2657_v54, %v2538_v1  ;;  %v2840_v59 = vadd.f32 %v4628_v47, %v2690_v49 }
 0x715   : > { %v4613_v9 = vpop.f32.mrf.mxu0 }
 0x716   : > { %v2691_v5 = vadd.f32 %v4613_v9, %v2541_v19  ;;  %v2838_v41 = vadd.f32 %v2807_v14, %v2688_v55 }
 0x717   : > { %v2660_v28 = vpop.f32.mrf.mxu0 }
 0x718   : > { %v2689_v46 = vadd.f32 %v2660_v28, %v2539_v3  ;;  %v2841_v39 = vadd.f32 %v4629_v53, %v2691_v5 }
 0x719   : > { %v4616_v29 = vpop.f32.mrf.mxu0 }
 0x71a   : > { %v2694_v9 = vadd.f32 %v4616_v29, %v2544_v44  ;;  %v2839_v11 = vadd.f32 %v2810_v10, %v2689_v46 }
 0x71b   : > { %v2673_v12 = vpop.f32.mrf.mxu0 }
 0x71c   : > { %v2692_v63 = vadd.f32 %v2673_v12, %v2542_v27  ;;  %v2844_v54 = vadd.f32 %v4632_v60, %v2694_v9 }
 0x71d   : > { %v4617_v62 = vpop.f32.mrf.mxu0 }
 0x71e   : > { %v2695_v30 = vadd.f32 %v4617_v62, %v2545_v38  ;;  %v2842_v2 = vadd.f32 %v2823_v13, %v2692_v63 }
 0x71f   : > { %v2676_v36 = vpop.f32.mrf.mxu0 }
 0x720   : > { %v2693_v21 = vadd.f32 %v2676_v36, %v2543_v23  ;;  %v2845_v15 = vadd.f32 %v4633_v56, %v2695_v30 }
 0x721   : > { %v4644_v4 = vpop.f32.mrf.mxu0 }
 0x722   : > { %v6268_v32 = vadd.f32 %v4644_v4, %v2840_v59  ;;  %v2843_v12 = vadd.f32 %v2826_v50, %v2693_v21 }
 0x723   : > { %v2957_v35 = vpop.f32.mrf.mxu0 }
 0x724   : > { %v6265_v57 = vadd.f32 %v2957_v35, %v2838_v41  ;;  %v2998_v22 = vmul.f32 %v6268_v32, %v6268_v32 }
 0x725   : > { %v4645_v43 = vpop.f32.mrf.mxu0 }
 0x726   : > { %v6270_v28 = vadd.f32 %v4645_v43, %v2841_v39  ;;  %v2996_v40 = vmul.f32 %v6265_v57, %v6265_v57  ;;  %v3007_v62 = vsel %vm1124_vm1, %v2998_v22, 0.0  ;;  %v3039_v17 = vsel %vm3035_vm3, %v2998_v22, 0.0 }
 0x727   : > { %v2960_v53 = vpop.f32.mrf.mxu0 }
 0x728   : > { %v6275_v47 = vadd.f32 %v2960_v53, %v2839_v11  ;;  %v3179_v14 = vpack.c.bf16 %v6270_v28, %v6268_v32  ;;  %v3004_v29 = vsel %vm1124_vm1, %v2996_v40, 0.0  ;;  %v3036_v45 = vsel %vm3035_vm3, %v2996_v40, 0.0 }
 0x729   : > { %v4648_v0 = vpop.f32.mrf.mxu0  ;;  %v2999_v48 = vmul.f32 %v6270_v28, %v6270_v28 }
 0x72a   : > { %v2997_v42 = vmul.f32 %v6275_v47, %v6275_v47  ;;  %v3178_v52 = vpack.c.bf16 %v6275_v47, %v6265_v57  ;;  %v6293_v34 = vadd.f32 %v4648_v0, %v2844_v54 }
 0x72b   : > { %v2973_v6 = vpop.f32.mrf.mxu0  ;;  %v3009_v51 = vsel %vm1124_vm1, %v2999_v48, 0.0  ;;  %v3041_v36 = vsel %vm3035_vm3, %v2999_v48, 0.0 }
 0x72c   : > { %v3005_v10 = vsel %vm1124_vm1, %v2997_v42, 0.0  ;;  %v3037_v61 = vsel %vm3035_vm3, %v2997_v42, 0.0  ;;  %v6291_v37 = vadd.f32 %v2973_v6, %v2842_v2  ;;  %v3002_v7 = vmul.f32 %v6293_v34, %v6293_v34 }
 0x72d   : > { %v3006_v1 = vadd.f32 %v3005_v10, %v3004_v29  ;;  %v3038_v24 = vadd.f32 %v3037_v61, %v3036_v45  ;;  %v4649_v33 = vpop.f32.mrf.mxu0 }
 0x72e   : > { %v3000_v26 = vmul.f32 %v6291_v37, %v6291_v37  ;;  %v6299_v19 = vadd.f32 %v4649_v33, %v2845_v15  ;;  %v3015_v31 = vsel %vm1124_vm1, %v3002_v7, 0.0  ;;  %v3047_v38 = vsel %vm3035_vm3, %v3002_v7, 0.0 }
 0x72f   : > { %v3008_v55 = vadd.f32 %v3007_v62, %v3006_v1  ;;  %v3040_v60 = vadd.f32 %v3039_v17, %v3038_v24  ;;  %v2976_v18 = vpop.f32.mrf.mxu0 }
 0x730   : > { %v6303_v3 = vadd.f32 %v2976_v18, %v2843_v12  ;;  %v3181_v25 = vpack.c.bf16 %v6299_v19, %v6293_v34  ;;  %v3011_v20 = vsel %vm1124_vm1, %v3000_v26, 0.0  ;;  %v3043_v4 = vsel %vm3035_vm3, %v3000_v26, 0.0 }
 0x731   : > { %v3010_v49 = vadd.f32 %v3009_v51, %v3008_v55  ;;  %v3042_v5 = vadd.f32 %v3041_v36, %v3040_v60  ;;  %v3003_v58 = vmul.f32 %v6299_v19, %v6299_v19 }
 0x732   : > { %v3001_v41 = vmul.f32 %v6303_v3, %v6303_v3  ;;  %v3180_v46 = vpack.c.bf16 %v6303_v3, %v6291_v37 }
 0x733   : > { %v3012_v13 = vadd.f32 %v3011_v20, %v3010_v49  ;;  %v3044_v44 = vadd.f32 %v3043_v4, %v3042_v5  ;;  %v3017_v11 = vsel %vm1124_vm1, %v3003_v58, 0.0  ;;  %v3049_v63 = vsel %vm3035_vm3, %v3003_v58, 0.0 }
 0x734   : > { %v3013_v35 = vsel %vm1124_vm1, %v3001_v41, 0.0  ;;  %v3045_v27 = vsel %vm3035_vm3, %v3001_v41, 0.0 }
 0x735   : > { %v3014_v59 = vadd.f32 %v3013_v35, %v3012_v13  ;;  %v3046_v39 = vadd.f32 %v3045_v27, %v3044_v44  ;;  %v3151_v27 = vld [vmem:[#allocation2] sm:$0x1] }
 0x736   : > { %4753 = vpush %v3151_v27 }
 0x737   : > { %v3016_v9 = vadd.f32 %v3015_v31, %v3014_v59  ;;  %v3048_v43 = vadd.f32 %v3047_v38, %v3046_v39 }
 0x739   : > { %v3018_v56 = vadd.f32 %v3017_v11, %v3016_v9  ;;  %v3050_v8 = vadd.f32 %v3049_v63, %v3048_v43 }
 0x73b   : > { %v3019_v23 = vrot.slane %v3018_v56, 4  ;;  %v3051_v30 = vrot.slane %v3050_v8, 4 }
 0x73d   : > { %v3020_v40 = vadd.f32 %v3019_v23, %v3018_v56  ;;  %v3052_v53 = vadd.f32 %v3051_v30, %v3050_v8 }
 0x73f   : > { %v3021_v21 = vrot.slane %v3020_v40, 2  ;;  %v3053_v0 = vrot.slane %v3052_v53, 2 }
 0x741   : > { %v3022_v54 = vadd.f32 %v3021_v21, %v3020_v40  ;;  %v3054_v2 = vadd.f32 %v3053_v0, %v3052_v53 }
 0x743   : > { %v3023_v50 = vrot.slane %v3022_v54, 1  ;;  %v3055_v22 = vrot.slane %v3054_v2, 1 }
 0x745   : > { %v3024_v42 = vadd.f32 %v3023_v50, %v3022_v54  ;;  %v3056_v15 = vadd.f32 %v3055_v22, %v3054_v2 }
 0x747   : > { %v3025_v29 = vmax.f32 %v3024_v42, 1e-24  ;;  %v3057_v45 = vmax.f32 %v3056_v15, 1e-24 }
 0x749   : > { %4947 = vrsqrt.f32 %v3025_v29 }
 0x74a   : > { %4949 = vrsqrt.f32 %v3057_v45 }
 0x756   : > { %v4948_v6 = vpop.eup %4947 }
 0x757   : > { %v4950_v48 = vpop.eup %4949  ;;  %v3027_v10 = vmul.f32 %v4948_v6, %v6265_v57  ;;  %v3028_v61 = vmul.f32 %v4948_v6, %v6275_v47  ;;  %v3029_v12 = vmul.f32 %v4948_v6, %v6268_v32  ;;  %v3030_v1 = vmul.f32 %v4948_v6, %v6270_v28 }
 0x758   : > { %v3064_v24 = vmul.f32 %v4950_v48, %v6303_v3  ;;  %v3065_v33 = vmul.f32 %v4950_v48, %v6293_v34  ;;  %v3066_v62 = vmul.f32 %v4950_v48, %v6299_v19  ;;  %v3063_v17 = vmul.f32 %v4950_v48, %v6291_v37 }
 0x759   : > { %v3061_v26 = vmul.f32 %v4950_v48, %v6268_v32  ;;  %v3062_v55 = vmul.f32 %v4950_v48, %v6270_v28  ;;  %v3059_v60 = vmul.f32 %v4950_v48, %v6265_v57  ;;  %v3060_v18 = vmul.f32 %v4950_v48, %v6275_v47 }
 0x75a   : > { %v3074_v51 = vpack.c.bf16 %v3066_v62, %v3065_v33  ;;  %v3073_v36 = vpack.c.bf16 %v3064_v24, %v3063_v17  ;;  %v3067_v7 = vpack.c.bf16 %v3028_v61, %v3027_v10  ;;  %v3068_v49 = vpack.c.bf16 %v3030_v1, %v3029_v12 }
 0x75b   : > { %v3031_v5 = vmul.f32 %v4948_v6, %v6291_v37  ;;  %v3032_v20 = vmul.f32 %v4948_v6, %v6303_v3  ;;  %v3033_v4 = vmul.f32 %v4948_v6, %v6293_v34  ;;  %v3034_v41 = vmul.f32 %v4948_v6, %v6299_v19 }
 0x75c   : > { %3101 = vrot.lane.b32.xlu1 %v3074_v51, %s5131_s25  ;;  %3099 = vrot.lane.b32.xlu0 %v3073_v36, %s5131_s25  ;;  %v3072_v44 = vpack.c.bf16 %v3062_v55, %v3061_v26  ;;  %v3071_v58 = vpack.c.bf16 %v3060_v18, %v3059_v60  ;;  %v4856_v60 = vld [vmem:[#allocation5 + $0x8] sm:$0xff]  }
 0x75d   : > { %v3069_v13 = vpack.c.bf16 %v3032_v20, %v3031_v5  ;;  %v3070_v35 = vpack.c.bf16 %v3034_v41, %v3033_v4 }
 0x760   : > { %3097 = vrot.lane.b32.xlu1 %v3072_v44, %s5131_s25  ;;  %3095 = vrot.lane.b32.xlu0 %v3071_v58, %s5131_s25 }
 0x767   : > { %s4754_s25 = spop %4753 }
 0x768   : > { %v3153_v37 = vstv %s4754_s25 }
 0x783   : > { %3075 = vxpose.xlu1.c.b16.start [1/4] (short) (narrow) %v3067_v7, 16 }
 0x787   : > { %3076 = vxpose.xlu1.c.b16.cont [2/4] (short) (narrow) %v3068_v49, 16 }
 0x78b   : > { %3077 = vxpose.xlu1.c.b16.cont [3/4] (short) (narrow) %v3069_v13, 16 }
 0x78f   : > { %3078 = vxpose.xlu1.c.b16.end [4/4] (short) (narrow) %v3070_v35, 16  ;;  %v4080_v35 = vld [vmem:[%s6607_s12] ss:$0 sm:$0xff] }
 0x793   : > { %3189 = vrot.lane.b32.xlu1 %v3179_v14, %s5133_s23 }
 0x797   : > { %3191 = vrot.lane.b32.xlu1 %v3180_v46, %s5133_s23 }
 0x79b   : > { %3193 = vrot.lane.b32.xlu1 %v3181_v25, %s5133_s23 }
 0x7ce   : > { %v3102_v59 = vpop.permute.xlu1 %3101  ;;  %v3100_v39 = vpop.permute.xlu0 %3099 }
 0x7cf   : > { %4651 = vmatpush3.bf16.msra.mxu1 %v3102_v59  ;;  %v6638_v59 = vld [vmem:[#allocation13_spill] sm:$0xff] }
 0x7d0   : > { %4652 = vmatprep.subr.bf16.mxu1 %v5136_v16 }
 0x7d2   : > { %v3098_v32 = vpop.permute.xlu1 %3097  ;;  %v3096_v28 = vpop.permute.xlu0 %3095 }
 0x7d3   : > { %4653 = vmatpush3.bf16.msra.mxu1 %v3100_v39  ;;  %v1654_v39 = vadd.f32 %v6638_v59, %v4080_v35 }
 0x7d4   : > { %4654 = vmatprep.subr.bf16.mxu1 %v5136_v16 }
 0x7d7   : > { %4655 = vmatpush3.bf16.msra.mxu1 %v3098_v32  ;;  %v6639_v32 = vld [vmem:[#allocation14_spill] sm:$0xff] }
 0x7d8   : > { %4656 = vmatprep.subr.bf16.mxu1 %v5136_v16 }
 0x7db   : > { %4657 = vmatpush3.bf16.msra.mxu1 %v3096_v28  ;;  %v1652_v28 = vadd.f32 %v4080_v35, %v6639_v32 }
 0x7e5   : > { %v3083_v14 = vpop.trf.xlu1 }
 0x7e6   : > { %4659 = vmatmul.mubr.msk.bf16.vlgmr.msra.gmra.mxu1 %vm1755_vm2, %v3083_v14 }
 0x805   : > { %v3190_v45 = vpop.permute.xlu1 %3189 }
 0x809   : > { %v3192_v57 = vpop.permute.xlu1 %3191 }
 0x80d   : > { %v3194_v47 = vpop.permute.xlu1 %3193 }
 0x8a6   : > { %v3144_v34 = vpop.f32.mrf.mxu1 }
 0x8a7   : > { %v3154_v19 = vmul.f32 %v3153_v37, %v3144_v34 }
 0x8a8   : > { %v4660_v3 = vpop.f32.mrf.mxu1 }
 0x8a9   : > { %v3156_v25 = vsel %vm1124_vm1, %v3154_v19, -inf }
 0x8aa   : > { %3157 = vmax.xlane.f32.xlu0 %v3156_v25  ;;  %v3147_v46 = vpop.f32.mrf.mxu1 }
 0x8ab   : > { %v3155_v31 = vmul.f32 %v3153_v37, %v3147_v46  ;;  %v6641_v46 = vld [vmem:[#allocation16_spill] sm:$0xff] }
 0x8ac   : > { %v4661_v38 = vpop.f32.mrf.mxu1 }
 0x8ad   : > { %v3159_v9 = vsel %vm1124_vm1, %v3155_v31, -inf  ;;  %v4991_v38 = vld [vmem:[%s5338_s28] sm:$0xff] }
 0x8ae   : > { %3160 = vmax.xlane.f32.xlu0 %v3159_v9 }
 0x933   : > { %v3158_v16 = vpop.xlane.xlu0 %3157 }
 0x934   : > { %v3162_v43 = vsub.f32 %v3154_v19, %v3158_v16  ;;  %v6640_v19 = vld [vmem:[#allocation15_spill] sm:$0xff] }
 0x935   : > { %v1655_v3 = vadd.f32 %v6640_v19, %v4080_v35 }
 0x936   : > { %v3164_v11 = vmul.f32 1.442695, %v3162_v43 }
 0x937   : > { %v3161_v63 = vpop.xlane.xlu0 %3160 }
 0x938   : > { %4951 = vpow2.f32 %v3164_v11  ;;  %v3163_v56 = vsub.f32 %v3155_v31, %v3161_v63  ;;  %v1653_v31 = vadd.f32 %v4080_v35, %v6641_v46  ;;  %v4992_v11 = vld [vmem:[%s5338_s28 + $0x10] sm:$0xff] }
 0x93a   : > { %v3166_v8 = vmul.f32 1.442695, %v3163_v56 }
 0x93c   : > { %4953 = vpow2.f32 %v3166_v8 }
 0x945   : > { %v4952_v23 = vpop.eup %4951 }
 0x946   : > { %v3168_v30 = vsel %vm1124_vm1, %v4952_v23, 0.0 }
 0x947   : > { %3169 = vadd.xlane.f32.xlu0 %v3168_v30  ;;  %v6642_v30 = vld [vmem:[#allocation17_spill] sm:$0xff] }
 0x949   : > { %v4954_v40 = vpop.eup %4953 }
 0x94a   : > { %v3171_v53 = vsel %vm1124_vm1, %v4954_v40, 0.0 }
 0x94b   : > { %3172 = vadd.xlane.f32.xlu0 %v3171_v53  ;;  %v6643_v53 = vld [vmem:[#allocation18_spill] sm:$0xff] }
 0x961   : > { %3187 = vrot.lane.b32.xlu0 %v3178_v52, %s5133_s23  ;;  %v4855_v52 = vld [vmem:[%s6605_s10] sm:$0xff]  }
 0x962   : > { %4672 = vmatprep.subr.bf16.mxu1 %v4855_v52 }
 0x963   : > { %4673 = vmatpush3.bf16.msra.mxu1 %v4855_v52 }
 0x9d0   : > { %v3170_v21 = vpop.xlane.xlu0 %3169 }
 0x9d1   : > { %4955 = vrcp.f32 %v3170_v21  ;;  %v1656_v21 = vadd.f32 %v4080_v35, %v6643_v53 }
 0x9d4   : > { %v3173_v0 = vpop.xlane.xlu0 %3172 }
 0x9d5   : > { %4957 = vrcp.f32 %v3173_v0  ;;  %v4993_v0 = vld [vmem:[%s5338_s28 + $0x8] sm:$0xff] }
 0x9d8   : > { %v3188_v54 = vpop.permute.xlu0 %3187 }
 0x9d9   : > { %4664 = vmatprep.mubr.msk.bf16.mxu0 %vm1124_vm1, %v3188_v54 }
 0x9de   : > { %v4956_v2 = vpop.eup %4955 }
 0x9df   : > { %v3176_v22 = vmul.f32 %v4956_v2, %v4952_v23  ;;  %v4994_v2 = vld [vmem:[%s5338_s28 + $0x18] sm:$0xff] }
 0x9e2   : > { %v4958_v50 = vpop.eup %4957 }
 0x9e3   : > { %v3177_v42 = vmul.f32 %v4958_v50, %v4954_v40  ;;  %v1658_v40 = vadd.f32 %v6642_v30, %v4080_v35 }
 0x9e5   : > { %v3182_v15 = vpack.c.bf16 %v3177_v42, %v3176_v22 }
 0x9e7   : > { %4752 = vmatprep.subr.msk.bf16.mxu0 %vm1124_vm1, %v3182_v15  ;;  %v3208_v29 = vsel %vm1124_vm1, %v3182_v15, 0 }
 0x9e8   : > { %4663 = vmatpush3.bf16.xpose.msra.mxu0 %v3208_v29 }
 0x9e9   : > { %4682 = vmatprep.subr.bf16.mxu0 %v4856_v60 }
 0x9ef   : > { %4665 = vmatmul.mubr.msk.bf16.vlgmr.msra.gmra.mxu0 %vm1124_vm1, %v3190_v45 }
 0x9f0   : > { %4668 = vmatprep.mubr.msk.bf16.mxu0 %vm1124_vm1, %v3192_v57  ;;  %4683 = vmatpush3.bf16.msra.mxu0 %v4856_v60 }
 0x9f7   : > { %4669 = vmatmul.mubr.msk.bf16.gmra.mxu0 %vm1124_vm1, %v3194_v47  ;;  %v6644_v47 = vld [vmem:[#allocation19_spill] sm:$0xff] }
 0x9f8   : > { %v1659_v52 = vadd.f32 %v6644_v47, %v4080_v35  ;;  %v4857_v47 = vld [vmem:[#allocation7 + $0x8] sm:$0xff]  }
 0x9f9   : > { %4692 = vmatprep.subr.bf16.mxu1 %v4857_v47 }
 0xaaf   : > { %v4666_v6 = vpop.f32.mrf.mxu0 }
 0xab1   : > { %v3244_v48 = vpop.f32.mrf.mxu0 }
 0xab3   : > { %v4667_v10 = vpop.f32.mrf.mxu0 }
 0xab4   : > { %v3276_v1 = vpack.c.bf16 %v4667_v10, %v4666_v6  ;;  %v6645_v6 = vld [vmem:[#allocation20_spill] sm:$0xff]  ;;  %v4995_v10 = vld [vmem:[%s5338_s28 + $0x20] sm:$0xff] }
 0xab5   : > { %v3247_v61 = vpop.f32.mrf.mxu0 }
 0xab6   : > { %v3275_v12 = vpack.c.bf16 %v3247_v61, %v3244_v48  ;;  %v1657_v48 = vadd.f32 %v4080_v35, %v6645_v6 }
 0xab7   : > { %v4670_v24 = vpop.f32.mrf.mxu0 }
 0xab8   : > { %4674 = vmatprep.mubr.msk.bf16.mxu1 %vm1124_vm1, %v3275_v12 }
 0xab9   : > { %v3260_v33 = vpop.f32.mrf.mxu0  ;;  %4675 = vmatmul.mubr.msk.bf16.vlgmr.msra.gmra.mxu1 %vm1124_vm1, %v3276_v1 }
 0xaba   : > { %4693 = vmatpush3.bf16.msra.mxu1 %v4857_v47 }
 0xabb   : > { %v4671_v62 = vpop.f32.mrf.mxu0 }
 0xabc   : > { %v3278_v55 = vpack.c.bf16 %v4671_v62, %v4670_v24  ;;  %v4996_v24 = vld [vmem:[%s5338_s28 + $0x30] sm:$0xff] }
 0xabd   : > { %v3263_v17 = vpop.f32.mrf.mxu0 }
 0xabe   : > { %v3277_v26 = vpack.c.bf16 %v3263_v17, %v3260_v33 }
 0xac0   : > { %4678 = vmatprep.mubr.msk.bf16.mxu1 %vm1124_vm1, %v3277_v26 }
 0xac1   : > { %4679 = vmatmul.mubr.msk.bf16.gmra.mxu1 %vm1124_vm1, %v3278_v55  ;;  %v4997_v55 = vld [vmem:[%s5338_s28 + $0x28] sm:$0xff] }
 0xb79   : > { %v4676_v18 = vpop.f32.mrf.mxu1 }
 0xb7b   : > { %v3333_v51 = vpop.f32.mrf.mxu1 }
 0xb7d   : > { %v4677_v36 = vpop.f32.mrf.mxu1 }
 0xb7e   : > { %v3365_v5 = vpack.c.bf16 %v4677_v36, %v4676_v18  ;;  %v4998_v18 = vld [vmem:[%s5338_s28 + $0x38] sm:$0xff]  ;;  %s661_s28 = scalar_lea.vmem %s6614_s19, %s4253_s9 }
 0xb7f   : > { %v3336_v7 = vpop.f32.mrf.mxu1 }
 0xb80   : > { %v3364_v49 = vpack.c.bf16 %v3336_v7, %v3333_v51 }
 0xb81   : > { %v4680_v20 = vpop.f32.mrf.mxu1 }
 0xb82   : > { %4684 = vmatprep.mubr.msk.bf16.mxu0 %vm1124_vm1, %v3364_v49 }
 0xb83   : > { %v3349_v4 = vpop.f32.mrf.mxu1  ;;  %4685 = vmatmul.mubr.msk.bf16.vlgmr.msra.gmra.mxu0 %vm1124_vm1, %v3365_v5 }
 0xb85   : > { %v4681_v41 = vpop.f32.mrf.mxu1 }
 0xb86   : > { %v3367_v58 = vpack.c.bf16 %v4681_v41, %v4680_v20 }
 0xb87   : > { %v3352_v13 = vpop.f32.mrf.mxu1 }
 0xb88   : > { %v3366_v44 = vpack.c.bf16 %v3352_v13, %v3349_v4 }
 0xb8a   : > { %4688 = vmatprep.mubr.msk.bf16.mxu0 %vm1124_vm1, %v3366_v44 }
 0xb8b   : > { %4689 = vmatmul.mubr.msk.bf16.gmra.mxu0 %vm1124_vm1, %v3367_v58 }
 0xc43   : > { %v4686_v27 = vpop.f32.mrf.mxu0 }
 0xc44   : > { %v3453_v37 = vadd.f32 %v4686_v27, %v1654_v39 }
 0xc45   : > { %v3420_v14 = vpop.f32.mrf.mxu0 }
 0xc46   : > { %v3451_v34 = vadd.f32 %v3420_v14, %v1652_v28  ;;  %v6396_v63 = vadd.f32 %v4992_v11, %v3453_v37 }
 0xc47   : > { %v4687_v25 = vpop.f32.mrf.mxu0 }
 0xc48   : > { %v6393_v9 = vadd.f32 %v4991_v38, %v3451_v34  ;;  %v3454_v16 = vadd.f32 %v4687_v25, %v1655_v3  ;;  %v3473_v29 = vsel %vm671_vm0, %v6396_v63, 0.0 }
 0xc49   : > { %v3423_v43 = vpop.f32.mrf.mxu0 }
 0xc4a   : > { %v3452_v56 = vadd.f32 %v3423_v43, %v1653_v31  ;;  %v3467_v8 = vsel %vm671_vm0, %v6393_v9, 0.0  ;;  %v6406_v50 = vadd.f32 %v4994_v2, %v3454_v16 }
 0xc4b   : > { %3468 = vadd.xlane.f32.xlu1 %v3467_v8  ;;  %v4690_v23 = vpop.f32.mrf.mxu0 }
 0xc4c   : > { %v6403_v54 = vadd.f32 %v4993_v0, %v3452_v56  ;;  %v3457_v42 = vadd.f32 %v4690_v23, %v1658_v40  ;;  %v3476_v1 = vsel %vm671_vm0, %v6406_v50, 0.0 }
 0xc4d   : > { %v3436_v22 = vpop.f32.mrf.mxu0 }
 0xc4e   : > { %v3455_v15 = vadd.f32 %v3436_v22, %v1656_v21  ;;  %v3470_v45 = vsel %vm671_vm0, %v6403_v54, 0.0  ;;  %v6420_v33 = vadd.f32 %v4996_v24, %v3457_v42 }
 0xc4f   : > { %3474 = vadd.xlane.f32.xlu1 %v3473_v29  ;;  %3471 = vadd.xlane.f32.xlu0 %v3470_v45  ;;  %v4691_v57 = vpop.f32.mrf.mxu0 }
 0xc50   : > { %v6415_v61 = vadd.f32 %v4995_v10, %v3455_v15  ;;  %v3458_v62 = vadd.f32 %v4691_v57, %v1659_v52  ;;  %v3485_v36 = vsel %vm671_vm0, %v6420_v33, 0.0  ;;  %v4858_v52 = vld [vmem:[#allocation7] sm:$0xff]  }
 0xc51   : > { %v3439_v12 = vpop.f32.mrf.mxu0  ;;  %4694 = vmatprep.subr.bf16.mxu1 %v4858_v52 }
 0xc52   : > { %v3456_v17 = vadd.f32 %v3439_v12, %v1657_v48  ;;  %v3479_v26 = vsel %vm671_vm0, %v6415_v61, 0.0  ;;  %v6428_v51 = vadd.f32 %v4998_v18, %v3458_v62  ;;  %4695 = vmatpush3.bf16.msra.mxu1 %v4858_v52 }
 0xc53   : > { %3477 = vadd.xlane.f32.xlu0 %v3476_v1  ;;  %3480 = vadd.xlane.f32.xlu1 %v3479_v26 }
 0xc54   : > { %v6425_v60 = vadd.f32 %v4997_v55, %v3456_v17  ;;  %v3488_v49 = vsel %vm671_vm0, %v6428_v51, 0.0 }
 0xc56   : > { %v3482_v7 = vsel %vm671_vm0, %v6425_v60, 0.0 }
 0xc57   : > { %3486 = vadd.xlane.f32.xlu1 %v3485_v36  ;;  %3483 = vadd.xlane.f32.xlu0 %v3482_v7 }
 0xc5b   : > { %3489 = vadd.xlane.f32.xlu0 %v3488_v49 }
 0xcd4   : > { %v3469_v5 = vpop.xlane.xlu1 %3468 }
 0xcd5   : > { %v3491_v20 = vmul.f32 0.03125, %v3469_v5 }
 0xcd7   : > { %v6437_v4 = vsub.f32 %v6393_v9, %v3491_v20 }
 0xcd8   : > { %v3475_v41 = vpop.xlane.xlu1 %3474  ;;  %v3472_v13 = vpop.xlane.xlu0 %3471 }
 0xcd9   : > { %v3493_v44 = vmul.f32 0.03125, %v3475_v41  ;;  %v3492_v58 = vmul.f32 0.03125, %v3472_v13  ;;  %v3507_v35 = vmul.f32 %v6437_v4, %v6437_v4 }
 0xcdb   : > { %v6442_v27 = vsub.f32 %v6396_v63, %v3493_v44  ;;  %v6445_v59 = vsub.f32 %v6403_v54, %v3492_v58  ;;  %v3515_v39 = vsel %vm671_vm0, %v3507_v35, 0.0 }
 0xcdc   : > { %v3478_v32 = vpop.xlane.xlu0 %3477  ;;  %3516 = vadd.xlane.f32.xlu1 %v3515_v39  ;;  %v3481_v28 = vpop.xlane.xlu1 %3480 }
 0xcdd   : > { %v3494_v14 = vmul.f32 0.03125, %v3478_v32  ;;  %v3495_v37 = vmul.f32 0.03125, %v3481_v28  ;;  %v3509_v34 = vmul.f32 %v6442_v27, %v6442_v27  ;;  %v3508_v19 = vmul.f32 %v6445_v59, %v6445_v59 }
 0xcdf   : > { %v6453_v3 = vsub.f32 %v6406_v50, %v3494_v14  ;;  %v6456_v25 = vsub.f32 %v6415_v61, %v3495_v37  ;;  %v3521_v46 = vsel %vm671_vm0, %v3509_v34, 0.0  ;;  %v3518_v31 = vsel %vm671_vm0, %v3508_v19, 0.0  ;;  %v4233_v34 = vld [vmem:[%s6608_s13] ss:$0 sm:$0xff] }
 0xce0   : > { %3522 = vadd.xlane.f32.xlu1 %v3521_v46  ;;  %v3487_v38 = vpop.xlane.xlu1 %3486  ;;  %3519 = vadd.xlane.f32.xlu0 %v3518_v31  ;;  %v3484_v16 = vpop.xlane.xlu0 %3483 }
 0xce1   : > { %v3497_v43 = vmul.f32 0.03125, %v3487_v38  ;;  %v3496_v11 = vmul.f32 0.03125, %v3484_v16  ;;  %v3511_v56 = vmul.f32 %v6456_v25, %v6456_v25  ;;  %v3510_v8 = vmul.f32 %v6453_v3, %v6453_v3 }
 0xce3   : > { %v6465_v23 = vsub.f32 %v6420_v33, %v3497_v43  ;;  %v6468_v30 = vsub.f32 %v6425_v60, %v3496_v11  ;;  %v3527_v40 = vsel %vm671_vm0, %v3511_v56, 0.0  ;;  %v3524_v53 = vsel %vm671_vm0, %v3510_v8, 0.0  ;;  %v4234_v43 = vld [vmem:[%s6609_s14] ss:$0 sm:$0xff] }
 0xce4   : > { %3528 = vadd.xlane.f32.xlu1 %v3527_v40  ;;  %3525 = vadd.xlane.f32.xlu0 %v3524_v53  ;;  %v3490_v21 = vpop.xlane.xlu0 %3489 }
 0xce5   : > { %v3498_v0 = vmul.f32 0.03125, %v3490_v21  ;;  %v3513_v2 = vmul.f32 %v6465_v23, %v6465_v23  ;;  %v3512_v22 = vmul.f32 %v6468_v30, %v6468_v30 }
 0xce7   : > { %v6477_v42 = vsub.f32 %v6428_v51, %v3498_v0  ;;  %v3533_v15 = vsel %vm671_vm0, %v3513_v2, 0.0  ;;  %v3530_v29 = vsel %vm671_vm0, %v3512_v22, 0.0 }
 0xce8   : > { %3534 = vadd.xlane.f32.xlu1 %v3533_v15  ;;  %3531 = vadd.xlane.f32.xlu0 %v3530_v29 }
 0xce9   : > { %v3514_v45 = vmul.f32 %v6477_v42, %v6477_v42 }
 0xceb   : > { %v3536_v57 = vsel %vm671_vm0, %v3514_v45, 0.0 }
 0xcec   : > { %3537 = vadd.xlane.f32.xlu0 %v3536_v57 }
 0xd65   : > { %v3517_v6 = vpop.xlane.xlu1 %3516 }
 0xd66   : > { %v3539_v48 = vmul.f32 0.03125, %v3517_v6 }
 0xd68   : > { %v3547_v10 = vadd.f32 1e-05, %v3539_v48 }
 0xd69   : > { %v3523_v12 = vpop.xlane.xlu1 %3522  ;;  %v3520_v1 = vpop.xlane.xlu0 %3519 }
 0xd6a   : > { %4959 = vrsqrt.f32 %v3547_v10  ;;  %v3541_v24 = vmul.f32 0.03125, %v3523_v12  ;;  %v3540_v62 = vmul.f32 0.03125, %v3520_v1 }
 0xd6c   : > { %v3549_v17 = vadd.f32 1e-05, %v3541_v24  ;;  %v3548_v26 = vadd.f32 1e-05, %v3540_v62 }
 0xd6d   : > { %v3529_v55 = vpop.xlane.xlu1 %3528  ;;  %v3526_v18 = vpop.xlane.xlu0 %3525 }
 0xd6e   : > { %4961 = vrsqrt.f32 %v3549_v17  ;;  %v3543_v36 = vmul.f32 0.03125, %v3529_v55  ;;  %v3542_v7 = vmul.f32 0.03125, %v3526_v18  ;;  %v4862_v55 = vld [vmem:[%s6612_s17 + $0x20] sm:$0xff]   ;;  %v4863_v18 = vld [vmem:[%s6612_s17 + $0x18] sm:$0xff]  }
 0xd6f   : > { %4963 = vrsqrt.f32 %v3548_v26  ;;  %v4861_v26 = vld [vmem:[%s6612_s17 + $0x28] sm:$0xff]  }
 0xd70   : > { %v3551_v49 = vadd.f32 1e-05, %v3543_v36  ;;  %v3550_v5 = vadd.f32 1e-05, %v3542_v7  ;;  %v4864_v36 = vld [vmem:[%s6612_s17 + $0x10] sm:$0xff]   ;;  %v4865_v7 = vld [vmem:[%s6612_s17 + $0x8] sm:$0xff]  }
 0xd71   : > { %v3535_v20 = vpop.xlane.xlu1 %3534  ;;  %v3532_v41 = vpop.xlane.xlu0 %3531 }
 0xd72   : > { %4965 = vrsqrt.f32 %v3551_v49  ;;  %v3545_v13 = vmul.f32 0.03125, %v3535_v20  ;;  %v3544_v44 = vmul.f32 0.03125, %v3532_v41  ;;  %v4866_v49 = vld [vmem:[%s6612_s17] sm:$0xff]  }
 0xd73   : > { %4967 = vrsqrt.f32 %v3550_v5  ;;  %v4235_v5 = vld [vmem:[%s6611_s16] ss:$0 sm:$0xff] }
 0xd74   : > { %v3553_v58 = vadd.f32 1e-05, %v3545_v13  ;;  %v3552_v35 = vadd.f32 1e-05, %v3544_v44 }
 0xd75   : > { %v3538_v39 = vpop.xlane.xlu0 %3537 }
 0xd76   : > { %4969 = vrsqrt.f32 %v3553_v58  ;;  %v3546_v32 = vmul.f32 0.03125, %v3538_v39 }
 0xd77   : > { %v4960_v28 = vpop.eup %4959  ;;  %4971 = vrsqrt.f32 %v3552_v35 }
 0xd78   : > { %v3554_v14 = vadd.f32 1e-05, %v3546_v32  ;;  %v3563_v37 = vmul.f32 %v4960_v28, %v6437_v4 }
 0xd7a   : > { %4973 = vrsqrt.f32 %v3554_v14  ;;  %v3578_v31 = vmul.f32 %v4233_v34, %v3563_v37 }
 0xd7b   : > { %v4962_v19 = vpop.eup %4961 }
 0xd7c   : > { %v4964_v46 = vpop.eup %4963  ;;  %v3565_v38 = vmul.f32 %v4962_v19, %v6442_v27  ;;  %v3593_v4 = vadd.f32 %v4234_v43, %v3578_v31 }
 0xd7d   : > { %v3564_v16 = vmul.f32 %v4964_v46, %v6445_v59 }
 0xd7e   : > { %v3580_v40 = vmul.f32 %v4233_v34, %v3565_v38 }
 0xd7f   : > { %v4966_v11 = vpop.eup %4965  ;;  %v3579_v56 = vmul.f32 %v4233_v34, %v3564_v16 }
 0xd80   : > { %v4968_v8 = vpop.eup %4967  ;;  %v3567_v0 = vmul.f32 %v4966_v11, %v6456_v25  ;;  %v3595_v29 = vadd.f32 %v4234_v43, %v3580_v40 }
 0xd81   : > { %v3566_v53 = vmul.f32 %v4968_v8, %v6453_v3  ;;  %v3594_v21 = vadd.f32 %v4234_v43, %v3579_v56 }
 0xd82   : > { %v3582_v47 = vmul.f32 %v4233_v34, %v3567_v0 }
 0xd83   : > { %v4970_v2 = vpop.eup %4969  ;;  %v3581_v22 = vmul.f32 %v4233_v34, %v3566_v53  ;;  %v3601_v15 = vpack.c.bf16 %v3594_v21, %v3593_v4 }
 0xd84   : > { %v4972_v27 = vpop.eup %4971  ;;  %v3569_v59 = vmul.f32 %v4970_v2, %v6465_v23  ;;  %v3597_v25 = vadd.f32 %v4234_v43, %v3582_v47 }
 0xd85   : > { %4696 = vmatprep.mubr.msk.bf16.mxu1 %vm671_vm0, %v3601_v15  ;;  %v3596_v45 = vadd.f32 %v4234_v43, %v3581_v22  ;;  %v3568_v57 = vmul.f32 %v4972_v27, %v6468_v30  ;;  %v4859_v30 = vld [vmem:[%s6612_s17 + $0x38] sm:$0xff]  }
 0xd86   : > { %v3584_v10 = vmul.f32 %v4233_v34, %v3569_v59  ;;  %4704 = vmatprep.subr.bf16.mxu0 %v4859_v30 }
 0xd87   : > { %v4974_v52 = vpop.eup %4973  ;;  %v3602_v6 = vpack.c.bf16 %v3596_v45, %v3595_v29  ;;  %v3583_v48 = vmul.f32 %v4233_v34, %v3568_v57  ;;  %4705 = vmatpush3.bf16.msra.mxu0 %v4859_v30 }
 0xd88   : > { %v3570_v3 = vmul.f32 %v4974_v52, %v6477_v42  ;;  %v3599_v23 = vadd.f32 %v4234_v43, %v3584_v10  ;;  %v4860_v42 = vld [vmem:[%s6612_s17 + $0x30] sm:$0xff]  }
 0xd89   : > { %4697 = vmatmul.mubr.msk.bf16.vlgmr.msra.gmra.mxu1 %vm671_vm0, %v3602_v6  ;;  %v3598_v12 = vadd.f32 %v4234_v43, %v3583_v48  ;;  %4706 = vmatprep.subr.bf16.mxu0 %v4860_v42 }
 0xd8a   : > { %v3585_v1 = vmul.f32 %v4233_v34, %v3570_v3 }
 0xd8b   : > { %v3603_v24 = vpack.c.bf16 %v3598_v12, %v3597_v25  ;;  %4707 = vmatpush3.bf16.msra.mxu0 %v4860_v42 }
 0xd8c   : > { %v3600_v62 = vadd.f32 %v4234_v43, %v3585_v1  ;;  %4708 = vmatprep.subr.bf16.mxu0 %v4861_v26 }
 0xd8d   : > { %4700 = vmatprep.mubr.msk.bf16.mxu1 %vm671_vm0, %v3603_v24 }
 0xd8e   : > { %v3604_v17 = vpack.c.bf16 %v3600_v62, %v3599_v23 }
 0xd8f   : > { %4709 = vmatpush3.bf16.msra.mxu0 %v4861_v26 }
 0xd90   : > { %4710 = vmatprep.subr.bf16.mxu0 %v4862_v55 }
 0xd91   : > { %4701 = vmatmul.mubr.msk.bf16.gmra.mxu1 %vm671_vm0, %v3604_v17 }
 0xd93   : > { %4711 = vmatpush3.bf16.msra.mxu0 %v4862_v55 }
 0xd94   : > { %4712 = vmatprep.subr.bf16.mxu0 %v4863_v18 }
 0xd97   : > { %4713 = vmatpush3.bf16.msra.mxu0 %v4863_v18 }
 0xd98   : > { %4714 = vmatprep.subr.bf16.mxu0 %v4864_v36 }
 0xd9b   : > { %4715 = vmatpush3.bf16.msra.mxu0 %v4864_v36 }
 0xd9c   : > { %4716 = vmatprep.subr.bf16.mxu0 %v4865_v7 }
 0xd9f   : > { %4717 = vmatpush3.bf16.msra.mxu0 %v4865_v7 }
 0xda0   : > { %4718 = vmatprep.subr.bf16.mxu0 %v4866_v49 }
 0xda3   : > { %4719 = vmatpush3.bf16.msra.mxu0 %v4866_v49 }
 0xe49   : > { %v4698_v20 = vpop.f32.mrf.mxu1 }
 0xe4a   : > { %v6529_v41 = vadd.f32 %v4698_v20, %v4235_v5 }
 0xe4b   : > { %v3674_v13 = vpop.f32.mrf.mxu1 }
 0xe4c   : > { %v3707_v44 = vmul.f32 %v6529_v41, %v6529_v41  ;;  %v6533_v58 = vadd.f32 %v4235_v5, %v3674_v13 }
 0xe4d   : > { %v4699_v35 = vpop.f32.mrf.mxu1 }
 0xe4e   : > { %v3715_v39 = vmul.f32 %v3707_v44, %v6529_v41  ;;  %v3705_v32 = vmul.f32 %v6533_v58, %v6533_v58  ;;  %v6538_v28 = vadd.f32 %v4699_v35, %v4235_v5 }
 0xe4f   : > { %v3677_v14 = vpop.f32.mrf.mxu1 }
 0xe50   : > { %v3723_v37 = vmul.f32 0.044715, %v3715_v39  ;;  %v3713_v34 = vmul.f32 %v3705_v32, %v6533_v58  ;;  %v3708_v19 = vmul.f32 %v6538_v28, %v6538_v28  ;;  %v6543_v46 = vadd.f32 %v4235_v5, %v3677_v14 }
 0xe51   : > { %v4702_v31 = vpop.f32.mrf.mxu1 }
 0xe52   : > { %v3731_v38 = vadd.f32 %v3723_v37, %v6529_v41  ;;  %v3721_v16 = vmul.f32 0.044715, %v3713_v34  ;;  %v3716_v43 = vmul.f32 %v3708_v19, %v6538_v28  ;;  %v3706_v11 = vmul.f32 %v6543_v46, %v6543_v46 }
 0xe53   : > { %v6549_v56 = vadd.f32 %v4702_v31, %v4235_v5  ;;  %v3690_v8 = vpop.f32.mrf.mxu1 }
 0xe54   : > { %v3739_v4 = vmul.f32 0.7978846, %v3731_v38  ;;  %v3729_v40 = vadd.f32 %v3721_v16, %v6533_v58  ;;  %v3724_v53 = vmul.f32 0.044715, %v3716_v43  ;;  %v3714_v21 = vmul.f32 %v3706_v11, %v6543_v46 }
 0xe55   : > { %v3711_v0 = vmul.f32 %v6549_v56, %v6549_v56  ;;  %v6555_v2 = vadd.f32 %v4235_v5, %v3690_v8  ;;  %v4703_v22 = vpop.f32.mrf.mxu1 }
 0xe56   : > { %v3737_v15 = vmul.f32 0.7978846, %v3729_v40  ;;  %v3732_v27 = vadd.f32 %v3724_v53, %v6538_v28  ;;  %v3722_v59 = vmul.f32 0.044715, %v3714_v21  ;;  %4975 = vtanh.f32 %v3739_v4 }
 0xe57   : > { %v3719_v29 = vmul.f32 %v3711_v0, %v6549_v56  ;;  %v3709_v45 = vmul.f32 %v6555_v2, %v6555_v2  ;;  %v3702_v57 = vadd.f32 %v4703_v22, %v4235_v5  ;;  %v3693_v47 = vpop.f32.mrf.mxu1 }
 0xe58   : > { %4977 = vtanh.f32 %v3737_v15  ;;  %v3740_v52 = vmul.f32 0.7978846, %v3732_v27  ;;  %v3730_v6 = vadd.f32 %v3722_v59, %v6543_v46  ;;  %v3694_v48 = vadd.f32 %v4235_v5, %v3693_v47 }
 0xe59   : > { %v3727_v3 = vmul.f32 0.044715, %v3719_v29  ;;  %v3717_v10 = vmul.f32 %v3709_v45, %v6555_v2  ;;  %v3712_v25 = vmul.f32 %v3702_v57, %v3702_v57 }
 0xe5a   : > { %4979 = vtanh.f32 %v3740_v52  ;;  %v3738_v12 = vmul.f32 0.7978846, %v3730_v6  ;;  %v3710_v1 = vmul.f32 %v3694_v48, %v3694_v48 }
 0xe5b   : > { %v3735_v24 = vadd.f32 %v3727_v3, %v6549_v56  ;;  %v3725_v23 = vmul.f32 0.044715, %v3717_v10  ;;  %v3720_v62 = vmul.f32 %v3712_v25, %v3702_v57 }
 0xe5c   : > { %4981 = vtanh.f32 %v3738_v12  ;;  %v3718_v17 = vmul.f32 %v3710_v1, %v3694_v48  ;;  %v4250_v12 = vld [vmem:[#allocation8] ss:$0 sm:$0xff] }
 0xe5d   : > { %v3743_v30 = vmul.f32 0.7978846, %v3735_v24  ;;  %v3733_v42 = vadd.f32 %v3725_v23, %v6555_v2  ;;  %v3728_v26 = vmul.f32 0.044715, %v3720_v62 }
 0xe5e   : > { %v3726_v55 = vmul.f32 0.044715, %v3718_v17 }
 0xe5f   : > { %4983 = vtanh.f32 %v3743_v30  ;;  %v3741_v18 = vmul.f32 0.7978846, %v3733_v42  ;;  %v3736_v36 = vadd.f32 %v3728_v26, %v3702_v57 }
 0xe60   : > { %v3734_v7 = vadd.f32 %v3726_v55, %v3694_v48 }
 0xe61   : > { %4985 = vtanh.f32 %v3741_v18  ;;  %v3744_v49 = vmul.f32 0.7978846, %v3736_v36 }
 0xe62   : > { %v3742_v5 = vmul.f32 0.7978846, %v3734_v7 }
 0xe63   : > { %4987 = vtanh.f32 %v3744_v49  ;;  %v4976_v20 = vpop.eup %4975 }
 0xe64   : > { %4989 = vtanh.f32 %v3742_v5  ;;  %v3755_v39 = vadd.f32 1.0, %v4976_v20 }
 0xe65   : > { %v4978_v13 = vpop.eup %4977 }
 0xe66   : > { %v3753_v44 = vadd.f32 1.0, %v4978_v13  ;;  %v3763_v31 = vmul.f32 0.5, %v3755_v39 }
 0xe67   : > { %v4980_v35 = vpop.eup %4979 }
 0xe68   : > { %v3756_v32 = vadd.f32 1.0, %v4980_v35  ;;  %v3761_v19 = vmul.f32 0.5, %v3753_v44  ;;  %v3771_v40 = vmul.f32 %v3763_v31, %v6529_v41 }
 0xe69   : > { %v4982_v14 = vpop.eup %4981 }
 0xe6a   : > { %v3764_v37 = vmul.f32 0.5, %v3756_v32  ;;  %v3754_v34 = vadd.f32 1.0, %v4982_v14  ;;  %v3769_v8 = vmul.f32 %v3761_v19, %v6533_v58 }
 0xe6c   : > { %v4984_v38 = vpop.eup %4983  ;;  %v3762_v16 = vmul.f32 0.5, %v3754_v34  ;;  %v3772_v43 = vmul.f32 %v3764_v37, %v6538_v28 }
 0xe6d   : > { %v3759_v21 = vadd.f32 1.0, %v4984_v38 }
 0xe6e   : > { %v4986_v11 = vpop.eup %4985  ;;  %v3770_v4 = vmul.f32 %v3762_v16, %v6543_v46  ;;  %v3778_v27 = vpack.c.bf16 %v3772_v43, %v3771_v40 }
 0xe6f   : > { %v3757_v53 = vadd.f32 1.0, %v4986_v11  ;;  %v3767_v28 = vmul.f32 0.5, %v3759_v21 }
 0xe70   : > { %v4988_v0 = vpop.eup %4987  ;;  %v3777_v22 = vpack.c.bf16 %v3770_v4, %v3769_v8 }
 0xe71   : > { %v4990_v15 = vpop.eup %4989  ;;  %v3760_v59 = vadd.f32 1.0, %v4988_v0  ;;  %v3765_v45 = vmul.f32 0.5, %v3757_v53  ;;  %v3775_v41 = vmul.f32 %v3767_v28, %v6549_v56 }
 0xe72   : > { %4720 = vmatprep.mubr.bf16.mxu0 %v3777_v22  ;;  %v3758_v29 = vadd.f32 1.0, %v4990_v15 }
 0xe73   : > { %4721 = vmatmul.mubr.bf16.vlgmr.msra.gmra.mxu0 %v3778_v27  ;;  %v3768_v47 = vmul.f32 0.5, %v3760_v59  ;;  %v3773_v46 = vmul.f32 %v3765_v45, %v6555_v2 }
 0xe74   : > { %v3766_v52 = vmul.f32 0.5, %v3758_v29 }
 0xe75   : > { %v3776_v58 = vmul.f32 %v3768_v47, %v3702_v57 }
 0xe76   : > { %v3774_v6 = vmul.f32 %v3766_v52, %v3694_v48 }
 0xe77   : > { %v3780_v10 = vpack.c.bf16 %v3776_v58, %v3775_v41 }
 0xe78   : > { %v3779_v3 = vpack.c.bf16 %v3774_v6, %v3773_v46 }
 0xe7a   : > { %4724 = vmatprep.mubr.bf16.mxu0 %v3779_v3 }
 0xe7b   : > { %4725 = vmatmul.mubr.bf16.gmra.mxu0 %v3780_v10 }
 0xf33   : > { %v4722_v25 = vpop.f32.mrf.mxu0 }
 0xf34   : > { %v3912_v1 = vadd.f32 %v4722_v25, %v6396_v63 }
 0xf35   : > { %v3879_v24 = vpop.f32.mrf.mxu0 }
 0xf36   : > { %v3927_v57 = vadd.f32 %v4250_v12, %v3912_v1  ;;  %v3910_v2 = vadd.f32 %v3879_v24, %v6393_v9 }
 0xf37   : > { %v4723_v48 = vpop.f32.mrf.mxu0 }
 0xf38   : > { %3935 = vst.msk [vmem:[%s661_s28 + $0x10] sm:$0xff] %vm671_vm0, %v3927_v57  ;;  %v3925_v56 = vadd.f32 %v4250_v12, %v3910_v2  ;;  %v3913_v23 = vadd.f32 %v4723_v48, %v6406_v50 }
 0xf39   : > { %v3882_v62 = vpop.f32.mrf.mxu0 }
 0xf3a   : > { %3933 = vst.msk [vmem:[%s661_s28] sm:$0xff] %vm671_vm0, %v3925_v56  ;;  %v3928_v17 = vadd.f32 %v4250_v12, %v3913_v23  ;;  %v3911_v63 = vadd.f32 %v3882_v62, %v6403_v54 }
 0xf3b   : > { %v4726_v30 = vpop.f32.mrf.mxu0 }
 0xf3c   : > { %3936 = vst.msk [vmem:[%s661_s28 + $0x18] sm:$0xff] %vm671_vm0, %v3928_v17  ;;  %v3926_v42 = vadd.f32 %v4250_v12, %v3911_v63  ;;  %v3916_v26 = vadd.f32 %v4726_v30, %v6420_v33 }
 0xf3d   : > { %v3895_v55 = vpop.f32.mrf.mxu0 }
 0xf3e   : > { %3934 = vst.msk [vmem:[%s661_s28 + $0x8] sm:$0xff] %vm671_vm0, %v3926_v42  ;;  %v3931_v9 = vadd.f32 %v4250_v12, %v3916_v26  ;;  %v3914_v18 = vadd.f32 %v3895_v55, %v6415_v61 }
 0xf3f   : > { %v4727_v36 = vpop.f32.mrf.mxu0 }
 0xf40   : > { %3939 = vst.msk [vmem:[%s661_s28 + $0x30] sm:$0xff] %vm671_vm0, %v3931_v9  ;;  %v3929_v50 = vadd.f32 %v4250_v12, %v3914_v18  ;;  %v3917_v7 = vadd.f32 %v4727_v36, %v6428_v51 }
 0xf41   : > { %v3898_v49 = vpop.f32.mrf.mxu0 }
 0xf42   : > { %3937 = vst.msk [vmem:[%s661_s28 + $0x20] sm:$0xff] %vm671_vm0, %v3929_v50  ;;  %v3932_v54 = vadd.f32 %v4250_v12, %v3917_v7  ;;  %v3915_v5 = vadd.f32 %v3898_v49, %v6425_v60 }
 0xf44   : > { %3940 = vst.msk [vmem:[%s661_s28 + $0x38] sm:$0xff] %vm671_vm0, %v3932_v54  ;;  %v3930_v33 = vadd.f32 %v4250_v12, %v3915_v5 }
 0xf46   : > { %3938 = vst.msk [vmem:[%s661_s28 + $0x28] sm:$0xff] %vm671_vm0, %v3930_v33 }
 0xf47 PF: > { %s34_s20 = sadd.s32 1, %s5121_s20  }
 0xf48   : > { %p31_p2 = scmp.ge.s32.totalorder %s34_s20, 4  }
 0xf4a   :  { %33 = sbr.rel (!%p31_p2) target bundleno = 8 (0x8), region = 151 }
 0xf4f   :  { %3962 = vsyncpa [#allocation4], 1 }
 0xf50   :  { %3964 = vsyncpa [#allocation4 + $0x1], 1 }
 0xf51   :  { %3965 = vsyncpa [#allocation6], 1 }
 0xf52   :  { %3966 = vsyncpa [#allocation9], 1 }

</bundles_post_ra>
